<compile_context>
chip_gen: v7x
topology: tpu7x:2x2x1
jax: 0.10.0
libtpu: 0.0.40
codegen_flags: <defaults>
</compile_context>

<pallas_src>
import jax
import jax.numpy as jnp
import numpy as np
from jax import lax
from jax.experimental import pallas as pl
from jax.experimental.pallas import tpu as pltpu

ALPHA = 0.5
SCALES = 4
_LANES = 128


def _make_kernel(n_scales):
    """Fused per-image kernel.

    Emits n_vals = 2 + 2*n_scales per-image partial sums, one row each of a
    (n_vals, 128) f32 tile:
      row 0          : sum(mask * res^2)      (MSE numerator)
      row 1          : sum(mask)              (a_11, MSE denominator / 2)
      row 2+2s / 3+2s: gradient numerator / denominator at scale s.
    """

    def grad_terms(d, mm):
        # Unmasked interior gradient on a compact (h, w) tile; static slices
        # mirror the PyTorch diff[:, 1:] - diff[:, :-1] formulation exactly.
        gx = jnp.abs(d[:, 1:] - d[:, :-1]) * (mm[:, 1:] * mm[:, :-1])
        gy = jnp.abs(d[1:, :] - d[:-1, :]) * (mm[1:, :] * mm[:-1, :])
        return jnp.sum(gx) + jnp.sum(gy)

    def kernel(p_ref, t_ref, m_ref, out_ref):
        # In-kernel dtype cast (perf review item 1): inputs may be bf16/f16/f32.
        p = p_ref[0].astype(jnp.float32)
        t = t_ref[0].astype(jnp.float32)
        m = m_ref[0].astype(jnp.float32)

        # ---- compute_scale_and_shift: per-image 2x2 normal equations --------
        # (these five sums must be full scalars — needed in-kernel for pssi)
        mp = m * p
        mt = m * t
        a00 = jnp.sum(mp * p)
        a01 = jnp.sum(mp)
        a11 = jnp.sum(m)
        b0 = jnp.sum(mp * t)
        b1 = jnp.sum(mt)

        det = a00 * a11 - a01 * a01
        valid = det != 0.0
        det_safe = jnp.where(valid, det, 1.0)
        scale = jnp.where(valid, (a11 * b0 - a01 * b1) / det_safe, 0.0)
        shift = jnp.where(valid, (-a01 * b0 + a00 * b1) / det_safe, 0.0)

        # prediction_ssi stays VMEM/vreg resident, never written back to HBM.
        res = scale * p + shift - t
        diff = m * res
        mse_num = jnp.sum(diff * res)          # == sum(mask * res * res)

        vals = [mse_num, a11]

        if n_scales > 0:
            # scale 0: full resolution, no selection masks needed.
            vals += [grad_terms(diff, m), a11]

            # scales >= 1 (perf review item 2): exact 2x-per-axis decimation
            # with 0/1 selection matmuls on the idle MXU, then run the
            # unmasked gradient code on the compacted arrays.
            hi = diff.astype(jnp.bfloat16).astype(jnp.float32)
            lo = diff - hi                     # exact (Sterbenz)
            mm = m                             # 0/1 mask: exact under any MXU path
            for _ in range(1, n_scales):
                hp, wp = hi.shape
                hs, ws = (hp + 1) // 2, (wp + 1) // 2
                r = (lax.broadcasted_iota(jnp.int32, (hs, hp), 1)
                     == 2 * lax.broadcasted_iota(jnp.int32, (hs, hp), 0)
                     ).astype(jnp.float32)     # (hs, hp): row selector k == 2i
                c = (lax.broadcasted_iota(jnp.int32, (wp, ws), 0)
                     == 2 * lax.broadcasted_iota(jnp.int32, (wp, ws), 1)
                     ).astype(jnp.float32)     # (wp, ws): col selector k == 2j

                def dec(x, r=r, c=c):
                    y = jnp.dot(r, x, preferred_element_type=jnp.float32)
                    return jnp.dot(y, c, preferred_element_type=jnp.float32)

                hi, lo, mm = dec(hi), dec(lo), dec(mm)
                d_s = hi + lo                  # == decimated diff, exactly
                vals += [grad_terms(d_s, mm), jnp.sum(mm)]

        # Direct per-row stores (no chained jnp.where scalar-pack, item 4).
        for k, v in enumerate(vals):
            out_ref[0, k:k + 1, :] = jnp.full((1, _LANES), v, jnp.float32)

    return kernel


def scale_and_shift_invariant_loss(prediction, target, mask,
                                   alpha=ALPHA, scales=SCALES):
    """Batch-based ScaleAndShiftInvariantLoss forward (alpha=0.5, scales=4)."""
    if not jnp.issubdtype(mask.dtype, jnp.floating):
        mask = mask.astype(jnp.float32)        # bool / int masks only

    B, H, W = prediction.shape
    n_scales = scales if alpha > 0 else 0
    n_vals = 2 + 2 * n_scales

    # Zero-mask padding to sublane/lane multiples (layout feedback item).
    # Exact: padded pixels carry mask == 0 and therefore contribute to no term.
    sub = 16 if any(x.dtype.itemsize < 4 for x in (prediction, target, mask)) else 8
    pad_h = (-H) % sub
    pad_w = (-W) % _LANES
    if pad_h or pad_w:
        pad = ((0, 0), (0, pad_h), (0, pad_w))
        prediction = jnp.pad(prediction, pad)
        target = jnp.pad(target, pad)
        mask = jnp.pad(mask, pad)
    Hp, Wp = H + pad_h, W + pad_w

    # Computed VMEM budget (review item 5): double-buffered input/output blocks
    # plus an allowance for in-kernel f32 temporaries, capped for v7x (64 MiB).
    in_bytes = Hp * Wp * sum(x.dtype.itemsize for x in (prediction, target, mask))
    out_bytes = n_vals * _LANES * 4
    est = 2 * (in_bytes + out_bytes) + 16 * Hp * Wp * 4 + (2 << 20)
    vmem_limit = int(min(max(est, 32 << 20), 48 << 20))

    in_spec = pl.BlockSpec((1, Hp, Wp), lambda b: (b, 0, 0))
    partials = pl.pallas_call(
        _make_kernel(n_scales),
        grid=(B,),
        in_specs=[in_spec, in_spec, in_spec],
        out_specs=pl.BlockSpec((1, n_vals, _LANES), lambda b: (b, 0, 0)),
        out_shape=jax.ShapeDtypeStruct((B, n_vals, _LANES), jnp.float32),
        compiler_params=pltpu.CompilerParams(
            dimension_semantics=("parallel",),
            vmem_limit_bytes=vmem_limit,
        ),
    )(prediction, target, mask)

    # Tiny cross-batch combine + safe divides on a handful of scalars.
    sums = jnp.sum(partials[:, :, 0], axis=0)

    def safe_div(num, den):
        return jnp.where(den != 0.0, num / jnp.where(den != 0.0, den, 1.0), 0.0)

    total = safe_div(sums[0], 2.0 * sums[1])          # batch-based MSE term
    for s in range(n_scales):
        total = total + alpha * safe_div(sums[2 + 2 * s], sums[3 + 2 * s])
    return total


# ----------------------- plain-JAX reference (for checking) -----------------
def _reference_loss(prediction, target, mask, alpha=ALPHA, scales=SCALES):
    prediction = prediction.astype(jnp.float32)
    target = target.astype(jnp.float32)
    mask = mask.astype(jnp.float32)

    def bsum(x):
        return jnp.sum(x, axis=(1, 2))

    a00 = bsum(mask * prediction * prediction)
    a01 = bsum(mask * prediction)
    a11 = bsum(mask)
    b0 = bsum(mask * prediction * target)
    b1 = bsum(mask * target)
    det = a00 * a11 - a01 * a01
    valid = det != 0
    det_safe = jnp.where(valid, det, 1.0)
    x0 = jnp.where(valid, (a11 * b0 - a01 * b1) / det_safe, 0.0)
    x1 = jnp.where(valid, (-a01 * b0 + a00 * b1) / det_safe, 0.0)
    pssi = x0[:, None, None] * prediction + x1[:, None, None]

    def safe(num, den):
        return jnp.where(den != 0, num / jnp.where(den != 0, den, 1.0), 0.0)

    res = pssi - target
    total = safe(jnp.sum(bsum(mask * res * res)), jnp.sum(2 * a11))

    def grad(p, t, m):
        diff = m * (p - t)
        gx = jnp.abs(diff[:, :, 1:] - diff[:, :, :-1]) * (m[:, :, 1:] * m[:, :, :-1])
        gy = jnp.abs(diff[:, 1:, :] - diff[:, :-1, :]) * (m[:, 1:, :] * m[:, :-1, :])
        return safe(jnp.sum(gx) + jnp.sum(gy), jnp.sum(m))

    if alpha > 0:
        for s in range(scales):
            step = 2 ** s
            total = total + alpha * grad(pssi[:, ::step, ::step],
                                         target[:, ::step, ::step],
                                         mask[:, ::step, ::step])
    return total


if __name__ == "__main__":
    B, H, W = 2, 64, 256   # small depth-map-like shapes (B, H, W)
    key = jax.random.PRNGKey(0)
    kp, kt, km = jax.random.split(key, 3)
    prediction = jax.random.normal(kp, (B, H, W), dtype=jnp.float32)
    target = jax.random.normal(kt, (B, H, W), dtype=jnp.float32) + 2.0
    mask = (jax.random.uniform(km, (B, H, W)) < 0.8).astype(jnp.float32)

    # f32 inputs vs f32 reference.
    out = jax.block_until_ready(
        scale_and_shift_invariant_loss(prediction, target, mask))
    ref = jax.block_until_ready(_reference_loss(prediction, target, mask))
    assert np.isfinite(float(out))
    np.testing.assert_allclose(float(out), float(ref), rtol=1e-4, atol=1e-6)

    # bf16 inputs (cast happens in-kernel, halves HBM traffic) vs a reference
    # evaluated on the same bf16-rounded values in f32.
    p16 = prediction.astype(jnp.bfloat16)
    t16 = target.astype(jnp.bfloat16)
    m16 = mask.astype(jnp.bfloat16)
    out16 = jax.block_until_ready(scale_and_shift_invariant_loss(p16, t16, m16))
    ref16 = jax.block_until_ready(_reference_loss(p16.astype(jnp.float32),
                                                  t16.astype(jnp.float32),
                                                  m16.astype(jnp.float32)))
    np.testing.assert_allclose(float(out16), float(ref16), rtol=1e-3, atol=1e-5)

    print("KERNEL_OK")
</pallas_src>

<mosaic_0001>
module attributes {stable_mosaic.version = 11 : i64} {
  func.func @kernel(%arg0: i32, %arg1: memref<1x64x256xf32, #tpu.memory_space<vmem>>, %arg2: memref<1x64x256xf32, #tpu.memory_space<vmem>>, %arg3: memref<1x64x256xf32, #tpu.memory_space<vmem>>, %arg4: memref<1x10x128xf32, #tpu.memory_space<vmem>>) attributes {dimension_semantics = [#tpu.dimension_semantics<parallel>], iteration_bounds = array<i64: 2>, scalar_prefetch = 0 : i64, scratch_operands = 0 : i64, tpu.core_type = #tpu.core_type<tc>, window_params = [{transform_indices = @transform_0, window_bounds = array<i64: 1, 64, 256>}, {transform_indices = @transform_1, window_bounds = array<i64: 1, 64, 256>}, {transform_indices = @transform_2, window_bounds = array<i64: 1, 64, 256>}, {transform_indices = @transform_3, window_bounds = array<i64: 1, 10, 128>}]} {
    %c0 = arith.constant 0 : index
    %c0_0 = arith.constant 0 : index
    %c0_1 = arith.constant 0 : index
    %0 = vector.load %arg1[%c0, %c0_0, %c0_1] : memref<1x64x256xf32, #tpu.memory_space<vmem>>, vector<1x64x256xf32>
    %1 = vector.shape_cast %0 : vector<1x64x256xf32> to vector<64x256xf32>
    %c0_2 = arith.constant 0 : index
    %c0_3 = arith.constant 0 : index
    %c0_4 = arith.constant 0 : index
    %2 = vector.load %arg2[%c0_2, %c0_3, %c0_4] : memref<1x64x256xf32, #tpu.memory_space<vmem>>, vector<1x64x256xf32>
    %3 = vector.shape_cast %2 : vector<1x64x256xf32> to vector<64x256xf32>
    %c0_5 = arith.constant 0 : index
    %c0_6 = arith.constant 0 : index
    %c0_7 = arith.constant 0 : index
    %4 = vector.load %arg3[%c0_5, %c0_6, %c0_7] : memref<1x64x256xf32, #tpu.memory_space<vmem>>, vector<1x64x256xf32>
    %5 = vector.shape_cast %4 : vector<1x64x256xf32> to vector<64x256xf32>
    %6 = arith.mulf %5, %1 : vector<64x256xf32>
    %7 = arith.mulf %5, %3 : vector<64x256xf32>
    %8 = arith.mulf %6, %1 : vector<64x256xf32>
    %9 = vector.shape_cast %8 : vector<64x256xf32> to vector<1x64x256xf32>
    %cst = arith.constant dense<0.000000e+00> : vector<1xf32>
    %10 = vector.multi_reduction <add>, %9, %cst [1, 2] : vector<1x64x256xf32> to vector<1xf32>
    %11 = vector.shape_cast %10 : vector<1xf32> to vector<1x1x1xf32>
    %12 = vector.extract %11[0, 0, 0] : f32 from vector<1x1x1xf32>
    %13 = vector.shape_cast %6 : vector<64x256xf32> to vector<1x64x256xf32>
    %cst_8 = arith.constant dense<0.000000e+00> : vector<1xf32>
    %14 = vector.multi_reduction <add>, %13, %cst_8 [1, 2] : vector<1x64x256xf32> to vector<1xf32>
    %15 = vector.shape_cast %14 : vector<1xf32> to vector<1x1x1xf32>
    %16 = vector.extract %15[0, 0, 0] : f32 from vector<1x1x1xf32>
    %17 = vector.shape_cast %5 : vector<64x256xf32> to vector<1x64x256xf32>
    %cst_9 = arith.constant dense<0.000000e+00> : vector<1xf32>
    %18 = vector.multi_reduction <add>, %17, %cst_9 [1, 2] : vector<1x64x256xf32> to vector<1xf32>
    %19 = vector.shape_cast %18 : vector<1xf32> to vector<1x1x1xf32>
    %20 = vector.extract %19[0, 0, 0] : f32 from vector<1x1x1xf32>
    %21 = arith.mulf %6, %3 : vector<64x256xf32>
    %22 = vector.shape_cast %21 : vector<64x256xf32> to vector<1x64x256xf32>
    %cst_10 = arith.constant dense<0.000000e+00> : vector<1xf32>
    %23 = vector.multi_reduction <add>, %22, %cst_10 [1, 2] : vector<1x64x256xf32> to vector<1xf32>
    %24 = vector.shape_cast %23 : vector<1xf32> to vector<1x1x1xf32>
    %25 = vector.extract %24[0, 0, 0] : f32 from vector<1x1x1xf32>
    %26 = vector.shape_cast %7 : vector<64x256xf32> to vector<1x64x256xf32>
    %cst_11 = arith.constant dense<0.000000e+00> : vector<1xf32>
    %27 = vector.multi_reduction <add>, %26, %cst_11 [1, 2] : vector<1x64x256xf32> to vector<1xf32>
    %28 = vector.shape_cast %27 : vector<1xf32> to vector<1x1x1xf32>
    %29 = vector.extract %28[0, 0, 0] : f32 from vector<1x1x1xf32>
    %30 = arith.mulf %12, %20 : f32
    %31 = arith.mulf %16, %16 : f32
    %32 = arith.subf %30, %31 : f32
    %cst_12 = arith.constant 0.000000e+00 : f32
    %33 = arith.cmpf one, %32, %cst_12 : f32
    %cst_13 = arith.constant 1.000000e+00 : f32
    %34 = arith.select %33, %32, %cst_13 : f32
    %35 = arith.mulf %20, %25 : f32
    %36 = arith.mulf %16, %29 : f32
    %37 = arith.subf %35, %36 : f32
    %38 = arith.divf %37, %34 : f32
    %cst_14 = arith.constant 0.000000e+00 : f32
    %39 = arith.select %33, %38, %cst_14 : f32
    %cst_15 = arith.constant 0.000000e+00 : f32
    %40 = arith.subf %cst_15, %16 : f32
    %41 = arith.mulf %40, %25 : f32
    %42 = arith.mulf %12, %29 : f32
    %43 = arith.addf %41, %42 : f32
    %44 = arith.divf %43, %34 : f32
    %cst_16 = arith.constant 0.000000e+00 : f32
    %45 = arith.select %33, %44, %cst_16 : f32
    %46 = vector.broadcast %39 : f32 to vector<64x256xf32>
    %47 = arith.mulf %46, %1 : vector<64x256xf32>
    %48 = vector.broadcast %45 : f32 to vector<64x256xf32>
    %49 = arith.addf %47, %48 : vector<64x256xf32>
    %50 = arith.subf %49, %3 : vector<64x256xf32>
    %51 = arith.mulf %5, %50 : vector<64x256xf32>
    %52 = arith.mulf %51, %50 : vector<64x256xf32>
    %53 = vector.shape_cast %52 : vector<64x256xf32> to vector<1x64x256xf32>
    %cst_17 = arith.constant dense<0.000000e+00> : vector<1xf32>
    %54 = vector.multi_reduction <add>, %53, %cst_17 [1, 2] : vector<1x64x256xf32> to vector<1xf32>
    %55 = vector.shape_cast %54 : vector<1xf32> to vector<1x1x1xf32>
    %56 = vector.extract %55[0, 0, 0] : f32 from vector<1x1x1xf32>
    %57 = vector.extract_strided_slice %51 {offsets = [0, 1], sizes = [64, 255], strides = [1, 1]} : vector<64x256xf32> to vector<64x255xf32>
    %58 = vector.extract_strided_slice %51 {offsets = [0, 0], sizes = [64, 255], strides = [1, 1]} : vector<64x256xf32> to vector<64x255xf32>
    %59 = arith.subf %57, %58 : vector<64x255xf32>
    %60 = math.absf %59 : vector<64x255xf32>
    %61 = vector.extract_strided_slice %5 {offsets = [0, 1], sizes = [64, 255], strides = [1, 1]} : vector<64x256xf32> to vector<64x255xf32>
    %62 = vector.extract_strided_slice %5 {offsets = [0, 0], sizes = [64, 255], strides = [1, 1]} : vector<64x256xf32> to vector<64x255xf32>
    %63 = arith.mulf %61, %62 : vector<64x255xf32>
    %64 = arith.mulf %60, %63 : vector<64x255xf32>
    %65 = vector.extract_strided_slice %51 {offsets = [1, 0], sizes = [63, 256], strides = [1, 1]} : vector<64x256xf32> to vector<63x256xf32>
    %66 = vector.extract_strided_slice %51 {offsets = [0, 0], sizes = [63, 256], strides = [1, 1]} : vector<64x256xf32> to vector<63x256xf32>
    %67 = arith.subf %65, %66 : vector<63x256xf32>
    %68 = math.absf %67 : vector<63x256xf32>
    %69 = vector.extract_strided_slice %5 {offsets = [1, 0], sizes = [63, 256], strides = [1, 1]} : vector<64x256xf32> to vector<63x256xf32>
    %70 = vector.extract_strided_slice %5 {offsets = [0, 0], sizes = [63, 256], strides = [1, 1]} : vector<64x256xf32> to vector<63x256xf32>
    %71 = arith.mulf %69, %70 : vector<63x256xf32>
    %72 = arith.mulf %68, %71 : vector<63x256xf32>
    %73 = vector.shape_cast %64 : vector<64x255xf32> to vector<1x64x255xf32>
    %cst_18 = arith.constant dense<0.000000e+00> : vector<1xf32>
    %74 = vector.multi_reduction <add>, %73, %cst_18 [1, 2] : vector<1x64x255xf32> to vector<1xf32>
    %75 = vector.shape_cast %74 : vector<1xf32> to vector<1x1x1xf32>
    %76 = vector.extract %75[0, 0, 0] : f32 from vector<1x1x1xf32>
    %77 = vector.shape_cast %72 : vector<63x256xf32> to vector<1x63x256xf32>
    %cst_19 = arith.constant dense<0.000000e+00> : vector<1xf32>
    %78 = vector.multi_reduction <add>, %77, %cst_19 [1, 2] : vector<1x63x256xf32> to vector<1xf32>
    %79 = vector.shape_cast %78 : vector<1xf32> to vector<1x1x1xf32>
    %80 = vector.extract %79[0, 0, 0] : f32 from vector<1x1x1xf32>
    %81 = arith.addf %76, %80 : f32
    %82 = arith.truncf %51 : vector<64x256xf32> to vector<64x256xbf16>
    %83 = arith.extf %82 : vector<64x256xbf16> to vector<64x256xf32>
    %84 = arith.subf %51, %83 : vector<64x256xf32>
    %85 = tpu.iota {dimensions = array<i32: 1>} : vector<32x64xi32>
    %86 = tpu.iota {dimensions = array<i32: 0>} : vector<32x64xi32>
    %c2_i32 = arith.constant 2 : i32
    %87 = vector.broadcast %c2_i32 : i32 to vector<32x64xi32>
    %88 = arith.muli %87, %86 : vector<32x64xi32>
    %89 = arith.cmpi eq, %85, %88 : vector<32x64xi32>
    %90 = arith.extui %89 : vector<32x64xi1> to vector<32x64xi32>
    %91 = arith.sitofp %90 : vector<32x64xi32> to vector<32x64xf32>
    %92 = tpu.iota {dimensions = array<i32: 0>} : vector<256x128xi32>
    %93 = tpu.iota {dimensions = array<i32: 1>} : vector<256x128xi32>
    %c2_i32_20 = arith.constant 2 : i32
    %94 = vector.broadcast %c2_i32_20 : i32 to vector<256x128xi32>
    %95 = arith.muli %94, %93 : vector<256x128xi32>
    %96 = arith.cmpi eq, %92, %95 : vector<256x128xi32>
    %97 = arith.extui %96 : vector<256x128xi1> to vector<256x128xi32>
    %98 = arith.sitofp %97 : vector<256x128xi32> to vector<256x128xf32>
    %cst_21 = arith.constant dense<0.000000e+00> : vector<32x256xf32>
    %99 = tpu.matmul %91, %83, %cst_21 {dimension_numbers = #tpu.dot_dimension_numbers<[1], [0], [0], [1], [0, 0, 1, 1], [], []>} : vector<32x64xf32>, vector<64x256xf32>, vector<32x256xf32> -> vector<32x256xf32>
    %cst_22 = arith.constant dense<0.000000e+00> : vector<32x128xf32>
    %100 = tpu.matmul %99, %98, %cst_22 {dimension_numbers = #tpu.dot_dimension_numbers<[1], [0], [0], [1], [0, 0, 1, 1], [], []>} : vector<32x256xf32>, vector<256x128xf32>, vector<32x128xf32> -> vector<32x128xf32>
    %cst_23 = arith.constant dense<0.000000e+00> : vector<32x256xf32>
    %101 = tpu.matmul %91, %84, %cst_23 {dimension_numbers = #tpu.dot_dimension_numbers<[1], [0], [0], [1], [0, 0, 1, 1], [], []>} : vector<32x64xf32>, vector<64x256xf32>, vector<32x256xf32> -> vector<32x256xf32>
    %cst_24 = arith.constant dense<0.000000e+00> : vector<32x128xf32>
    %102 = tpu.matmul %101, %98, %cst_24 {dimension_numbers = #tpu.dot_dimension_numbers<[1], [0], [0], [1], [0, 0, 1, 1], [], []>} : vector<32x256xf32>, vector<256x128xf32>, vector<32x128xf32> -> vector<32x128xf32>
    %cst_25 = arith.constant dense<0.000000e+00> : vector<32x256xf32>
    %103 = tpu.matmul %91, %5, %cst_25 {dimension_numbers = #tpu.dot_dimension_numbers<[1], [0], [0], [1], [0, 0, 1, 1], [], []>} : vector<32x64xf32>, vector<64x256xf32>, vector<32x256xf32> -> vector<32x256xf32>
    %cst_26 = arith.constant dense<0.000000e+00> : vector<32x128xf32>
    %104 = tpu.matmul %103, %98, %cst_26 {dimension_numbers = #tpu.dot_dimension_numbers<[1], [0], [0], [1], [0, 0, 1, 1], [], []>} : vector<32x256xf32>, vector<256x128xf32>, vector<32x128xf32> -> vector<32x128xf32>
    %105 = arith.addf %100, %102 : vector<32x128xf32>
    %106 = vector.extract_strided_slice %105 {offsets = [0, 1], sizes = [32, 127], strides = [1, 1]} : vector<32x128xf32> to vector<32x127xf32>
    %107 = vector.extract_strided_slice %105 {offsets = [0, 0], sizes = [32, 127], strides = [1, 1]} : vector<32x128xf32> to vector<32x127xf32>
    %108 = arith.subf %106, %107 : vector<32x127xf32>
    %109 = math.absf %108 : vector<32x127xf32>
    %110 = vector.extract_strided_slice %104 {offsets = [0, 1], sizes = [32, 127], strides = [1, 1]} : vector<32x128xf32> to vector<32x127xf32>
    %111 = vector.extract_strided_slice %104 {offsets = [0, 0], sizes = [32, 127], strides = [1, 1]} : vector<32x128xf32> to vector<32x127xf32>
    %112 = arith.mulf %110, %111 : vector<32x127xf32>
    %113 = arith.mulf %109, %112 : vector<32x127xf32>
    %114 = vector.extract_strided_slice %105 {offsets = [1, 0], sizes = [31, 128], strides = [1, 1]} : vector<32x128xf32> to vector<31x128xf32>
    %115 = vector.extract_strided_slice %105 {offsets = [0, 0], sizes = [31, 128], strides = [1, 1]} : vector<32x128xf32> to vector<31x128xf32>
    %116 = arith.subf %114, %115 : vector<31x128xf32>
    %117 = math.absf %116 : vector<31x128xf32>
    %118 = vector.extract_strided_slice %104 {offsets = [1, 0], sizes = [31, 128], strides = [1, 1]} : vector<32x128xf32> to vector<31x128xf32>
    %119 = vector.extract_strided_slice %104 {offsets = [0, 0], sizes = [31, 128], strides = [1, 1]} : vector<32x128xf32> to vector<31x128xf32>
    %120 = arith.mulf %118, %119 : vector<31x128xf32>
    %121 = arith.mulf %117, %120 : vector<31x128xf32>
    %122 = vector.shape_cast %113 : vector<32x127xf32> to vector<1x32x127xf32>
    %cst_27 = arith.constant dense<0.000000e+00> : vector<1xf32>
    %123 = vector.multi_reduction <add>, %122, %cst_27 [1, 2] : vector<1x32x127xf32> to vector<1xf32>
    %124 = vector.shape_cast %123 : vector<1xf32> to vector<1x1x1xf32>
    %125 = vector.extract %124[0, 0, 0] : f32 from vector<1x1x1xf32>
    %126 = vector.shape_cast %121 : vector<31x128xf32> to vector<1x31x128xf32>
    %cst_28 = arith.constant dense<0.000000e+00> : vector<1xf32>
    %127 = vector.multi_reduction <add>, %126, %cst_28 [1, 2] : vector<1x31x128xf32> to vector<1xf32>
    %128 = vector.shape_cast %127 : vector<1xf32> to vector<1x1x1xf32>
    %129 = vector.extract %128[0, 0, 0] : f32 from vector<1x1x1xf32>
    %130 = arith.addf %125, %129 : f32
    %131 = vector.shape_cast %104 : vector<32x128xf32> to vector<1x32x128xf32>
    %cst_29 = arith.constant dense<0.000000e+00> : vector<1xf32>
    %132 = vector.multi_reduction <add>, %131, %cst_29 [1, 2] : vector<1x32x128xf32> to vector<1xf32>
    %133 = vector.shape_cast %132 : vector<1xf32> to vector<1x1x1xf32>
    %134 = vector.extract %133[0, 0, 0] : f32 from vector<1x1x1xf32>
    %135 = tpu.iota {dimensions = array<i32: 1>} : vector<16x32xi32>
    %136 = tpu.iota {dimensions = array<i32: 0>} : vector<16x32xi32>
    %c2_i32_30 = arith.constant 2 : i32
    %137 = vector.broadcast %c2_i32_30 : i32 to vector<16x32xi32>
    %138 = arith.muli %137, %136 : vector<16x32xi32>
    %139 = arith.cmpi eq, %135, %138 : vector<16x32xi32>
    %140 = arith.extui %139 : vector<16x32xi1> to vector<16x32xi32>
    %141 = arith.sitofp %140 : vector<16x32xi32> to vector<16x32xf32>
    %142 = tpu.iota {dimensions = array<i32: 0>} : vector<128x64xi32>
    %143 = tpu.iota {dimensions = array<i32: 1>} : vector<128x64xi32>
    %c2_i32_31 = arith.constant 2 : i32
    %144 = vector.broadcast %c2_i32_31 : i32 to vector<128x64xi32>
    %145 = arith.muli %144, %143 : vector<128x64xi32>
    %146 = arith.cmpi eq, %142, %145 : vector<128x64xi32>
    %147 = arith.extui %146 : vector<128x64xi1> to vector<128x64xi32>
    %148 = arith.sitofp %147 : vector<128x64xi32> to vector<128x64xf32>
    %cst_32 = arith.constant dense<0.000000e+00> : vector<16x128xf32>
    %149 = tpu.matmul %141, %100, %cst_32 {dimension_numbers = #tpu.dot_dimension_numbers<[1], [0], [0], [1], [0, 0, 1, 1], [], []>} : vector<16x32xf32>, vector<32x128xf32>, vector<16x128xf32> -> vector<16x128xf32>
    %cst_33 = arith.constant dense<0.000000e+00> : vector<16x64xf32>
    %150 = tpu.matmul %149, %148, %cst_33 {dimension_numbers = #tpu.dot_dimension_numbers<[1], [0], [0], [1], [0, 0, 1, 1], [], []>} : vector<16x128xf32>, vector<128x64xf32>, vector<16x64xf32> -> vector<16x64xf32>
    %cst_34 = arith.constant dense<0.000000e+00> : vector<16x128xf32>
    %151 = tpu.matmul %141, %102, %cst_34 {dimension_numbers = #tpu.dot_dimension_numbers<[1], [0], [0], [1], [0, 0, 1, 1], [], []>} : vector<16x32xf32>, vector<32x128xf32>, vector<16x128xf32> -> vector<16x128xf32>
    %cst_35 = arith.constant dense<0.000000e+00> : vector<16x64xf32>
    %152 = tpu.matmul %151, %148, %cst_35 {dimension_numbers = #tpu.dot_dimension_numbers<[1], [0], [0], [1], [0, 0, 1, 1], [], []>} : vector<16x128xf32>, vector<128x64xf32>, vector<16x64xf32> -> vector<16x64xf32>
    %cst_36 = arith.constant dense<0.000000e+00> : vector<16x128xf32>
    %153 = tpu.matmul %141, %104, %cst_36 {dimension_numbers = #tpu.dot_dimension_numbers<[1], [0], [0], [1], [0, 0, 1, 1], [], []>} : vector<16x32xf32>, vector<32x128xf32>, vector<16x128xf32> -> vector<16x128xf32>
    %cst_37 = arith.constant dense<0.000000e+00> : vector<16x64xf32>
    %154 = tpu.matmul %153, %148, %cst_37 {dimension_numbers = #tpu.dot_dimension_numbers<[1], [0], [0], [1], [0, 0, 1, 1], [], []>} : vector<16x128xf32>, vector<128x64xf32>, vector<16x64xf32> -> vector<16x64xf32>
    %155 = arith.addf %150, %152 : vector<16x64xf32>
    %156 = vector.extract_strided_slice %155 {offsets = [0, 1], sizes = [16, 63], strides = [1, 1]} : vector<16x64xf32> to vector<16x63xf32>
    %157 = vector.extract_strided_slice %155 {offsets = [0, 0], sizes = [16, 63], strides = [1, 1]} : vector<16x64xf32> to vector<16x63xf32>
    %158 = arith.subf %156, %157 : vector<16x63xf32>
    %159 = math.absf %158 : vector<16x63xf32>
    %160 = vector.extract_strided_slice %154 {offsets = [0, 1], sizes = [16, 63], strides = [1, 1]} : vector<16x64xf32> to vector<16x63xf32>
    %161 = vector.extract_strided_slice %154 {offsets = [0, 0], sizes = [16, 63], strides = [1, 1]} : vector<16x64xf32> to vector<16x63xf32>
    %162 = arith.mulf %160, %161 : vector<16x63xf32>
    %163 = arith.mulf %159, %162 : vector<16x63xf32>
    %164 = vector.extract_strided_slice %155 {offsets = [1, 0], sizes = [15, 64], strides = [1, 1]} : vector<16x64xf32> to vector<15x64xf32>
    %165 = vector.extract_strided_slice %155 {offsets = [0, 0], sizes = [15, 64], strides = [1, 1]} : vector<16x64xf32> to vector<15x64xf32>
    %166 = arith.subf %164, %165 : vector<15x64xf32>
    %167 = math.absf %166 : vector<15x64xf32>
    %168 = vector.extract_strided_slice %154 {offsets = [1, 0], sizes = [15, 64], strides = [1, 1]} : vector<16x64xf32> to vector<15x64xf32>
    %169 = vector.extract_strided_slice %154 {offsets = [0, 0], sizes = [15, 64], strides = [1, 1]} : vector<16x64xf32> to vector<15x64xf32>
    %170 = arith.mulf %168, %169 : vector<15x64xf32>
    %171 = arith.mulf %167, %170 : vector<15x64xf32>
    %172 = vector.shape_cast %163 : vector<16x63xf32> to vector<1x16x63xf32>
    %cst_38 = arith.constant dense<0.000000e+00> : vector<1xf32>
    %173 = vector.multi_reduction <add>, %172, %cst_38 [1, 2] : vector<1x16x63xf32> to vector<1xf32>
    %174 = vector.shape_cast %173 : vector<1xf32> to vector<1x1x1xf32>
    %175 = vector.extract %174[0, 0, 0] : f32 from vector<1x1x1xf32>
    %176 = vector.shape_cast %171 : vector<15x64xf32> to vector<1x15x64xf32>
    %cst_39 = arith.constant dense<0.000000e+00> : vector<1xf32>
    %177 = vector.multi_reduction <add>, %176, %cst_39 [1, 2] : vector<1x15x64xf32> to vector<1xf32>
    %178 = vector.shape_cast %177 : vector<1xf32> to vector<1x1x1xf32>
    %179 = vector.extract %178[0, 0, 0] : f32 from vector<1x1x1xf32>
    %180 = arith.addf %175, %179 : f32
    %181 = vector.shape_cast %154 : vector<16x64xf32> to vector<1x16x64xf32>
    %cst_40 = arith.constant dense<0.000000e+00> : vector<1xf32>
    %182 = vector.multi_reduction <add>, %181, %cst_40 [1, 2] : vector<1x16x64xf32> to vector<1xf32>
    %183 = vector.shape_cast %182 : vector<1xf32> to vector<1x1x1xf32>
    %184 = vector.extract %183[0, 0, 0] : f32 from vector<1x1x1xf32>
    %185 = tpu.iota {dimensions = array<i32: 1>} : vector<8x16xi32>
    %186 = tpu.iota {dimensions = array<i32: 0>} : vector<8x16xi32>
    %c2_i32_41 = arith.constant 2 : i32
    %187 = vector.broadcast %c2_i32_41 : i32 to vector<8x16xi32>
    %188 = arith.muli %187, %186 : vector<8x16xi32>
    %189 = arith.cmpi eq, %185, %188 : vector<8x16xi32>
    %190 = arith.extui %189 : vector<8x16xi1> to vector<8x16xi32>
    %191 = arith.sitofp %190 : vector<8x16xi32> to vector<8x16xf32>
    %192 = tpu.iota {dimensions = array<i32: 0>} : vector<64x32xi32>
    %193 = tpu.iota {dimensions = array<i32: 1>} : vector<64x32xi32>
    %c2_i32_42 = arith.constant 2 : i32
    %194 = vector.broadcast %c2_i32_42 : i32 to vector<64x32xi32>
    %195 = arith.muli %194, %193 : vector<64x32xi32>
    %196 = arith.cmpi eq, %192, %195 : vector<64x32xi32>
    %197 = arith.extui %196 : vector<64x32xi1> to vector<64x32xi32>
    %198 = arith.sitofp %197 : vector<64x32xi32> to vector<64x32xf32>
    %cst_43 = arith.constant dense<0.000000e+00> : vector<8x64xf32>
    %199 = tpu.matmul %191, %150, %cst_43 {dimension_numbers = #tpu.dot_dimension_numbers<[1], [0], [0], [1], [0, 0, 1, 1], [], []>} : vector<8x16xf32>, vector<16x64xf32>, vector<8x64xf32> -> vector<8x64xf32>
    %cst_44 = arith.constant dense<0.000000e+00> : vector<8x32xf32>
    %200 = tpu.matmul %199, %198, %cst_44 {dimension_numbers = #tpu.dot_dimension_numbers<[1], [0], [0], [1], [0, 0, 1, 1], [], []>} : vector<8x64xf32>, vector<64x32xf32>, vector<8x32xf32> -> vector<8x32xf32>
    %cst_45 = arith.constant dense<0.000000e+00> : vector<8x64xf32>
    %201 = tpu.matmul %191, %152, %cst_45 {dimension_numbers = #tpu.dot_dimension_numbers<[1], [0], [0], [1], [0, 0, 1, 1], [], []>} : vector<8x16xf32>, vector<16x64xf32>, vector<8x64xf32> -> vector<8x64xf32>
    %cst_46 = arith.constant dense<0.000000e+00> : vector<8x32xf32>
    %202 = tpu.matmul %201, %198, %cst_46 {dimension_numbers = #tpu.dot_dimension_numbers<[1], [0], [0], [1], [0, 0, 1, 1], [], []>} : vector<8x64xf32>, vector<64x32xf32>, vector<8x32xf32> -> vector<8x32xf32>
    %cst_47 = arith.constant dense<0.000000e+00> : vector<8x64xf32>
    %203 = tpu.matmul %191, %154, %cst_47 {dimension_numbers = #tpu.dot_dimension_numbers<[1], [0], [0], [1], [0, 0, 1, 1], [], []>} : vector<8x16xf32>, vector<16x64xf32>, vector<8x64xf32> -> vector<8x64xf32>
    %cst_48 = arith.constant dense<0.000000e+00> : vector<8x32xf32>
    %204 = tpu.matmul %203, %198, %cst_48 {dimension_numbers = #tpu.dot_dimension_numbers<[1], [0], [0], [1], [0, 0, 1, 1], [], []>} : vector<8x64xf32>, vector<64x32xf32>, vector<8x32xf32> -> vector<8x32xf32>
    %205 = arith.addf %200, %202 : vector<8x32xf32>
    %206 = vector.extract_strided_slice %205 {offsets = [0, 1], sizes = [8, 31], strides = [1, 1]} : vector<8x32xf32> to vector<8x31xf32>
    %207 = vector.extract_strided_slice %205 {offsets = [0, 0], sizes = [8, 31], strides = [1, 1]} : vector<8x32xf32> to vector<8x31xf32>
    %208 = arith.subf %206, %207 : vector<8x31xf32>
    %209 = math.absf %208 : vector<8x31xf32>
    %210 = vector.extract_strided_slice %204 {offsets = [0, 1], sizes = [8, 31], strides = [1, 1]} : vector<8x32xf32> to vector<8x31xf32>
    %211 = vector.extract_strided_slice %204 {offsets = [0, 0], sizes = [8, 31], strides = [1, 1]} : vector<8x32xf32> to vector<8x31xf32>
    %212 = arith.mulf %210, %211 : vector<8x31xf32>
    %213 = arith.mulf %209, %212 : vector<8x31xf32>
    %214 = vector.extract_strided_slice %205 {offsets = [1, 0], sizes = [7, 32], strides = [1, 1]} : vector<8x32xf32> to vector<7x32xf32>
    %215 = vector.extract_strided_slice %205 {offsets = [0, 0], sizes = [7, 32], strides = [1, 1]} : vector<8x32xf32> to vector<7x32xf32>
    %216 = arith.subf %214, %215 : vector<7x32xf32>
    %217 = math.absf %216 : vector<7x32xf32>
    %218 = vector.extract_strided_slice %204 {offsets = [1, 0], sizes = [7, 32], strides = [1, 1]} : vector<8x32xf32> to vector<7x32xf32>
    %219 = vector.extract_strided_slice %204 {offsets = [0, 0], sizes = [7, 32], strides = [1, 1]} : vector<8x32xf32> to vector<7x32xf32>
    %220 = arith.mulf %218, %219 : vector<7x32xf32>
    %221 = arith.mulf %217, %220 : vector<7x32xf32>
    %222 = vector.shape_cast %213 : vector<8x31xf32> to vector<1x8x31xf32>
    %cst_49 = arith.constant dense<0.000000e+00> : vector<1xf32>
    %223 = vector.multi_reduction <add>, %222, %cst_49 [1, 2] : vector<1x8x31xf32> to vector<1xf32>
    %224 = vector.shape_cast %223 : vector<1xf32> to vector<1x1x1xf32>
    %225 = vector.extract %224[0, 0, 0] : f32 from vector<1x1x1xf32>
    %226 = vector.shape_cast %221 : vector<7x32xf32> to vector<1x7x32xf32>
    %cst_50 = arith.constant dense<0.000000e+00> : vector<1xf32>
    %227 = vector.multi_reduction <add>, %226, %cst_50 [1, 2] : vector<1x7x32xf32> to vector<1xf32>
    %228 = vector.shape_cast %227 : vector<1xf32> to vector<1x1x1xf32>
    %229 = vector.extract %228[0, 0, 0] : f32 from vector<1x1x1xf32>
    %230 = arith.addf %225, %229 : f32
    %231 = vector.shape_cast %204 : vector<8x32xf32> to vector<1x8x32xf32>
    %cst_51 = arith.constant dense<0.000000e+00> : vector<1xf32>
    %232 = vector.multi_reduction <add>, %231, %cst_51 [1, 2] : vector<1x8x32xf32> to vector<1xf32>
    %233 = vector.shape_cast %232 : vector<1xf32> to vector<1x1x1xf32>
    %234 = vector.extract %233[0, 0, 0] : f32 from vector<1x1x1xf32>
    %235 = vector.broadcast %56 : f32 to vector<1x128xf32>
    %c0_52 = arith.constant 0 : index
    %c0_53 = arith.constant 0 : index
    %c0_54 = arith.constant 0 : index
    %236 = vector.load %arg4[%c0_52, %c0_53, %c0_54] : memref<1x10x128xf32, #tpu.memory_space<vmem>>, vector<1x1x128xf32>
    %237 = vector.shape_cast %236 : vector<1x1x128xf32> to vector<1x128xf32>
    %238 = vector.shape_cast %235 : vector<1x128xf32> to vector<1x1x128xf32>
    tpu.vector_store %arg4[%c0_52, %c0_53, %c0_54], %238 {strides = array<i32>} : memref<1x10x128xf32, #tpu.memory_space<vmem>>, vector<1x1x128xf32>,
    %239 = vector.broadcast %20 : f32 to vector<1x128xf32>
    %c0_55 = arith.constant 0 : index
    %c1 = arith.constant 1 : index
    %c0_56 = arith.constant 0 : index
    %240 = vector.load %arg4[%c0_55, %c1, %c0_56] : memref<1x10x128xf32, #tpu.memory_space<vmem>>, vector<1x1x128xf32>
    %241 = vector.shape_cast %240 : vector<1x1x128xf32> to vector<1x128xf32>
    %242 = vector.shape_cast %239 : vector<1x128xf32> to vector<1x1x128xf32>
    tpu.vector_store %arg4[%c0_55, %c1, %c0_56], %242 {strides = array<i32>} : memref<1x10x128xf32, #tpu.memory_space<vmem>>, vector<1x1x128xf32>,
    %243 = vector.broadcast %81 : f32 to vector<1x128xf32>
    %c0_57 = arith.constant 0 : index
    %c2 = arith.constant 2 : index
    %c0_58 = arith.constant 0 : index
    %244 = vector.load %arg4[%c0_57, %c2, %c0_58] : memref<1x10x128xf32, #tpu.memory_space<vmem>>, vector<1x1x128xf32>
    %245 = vector.shape_cast %244 : vector<1x1x128xf32> to vector<1x128xf32>
    %246 = vector.shape_cast %243 : vector<1x128xf32> to vector<1x1x128xf32>
    tpu.vector_store %arg4[%c0_57, %c2, %c0_58], %246 {strides = array<i32>} : memref<1x10x128xf32, #tpu.memory_space<vmem>>, vector<1x1x128xf32>,
    %247 = vector.broadcast %20 : f32 to vector<1x128xf32>
    %c0_59 = arith.constant 0 : index
    %c3 = arith.constant 3 : index
    %c0_60 = arith.constant 0 : index
    %248 = vector.load %arg4[%c0_59, %c3, %c0_60] : memref<1x10x128xf32, #tpu.memory_space<vmem>>, vector<1x1x128xf32>
    %249 = vector.shape_cast %248 : vector<1x1x128xf32> to vector<1x128xf32>
    %250 = vector.shape_cast %247 : vector<1x128xf32> to vector<1x1x128xf32>
    tpu.vector_store %arg4[%c0_59, %c3, %c0_60], %250 {strides = array<i32>} : memref<1x10x128xf32, #tpu.memory_space<vmem>>, vector<1x1x128xf32>,
    %251 = vector.broadcast %130 : f32 to vector<1x128xf32>
    %c0_61 = arith.constant 0 : index
    %c4 = arith.constant 4 : index
    %c0_62 = arith.constant 0 : index
    %252 = vector.load %arg4[%c0_61, %c4, %c0_62] : memref<1x10x128xf32, #tpu.memory_space<vmem>>, vector<1x1x128xf32>
    %253 = vector.shape_cast %252 : vector<1x1x128xf32> to vector<1x128xf32>
    %254 = vector.shape_cast %251 : vector<1x128xf32> to vector<1x1x128xf32>
    tpu.vector_store %arg4[%c0_61, %c4, %c0_62], %254 {strides = array<i32>} : memref<1x10x128xf32, #tpu.memory_space<vmem>>, vector<1x1x128xf32>,
    %255 = vector.broadcast %134 : f32 to vector<1x128xf32>
    %c0_63 = arith.constant 0 : index
    %c5 = arith.constant 5 : index
    %c0_64 = arith.constant 0 : index
    %256 = vector.load %arg4[%c0_63, %c5, %c0_64] : memref<1x10x128xf32, #tpu.memory_space<vmem>>, vector<1x1x128xf32>
    %257 = vector.shape_cast %256 : vector<1x1x128xf32> to vector<1x128xf32>
    %258 = vector.shape_cast %255 : vector<1x128xf32> to vector<1x1x128xf32>
    tpu.vector_store %arg4[%c0_63, %c5, %c0_64], %258 {strides = array<i32>} : memref<1x10x128xf32, #tpu.memory_space<vmem>>, vector<1x1x128xf32>,
    %259 = vector.broadcast %180 : f32 to vector<1x128xf32>
    %c0_65 = arith.constant 0 : index
    %c6 = arith.constant 6 : index
    %c0_66 = arith.constant 0 : index
    %260 = vector.load %arg4[%c0_65, %c6, %c0_66] : memref<1x10x128xf32, #tpu.memory_space<vmem>>, vector<1x1x128xf32>
    %261 = vector.shape_cast %260 : vector<1x1x128xf32> to vector<1x128xf32>
    %262 = vector.shape_cast %259 : vector<1x128xf32> to vector<1x1x128xf32>
    tpu.vector_store %arg4[%c0_65, %c6, %c0_66], %262 {strides = array<i32>} : memref<1x10x128xf32, #tpu.memory_space<vmem>>, vector<1x1x128xf32>,
    %263 = vector.broadcast %184 : f32 to vector<1x128xf32>
    %c0_67 = arith.constant 0 : index
    %c7 = arith.constant 7 : index
    %c0_68 = arith.constant 0 : index
    %264 = vector.load %arg4[%c0_67, %c7, %c0_68] : memref<1x10x128xf32, #tpu.memory_space<vmem>>, vector<1x1x128xf32>
    %265 = vector.shape_cast %264 : vector<1x1x128xf32> to vector<1x128xf32>
    %266 = vector.shape_cast %263 : vector<1x128xf32> to vector<1x1x128xf32>
    tpu.vector_store %arg4[%c0_67, %c7, %c0_68], %266 {strides = array<i32>} : memref<1x10x128xf32, #tpu.memory_space<vmem>>, vector<1x1x128xf32>,
    %267 = vector.broadcast %230 : f32 to vector<1x128xf32>
    %c0_69 = arith.constant 0 : index
    %c8 = arith.constant 8 : index
    %c0_70 = arith.constant 0 : index
    %268 = vector.load %arg4[%c0_69, %c8, %c0_70] : memref<1x10x128xf32, #tpu.memory_space<vmem>>, vector<1x1x128xf32>
    %269 = vector.shape_cast %268 : vector<1x1x128xf32> to vector<1x128xf32>
    %270 = vector.shape_cast %267 : vector<1x128xf32> to vector<1x1x128xf32>
    tpu.vector_store %arg4[%c0_69, %c8, %c0_70], %270 {strides = array<i32>} : memref<1x10x128xf32, #tpu.memory_space<vmem>>, vector<1x1x128xf32>,
    %271 = vector.broadcast %234 : f32 to vector<1x128xf32>
    %c0_71 = arith.constant 0 : index
    %c9 = arith.constant 9 : index
    %c0_72 = arith.constant 0 : index
    %272 = vector.load %arg4[%c0_71, %c9, %c0_72] : memref<1x10x128xf32, #tpu.memory_space<vmem>>, vector<1x1x128xf32>
    %273 = vector.shape_cast %272 : vector<1x1x128xf32> to vector<1x128xf32>
    %274 = vector.shape_cast %271 : vector<1x128xf32> to vector<1x1x128xf32>
    tpu.vector_store %arg4[%c0_71, %c9, %c0_72], %274 {strides = array<i32>} : memref<1x10x128xf32, #tpu.memory_space<vmem>>, vector<1x1x128xf32>,
    return
  }
  func.func @transform_0(%arg0: i32) -> (i32, i32, i32) {
    %c0_i32 = arith.constant 0 : i32
    %c0_i32_0 = arith.constant 0 : i32
    %c0_i32_1 = arith.constant 0 : i32
    return %arg0, %c0_i32, %c0_i32_0 : i32, i32, i32
  }
  func.func @transform_1(%arg0: i32) -> (i32, i32, i32) {
    %c0_i32 = arith.constant 0 : i32
    %c0_i32_0 = arith.constant 0 : i32
    %c0_i32_1 = arith.constant 0 : i32
    return %arg0, %c0_i32, %c0_i32_0 : i32, i32, i32
  }
  func.func @transform_2(%arg0: i32) -> (i32, i32, i32) {
    %c0_i32 = arith.constant 0 : i32
    %c0_i32_0 = arith.constant 0 : i32
    %c0_i32_1 = arith.constant 0 : i32
    return %arg0, %c0_i32, %c0_i32_0 : i32, i32, i32
  }
  func.func @transform_3(%arg0: i32) -> (i32, i32, i32) {
    %c0_i32 = arith.constant 0 : i32
    %c0_i32_0 = arith.constant 0 : i32
    %c0_i32_1 = arith.constant 0 : i32
    return %arg0, %c0_i32, %c0_i32_0 : i32, i32, i32
  }
}

</mosaic_0001>

<bundles_post_ra>
// kernel: tpu_custom_call.1
= control target key start
LH: loop header
LB: loop body
LE: loop exit
PB: predicated region body
PF: predicated region fallthrough
CT: control target
= control target key end

     0   :  { %8 = vsyncpa [#allocation3], 0  ;;  %s6610_s0 = inlined_call_operand.hbm [shape: f32[2,64,256], index: 0, kind: input, shape index: {}]   ;;  %s6611_s1 = inlined_call_operand.hbm [shape: f32[2,64,256], index: 1, kind: input, shape index: {}]   ;;  %s6612_s2 = inlined_call_operand.hbm [shape: f32[2,64,256], index: 2, kind: input, shape index: {}]   ;;  %s6613_s3 = inlined_call_operand.vmem [shape: f32[2,10,128], index: 3, kind: output, shape index: {}]  }
   0x1   :  { %10 = vsyncpa [#allocation3 + $0x1], 0 }
   0x2   :  { %11 = vsyncpa [#allocation5], 0 }
   0x3   :  { %13 = vsyncpa [#allocation5 + $0x1], 0  ;;  %s4546_s12 = smov 0   ;;  %s4548_s13 = smov 0  }
   0x4   :  { %s4550_s14 = smov 0   ;;  %s4552_s15 = smov 0  }
   0x5 LB: > { %s4565_s16 = sadd.s32 4294967295, %s4513_s15   ;;  %s4568_s17 = sadd.s32 1, %s4513_s15   ;;  %s4513_s15 = sphi %s4552_s15, %s6844_s15   ;;  %s4509_s14 = sphi %s4550_s14, %s6843_s14   ;;  %s4505_s13 = sphi %s4548_s13, %s6842_s13   ;;  %s4501_s12 = sphi %s4546_s12, %s6841_s12  }
   0x6   : > { %s23_s18 = ssub.s32 %s4513_s15, %s4568_s17  ;;  %s26_s19 = sadd.s32 1, %s4509_s14 }
   0x7   : > { %p24_p0 = scmp.eq.s32.totalorder %s23_s18, 0  ;;  %p33_p1 = scmp.ne.s32.totalorder %s4509_s14, %s4505_s13 }
   0x8   : > { %p34_p2 = scmp.eq.s32.totalorder %s4513_s15, 0  ;;  %p39_p3 = scmp.ne.s32.totalorder %s4505_s13, %s4501_s12 }
   0x9   : > { %s4578_s20 = scalar_select %p24_p0, %s4509_s14, %s26_s19  }
   0xa   : > { %p35_p4 = por %p34_p2, %p33_p1  ;;  %p40_p5 = scmp.eq.s32.totalorder %s4565_s16, 0 }
   0xb   : > { %p4320_p6 = scmp.lt.s32.totalorder %s4513_s15, 2  ;;  %s141_s22 = sand.u32 1, %s4509_s14  }
   0xc   : > { %p4582_p7 = por %p40_p5, %p39_p3  ;;  %s4589_s23 = sshll.u32 %s141_s22, 7 }
   0xd   : > { %s4592_s24 = sshll.u32 %s4513_s15, 11  ;;  %p4594_p8 = pnand %p4320_p6, %p35_p4 }
   0xe   : > { %s6678_s21 = scalar_select %p4582_p7, 1, 0 }
   0xf   : > { %s162_s26 = sand.u32 1, %s4513_s15   ;;  %s4603_s29 = scalar_lea.hbm %s6611_s1, %s4592_s24 }
  0x10   : > { %s166_s30 = scalar_lea.vmem [#allocation4], %s4589_s23  ;;  %s4610_s5 = scalar_lea.sflag [#allocation5], %s162_s26 }
  0x11   : > { %s173_s4 = sshll.u32 %s166_s30, 4  ;;  %s4385_s6 = scalar_lea.hbm %s4603_s29, 2048  ;;  %s4607_s4 = int_to_ptr.vmem [resolvable:$true] %s173_s4 }
  0x12   : > { %p4386_p11 = scmp.ne.s32.totalorder %s4603_s29, %s4385_s6  ;;  %p4616_p12 = pneg %p4594_p8 }
  0x13   : > { %s4390_s10 = scalar_lea.hbm %s6611_s1, 4096  ;;  %p4391_p1 = scmp.lt.u32.totalorder %s4603_s29, %s6611_s1 }
  0x14   : > { %p4388_p13 = pnand %p4616_p12, %p4386_p11  ;;  %p4392_p2 = scmp.lt.u32.totalorder %s4390_s10, %s4385_s6 }
  0x15   : > { %p4394_p4 = scmp.lt.u32.totalorder %s4385_s6, %s4603_s29 }
  0x16   : > { %p4389_p0 = pneg %p4388_p13  ;;  %p4393_p3 = por %p4392_p2, %p4391_p1 }
  0x18   : > { %p4395_p5 = por %p4394_p4, %p4393_p3 }
  0x1a   : > { %p4396_p6 = pnand %p4395_p5, %p4389_p0 }
  0x1c   : > { %4399 = shalt.err (!%p4396_p6)
}
  0x1d   : > { %s4400_s18 = scalar_lea.vmem %s4607_s4, 2048  ;;  %s4515_s19 = smov [#allocation4]  }
  0x1e   : > { %p4401_p11 = scmp.ne.s32.totalorder %s4607_s4, %s4400_s18  ;;  %s4405_s26 = sshll.u32 %s4515_s19, 4  ;;  %s4406_s26 = int_to_ptr.vmem [resolvable:$false] %s4405_s26 }
  0x1f   : > { %s4407_s27 = scalar_lea.vmem %s4406_s26, 4096  ;;  %p4408_p10 = scmp.lt.s32.totalorder %s4607_s4, %s4406_s26 }
  0x20   : > { %p4403_p13 = pnand %p4401_p11, %p4616_p12  ;;  %p4409_p7 = scmp.lt.s32.totalorder %s4407_s27, %s4400_s18 }
  0x22   : > { %p4404_p9 = pneg %p4403_p13  ;;  %p4410_p1 = por %p4409_p7, %p4408_p10 }
  0x24   : > { %p4411_p2 = pnand %p4410_p1, %p4404_p9 }
  0x26   : > { %4414 = shalt.err (!%p4411_p2)
}
  0x27   : > { %s4516_s28 = smov 256   ;;  %s4517_s30 = smov 16  }
  0x28   : > { %4316 = dma.hbm_to_vmem [thread:$0]  (!%p4594_p8), %s4603_s29, 2048, %s4607_s4, %s4610_s5, %s4516_s28, %s4516_s28, %s4517_s30  }
  0x29   : > { %p6681_p7 = scmp.lt.s32.totalorder %s4513_s15, 3  ;;  %p6682_p9 = scmp.ge.s32.totalorder %s4513_s15, 1 }
  0x2a   : > { %s4655_s10 = scalar_lea.hbm %s6610_s0, %s4592_s24  ;;  %s145_s11 = scalar_lea.vmem [#allocation2], %s4589_s23 }
  0x2b   : > { %p4647_p10 = pnand %p6682_p9, %p6681_p7  ;;  %s152_s12 = sshll.u32 %s145_s11, 4  ;;  %s4658_s12 = int_to_ptr.vmem [resolvable:$true] %s152_s12 }
  0x2c   : > { %s4664_s15 = scalar_lea.hbm %s6612_s2, %s4592_s24  ;;  %s4668_s18 = scalar_lea.sflag [#allocation3], %s141_s22 }
  0x2d   : > { %s6683_s6 = scalar_select %p4647_p10, 1, 0 }
  0x2e   : > { %s4415_s19 = scalar_lea.hbm %s4655_s10, 2048  ;;  %s4420_s8 = scalar_lea.hbm %s6610_s0, 4096 }
  0x2f   : > { %p4416_p0 = scmp.ne.s32.totalorder %s4655_s10, %s4415_s19  ;;  %p4421_p5 = scmp.lt.u32.totalorder %s4655_s10, %s6610_s0 }
  0x30   : > { %p4422_p6 = scmp.lt.u32.totalorder %s4420_s8, %s4415_s19  ;;  %p4424_p13 = scmp.lt.u32.totalorder %s4415_s19, %s4655_s10 }
  0x31   : > { %p4418_p3 = pnand %p4416_p0, %p4616_p12 }
  0x32   : > { %p4423_p11 = por %p4422_p6, %p4421_p5 }
  0x33   : > { %p4419_p4 = pneg %p4418_p3 }
  0x34   : > { %p4425_p1 = por %p4424_p13, %p4423_p11 }
  0x36   : > { %p4426_p2 = pnand %p4425_p1, %p4419_p4 }
  0x38   : > { %4429 = shalt.err (!%p4426_p2)
}
  0x39   : > { %s4430_s22 = scalar_lea.vmem %s4658_s12, 2048  ;;  %s4518_s24 = smov [#allocation2]  }
  0x3a   : > { %p4431_p7 = scmp.ne.s32.totalorder %s4658_s12, %s4430_s22  ;;  %s4435_s29 = sshll.u32 %s4518_s24, 4  ;;  %s4436_s29 = int_to_ptr.vmem [resolvable:$false] %s4435_s29 }
  0x3b   : > { %s4437_s4 = scalar_lea.vmem %s4436_s29, 4096  ;;  %p4438_p3 = scmp.lt.s32.totalorder %s4658_s12, %s4436_s29 }
  0x3c   : > { %p4433_p9 = pnand %p4431_p7, %p4616_p12  ;;  %p4439_p10 = scmp.lt.s32.totalorder %s4437_s4, %s4430_s22 }
  0x3e   : > { %p4434_p0 = pneg %p4433_p9  ;;  %p4440_p5 = por %p4439_p10, %p4438_p3 }
  0x40   : > { %p4441_p6 = pnand %p4440_p5, %p4434_p0 }
  0x42   : > { %4444 = shalt.err (!%p4441_p6)
}
  0x43   : > { %4313 = dma.hbm_to_vmem [thread:$0]  (!%p4594_p8), %s4655_s10, 2048, %s4658_s12, %s4668_s18, %s4516_s28, %s4516_s28, %s4517_s30  }
  0x44   : > { %s187_s19 = scalar_lea.vmem [#allocation6], %s4589_s23  ;;  %s4445_s27 = scalar_lea.hbm %s4664_s15, 2048 }
  0x45   : > { %s194_s26 = sshll.u32 %s187_s19, 4  ;;  %p4446_p10 = scmp.ne.s32.totalorder %s4664_s15, %s4445_s27  ;;  %s4696_s26 = int_to_ptr.vmem [resolvable:$true] %s194_s26 }
  0x46   : > { %s4450_s11 = scalar_lea.hbm %s6612_s2, 4096  ;;  %p4451_p13 = scmp.lt.u32.totalorder %s4664_s15, %s6612_s2 }
  0x47   : > { %p4448_p4 = pnand %p4446_p10, %p4616_p12  ;;  %p4452_p1 = scmp.lt.u32.totalorder %s4450_s11, %s4445_s27 }
  0x48   : > { %p4454_p7 = scmp.lt.u32.totalorder %s4445_s27, %s4664_s15 }
  0x49   : > { %p4449_p11 = pneg %p4448_p4  ;;  %p4453_p2 = por %p4452_p1, %p4451_p13 }
  0x4b   : > { %p4455_p9 = por %p4454_p7, %p4453_p2 }
  0x4d   : > { %p4456_p0 = pnand %p4455_p9, %p4449_p11 }
  0x4f   : > { %4459 = shalt.err (!%p4456_p0)
}
  0x50   : > { %s4460_s23 = scalar_lea.vmem %s4696_s26, 2048  ;;  %s4519_s10 = smov [#allocation6]  }
  0x51   : > { %p4461_p3 = scmp.ne.s32.totalorder %s4696_s26, %s4460_s23  ;;  %s4465_s12 = sshll.u32 %s4519_s10, 4  ;;  %s4466_s12 = int_to_ptr.vmem [resolvable:$false] %s4465_s12 }
  0x52   : > { %s4467_s18 = scalar_lea.vmem %s4466_s12, 4096  ;;  %p4468_p10 = scmp.lt.s32.totalorder %s4696_s26, %s4466_s12 }
  0x53   : > { %p4463_p5 = pnand %p4461_p3, %p4616_p12  ;;  %p4469_p4 = scmp.lt.s32.totalorder %s4467_s18, %s4460_s23 }
  0x55   : > { %p4464_p6 = pneg %p4463_p5  ;;  %p4470_p13 = por %p4469_p4, %p4468_p10 }
  0x57   : > { %p4471_p1 = pnand %p4470_p13, %p4464_p6 }
  0x59   : > { %4474 = shalt.err (!%p4471_p1)
}
  0x5a   : > { %4319 = dma.hbm_to_vmem [thread:$0]  (!%p4594_p8), %s4664_s15, 2048, %s4696_s26, %s4610_s5, %s4516_s28, %s4516_s28, %s4517_s30  }
  0x5b   : > { %p6684_p12 = scmp.ne.s32.totalorder %s6683_s6, 0 }
  0x5d   : > { %206 = sbr.rel (%p6684_p12) target bundleno = 2469 (0x9a5), region = 32 }
  0x64   : > { %s208_s7 = sand.u32 1, %s4505_s13   ;;  %p6685_p11 = scmp.ne.s32.totalorder %s6678_s21, 0 }
  0x65   : > { %s3262_s29 = sshll.u32 %s208_s7, 7  ;;  %s209_s4 = scalar_lea.sflag [#allocation3], %s208_s7 }
  0x66   : > { %s4726_s19 = scalar_lea.vmem [#allocation2], %s3262_s29 }
  0x67   : > { %4492 = dma.done.wait (%p6685_p11), %s209_s4, 2048  }
  0x68   : > { %4494 = vsyncadd (%p6685_p11), %s209_s4, 4294965248  ;;  %s217_s25 = sand.u32 1, %s4565_s16   ;;  %s4733_s5 = scalar_lea.vmem [#allocation4], %s3262_s29 }
  0x69   : > { %s218_s27 = scalar_lea.sflag [#allocation5], %s217_s25 }
  0x6a   : > { %4496 = dma.done.wait (%p6685_p11), %s218_s27, 4096  }
  0x6b   : > { %4498 = vsyncadd (%p6685_p11), %s218_s27, 4294963200  ;;  %s4739_s28 = scalar_lea.vmem [#allocation6], %s3262_s29  ;;  %v4758_v7 = vld [vmem:[%s4726_s19] sm:$0xff]  ;;  %v4761_v8 = vld [vmem:[%s4726_s19 + $0x8] sm:$0xff]  ;;  %s4520_s21 = smov 1   ;;  %vm6626_vm1 = vcmask 523264  }
  0x6c   : > { %v4742_v0 = vld [vmem:[%s4739_s28] sm:$0xff]  ;;  %v4745_v1 = vld [vmem:[%s4739_s28 + $0x8] sm:$0xff]  ;;  %v4750_v3 = vld [vmem:[%s4739_s28 + $0x10] sm:$0xff]  ;;  %p263_p8 = scmp.lt.s32.totalorder %s4565_s16, 1 }
  0x6d   : > { %v412_v2 = vadd.f32 %v4745_v1, %v4742_v0  ;;  %v4754_v5 = vld [vmem:[%s4739_s28 + $0x18] sm:$0xff]  ;;  %v4764_v9 = vld [vmem:[%s4739_s28 + $0x20] sm:$0xff]  ;;  %v4767_v10 = vld [vmem:[%s4726_s19 + $0x10] sm:$0xff]  ;;  %v316_v12 = vmul.f32 %v4742_v0, %v4758_v7  ;;  %v317_v13 = vmul.f32 %v4745_v1, %v4761_v8 }
  0x6e   : > { %v4775_v14 = vld [vmem:[%s4739_s28 + $0x28] sm:$0xff]  ;;  %v4778_v15 = vld [vmem:[%s4726_s19 + $0x18] sm:$0xff]  ;;  %v4782_v17 = vld [vmem:[%s4726_s19 + $0x20] sm:$0xff]  ;;  %v318_v18 = vmul.f32 %v4750_v3, %v4767_v10  ;;  %s6846_s16 = smov (!%p263_p8, %s4565_s16), 1 }
  0x6f   : > { %v413_v4 = vadd.f32 %v412_v2, %v4750_v3  ;;  %v4787_v19 = vld [vmem:[%s4739_s28 + $0x30] sm:$0xff]  ;;  %v4792_v21 = vmul.f32 %v4754_v5, %v4778_v15  ;;  %v348_v22 = vmul.f32 %v316_v12, %v4758_v7  ;;  %v349_v23 = vmul.f32 %v317_v13, %v4761_v8  ;;  %v4797_v24 = vld [vmem:[%s4739_s28 + $0x38] sm:$0xff]  ;;  %v4800_v25 = vld [vmem:[%s4726_s19 + $0x28] sm:$0xff]  ;;  %s3500_s30 = sshll.u32 %s6846_s16, 4 }
  0x70   : > { %v4804_v26 = vmul.f32 %v4764_v9, %v4782_v17  ;;  %v4808_v28 = vld [vmem:[%s4726_s19 + $0x30] sm:$0xff]  ;;  %v350_v29 = vmul.f32 %v318_v18, %v4767_v10  ;;  %v4812_v30 = vld [vmem:[%s4739_s28 + $0x40] sm:$0xff]  ;;  %v4818_v32 = vld [vmem:[%s4733_s5 + $0x8] sm:$0xff]  ;;  %v4826_v35 = vmul.f32 %v4775_v14, %v4800_v25  ;;  %s5090_s11 = scalar_lea.vmem %s6613_s3, %s3500_s30 }
  0x71   : > { %v414_v6 = vadd.f32 %v413_v4, %v4754_v5  ;;  %v4815_v31 = vld [vmem:[%s4733_s5] sm:$0xff]  ;;  %6687 = vst [vmem:[#allocation10_spill] sm:$0xff] %v4818_v32  ;;  %v4822_v34 = vld [vmem:[%s4726_s19 + $0x38] sm:$0xff]  ;;  %v351_v36 = vmul.f32 %v4792_v21, %v4778_v15  ;;  %v364_v37 = vadd.f32 %v349_v23, %v348_v22  ;;  %v4831_v38 = vld [vmem:[%s4739_s28 + $0x48] sm:$0xff]  ;;  %v4835_v39 = vmul.f32 %v4787_v19, %v4808_v28 }
  0x72   : > { %6686 = vst [vmem:[#allocation9_spill] sm:$0xff] %v4815_v31  ;;  %v352_v40 = vmul.f32 %v4804_v26, %v4782_v17  ;;  %v4840_v41 = vld [vmem:[%s4733_s5 + $0x10] sm:$0xff]  ;;  %v4844_v43 = vld [vmem:[%s4726_s19 + $0x40] sm:$0xff]  ;;  %v4847_v45 = vld [vmem:[%s4733_s5 + $0x18] sm:$0xff]  ;;  %v436_v46 = vmul.f32 %v316_v12, %v4815_v31  ;;  %v437_v47 = vmul.f32 %v317_v13, %v4818_v32  ;;  %v4856_v49 = vmul.f32 %v4797_v24, %v4822_v34 }
  0x73   : > { %v415_v11 = vadd.f32 %v414_v6, %v4764_v9  ;;  %6688 = vst [vmem:[#allocation11_spill] sm:$0xff] %v4840_v41  ;;  %6689 = vst [vmem:[#allocation12_spill] sm:$0xff] %v4844_v43  ;;  %v365_v44 = vadd.f32 %v364_v37, %v350_v29  ;;  %v4852_v48 = vld [vmem:[%s4739_s28 + $0x50] sm:$0xff]  ;;  %v4860_v51 = vld [vmem:[%s4726_s19 + $0x48] sm:$0xff]  ;;  %v353_v52 = vmul.f32 %v4826_v35, %v4800_v25 }
  0x74   : > { %6690 = vst [vmem:[#allocation13_spill] sm:$0xff] %v4860_v51  ;;  %v4865_v54 = vld [vmem:[%s4733_s5 + $0x20] sm:$0xff]  ;;  %v438_v55 = vmul.f32 %v318_v18, %v4840_v41  ;;  %v4869_v56 = vld [vmem:[%s4739_s28 + $0x58] sm:$0xff]  ;;  %v4873_v57 = vmul.f32 %v4812_v30, %v4844_v43  ;;  %v354_v58 = vmul.f32 %v4835_v39, %v4808_v28  ;;  %v439_v59 = vmul.f32 %v4792_v21, %v4847_v45  ;;  %v4881_v61 = vld [vmem:[%s4726_s19 + $0x50] sm:$0xff] }
  0x75   : > { %v416_v16 = vadd.f32 %v415_v11, %v4775_v14  ;;  %v366_v53 = vadd.f32 %v365_v44, %v351_v36  ;;  %6691 = vst [vmem:[#allocation14_spill] sm:$0xff] %v4865_v54  ;;  %6692 = vst [vmem:[#allocation15_spill] sm:$0xff] %v4881_v61  ;;  %v4884_v62 = vld [vmem:[%s4726_s19 + $0x58] sm:$0xff]  ;;  %v4887_v2 = vld [vmem:[%s4733_s5 + $0x28] sm:$0xff]  ;;  %v452_v4 = vadd.f32 %v437_v47, %v436_v46 }
  0x76   : > { %6693 = vst [vmem:[#allocation16_spill] sm:$0xff] %v4884_v62  ;;  %v388_v6 = vadd.f32 %v317_v13, %v316_v12  ;;  %v4890_v11 = vld [vmem:[%s4739_s28 + $0x60] sm:$0xff]  ;;  %v440_v22 = vmul.f32 %v4804_v26, %v4865_v54  ;;  %v4902_v29 = vld [vmem:[%s4733_s5 + $0x30] sm:$0xff]  ;;  %v4909_v36 = vmul.f32 %v4852_v48, %v4881_v61  ;;  %v4913_v37 = vmul.f32 %v4869_v56, %v4884_v62  ;;  %v4924_v47 = vld [vmem:[%s4733_s5 + $0x38] sm:$0xff] }
  0x77   : > { %v417_v20 = vadd.f32 %v416_v16, %v4787_v19  ;;  %v367_v63 = vadd.f32 %v366_v53, %v352_v40  ;;  %v4894_v16 = vmul.f32 %v4831_v38, %v4860_v51  ;;  %v453_v12 = vadd.f32 %v452_v4, %v438_v55  ;;  %v4928_v53 = vld [vmem:[%s4739_s28 + $0x70] sm:$0xff] }
  0x78   : > { %v389_v13 = vadd.f32 %v388_v6, %v318_v18  ;;  %v356_v40 = vmul.f32 %v4873_v57, %v4844_v43  ;;  %v4921_v18 = vld [vmem:[%s4726_s19 + $0x60] sm:$0xff] }
  0x79   : > { %v418_v27 = vadd.f32 %v417_v20, %v4797_v24  ;;  %v355_v20 = vmul.f32 %v4856_v49, %v4822_v34  ;;  %6694 = vst [vmem:[#allocation17_spill] sm:$0xff] %v4921_v18  ;;  %v357_v55 = vmul.f32 %v4894_v16, %v4860_v51  ;;  %v4953_v43 = vld [vmem:[%s4733_s5 + $0x40] sm:$0xff]  ;;  %v359_v51 = vmul.f32 %v4913_v37, %v4884_v62  ;;  %v4986_v62 = vld [vmem:[%s4733_s5 + $0x50] sm:$0xff] }
  0x7b   : > { %v419_v33 = vadd.f32 %v418_v27, %v4812_v30  ;;  %v368_v27 = vadd.f32 %v367_v63, %v353_v52  ;;  %v390_v52 = vadd.f32 %v389_v13, %v4792_v21  ;;  %v332_v63 = vmul.f32 %v4742_v0, %v4815_v31  ;;  %v4971_v31 = vld [vmem:[%s4733_s5 + $0x48] sm:$0xff] }
  0x7c   : > { %v358_v13 = vmul.f32 %v4909_v36, %v4881_v61 }
  0x7d   : > { %v420_v42 = vadd.f32 %v419_v33, %v4831_v38  ;;  %v4905_v33 = vld [vmem:[%s4739_s28 + $0x68] sm:$0xff]  ;;  %v369_v46 = vadd.f32 %v368_v27, %v354_v58  ;;  %v333_v58 = vmul.f32 %v4745_v1, %v4818_v32  ;;  %v4944_v27 = vld [vmem:[%s4739_s28 + $0x78] sm:$0xff] }
  0x7e   : > { %v4976_v32 = vld [vmem:[%s4726_s19 + $0x78] sm:$0xff] }
  0x7f   : > { %v421_v50 = vadd.f32 %v420_v42, %v4852_v48  ;;  %v441_v42 = vmul.f32 %v4826_v35, %v4887_v2  ;;  %v370_v21 = vadd.f32 %v369_v46, %v355_v20  ;;  %v334_v20 = vmul.f32 %v4750_v3, %v4840_v41 }
  0x80   : > { %v335_v41 = vmul.f32 %v4754_v5, %v4847_v45 }
  0x81   : > { %v422_v60 = vadd.f32 %v421_v50, %v4869_v56  ;;  %v454_v50 = vadd.f32 %v453_v12, %v439_v59  ;;  %v4940_v59 = vld [vmem:[%s4726_s19 + $0x68] sm:$0xff]  ;;  %v4948_v12 = vmul.f32 %v4890_v11, %v4921_v18  ;;  %v371_v46 = vadd.f32 %v370_v21, %v356_v40 }
  0x82   : > { %6695 = vst [vmem:[#allocation18_spill] sm:$0xff] %v4940_v59  ;;  %v4966_v61 = vmul.f32 %v4905_v33, %v4940_v59 }
  0x83   : > { %v423_v23 = vadd.f32 %v422_v60, %v4890_v11  ;;  %v442_v60 = vmul.f32 %v4835_v39, %v4902_v29  ;;  %v455_v6 = vadd.f32 %v454_v50, %v440_v22  ;;  %v4961_v22 = vld [vmem:[%s4726_s19 + $0x70] sm:$0xff]  ;;  %v372_v40 = vadd.f32 %v371_v46, %v357_v55 }
  0x84   : > { %6696 = vst [vmem:[#allocation19_spill] sm:$0xff] %v4961_v22  ;;  %v331_v46 = vmul.f32 %v4944_v27, %v4976_v32 }
  0x85   : > { %v424_v44 = vadd.f32 %v423_v23, %v4905_v33  ;;  %v391_v23 = vadd.f32 %v390_v52, %v4804_v26  ;;  %v456_v50 = vadd.f32 %v455_v6, %v441_v42  ;;  %v330_v6 = vmul.f32 %v4928_v53, %v4961_v22 }
  0x86   : > { %v373_v55 = vadd.f32 %v372_v40, %v358_v13 }
  0x87   : > { %v425_v4 = vadd.f32 %v424_v44, %v4928_v53  ;;  %v443_v44 = vmul.f32 %v4856_v49, %v4924_v47  ;;  %v392_v52 = vadd.f32 %v391_v23, %v4826_v35  ;;  %v444_v35 = vmul.f32 %v4873_v57, %v4953_v43 }
  0x88   : > { %v457_v42 = vadd.f32 %v456_v50, %v442_v60  ;;  %v360_v23 = vmul.f32 %v4948_v12, %v4921_v18  ;;  %v361_v50 = vmul.f32 %v4966_v61, %v4940_v59  ;;  %v337_v18 = vmul.f32 %v4775_v14, %v4887_v2 }
  0x89   : > { %v426_v26 = vadd.f32 %v425_v4, %v4944_v27  ;;  %v476_v4 = vadd.f32 %v333_v58, %v332_v63  ;;  %v393_v21 = vadd.f32 %v392_v52, %v4835_v39  ;;  %v336_v63 = vmul.f32 %v4764_v9, %v4865_v54  ;;  %v4998_v52 = vld [vmem:[%s4733_s5 + $0x58] sm:$0xff] }
  0x8a   : > { %v458_v60 = vadd.f32 %v457_v42, %v443_v44  ;;  %v374_v13 = vadd.f32 %v373_v55, %v359_v51  ;;  %v362_v40 = vmul.f32 %v330_v6, %v4961_v22  ;;  %v5007_v42 = vld [vmem:[%s4733_s5 + $0x60] sm:$0xff]  ;;  %v339_v55 = vmul.f32 %v4797_v24, %v4924_v47 }
  0x8b   : > { %427 = vadd.xlane.f32.xlu1 %v426_v26  ;;  %v477_v58 = vadd.f32 %v476_v4, %v334_v20  ;;  %v445_v26 = vmul.f32 %v4894_v16, %v4971_v31  ;;  %v394_v39 = vadd.f32 %v393_v21, %v4856_v49  ;;  %v446_v4 = vmul.f32 %v4909_v36, %v4986_v62 }
  0x8c   : > { %v459_v44 = vadd.f32 %v458_v60, %v444_v35  ;;  %v338_v21 = vmul.f32 %v4787_v19, %v4902_v29  ;;  %v375_v54 = vadd.f32 %v374_v13, %v360_v23  ;;  %v363_v35 = vmul.f32 %v331_v46, %v4976_v32  ;;  %v5024_v13 = vld [vmem:[%s4733_s5 + $0x70] sm:$0xff] }
  0x8d   : > { %v478_v20 = vadd.f32 %v477_v58, %v335_v41  ;;  %v395_v49 = vadd.f32 %v394_v39, %v4873_v57  ;;  %v447_v41 = vmul.f32 %v4913_v37, %v4998_v52  ;;  %v5016_v57 = vld [vmem:[%s4733_s5 + $0x68] sm:$0xff] }
  0x8e   : > { %v460_v51 = vadd.f32 %v459_v44, %v445_v26  ;;  %v376_v39 = vadd.f32 %v375_v54, %v361_v50  ;;  %v5032_v54 = vld [vmem:[%s4733_s5 + $0x78] sm:$0xff] }
  0x8f   : > { %v479_v59 = vadd.f32 %v478_v20, %v336_v63  ;;  %v396_v58 = vadd.f32 %v395_v49, %v4894_v16  ;;  %v448_v63 = vmul.f32 %v4948_v12, %v5007_v42  ;;  %v340_v16 = vmul.f32 %v4812_v30, %v4953_v43 }
  0x90   : > { %v461_v23 = vadd.f32 %v460_v51, %v446_v4  ;;  %v377_v44 = vadd.f32 %v376_v39, %v362_v40  ;;  %v449_v49 = vmul.f32 %v4966_v61, %v5016_v57  ;;  %v450_v4 = vmul.f32 %v330_v6, %v5024_v13 }
  0x91   : > { %v480_v60 = vadd.f32 %v479_v59, %v337_v18  ;;  %v397_v20 = vadd.f32 %v396_v58, %v4909_v36  ;;  %v341_v59 = vmul.f32 %v4831_v38, %v4971_v31  ;;  %v342_v40 = vmul.f32 %v4852_v48, %v4986_v62 }
  0x92   : > { %v462_v22 = vadd.f32 %v461_v23, %v447_v41  ;;  %v378_v36 = vadd.f32 %v377_v44, %v363_v35  ;;  %v451_v41 = vmul.f32 %v331_v46, %v5032_v54  ;;  %v343_v39 = vmul.f32 %v4869_v56, %v4998_v52 }
  0x93   : > { %v481_v26 = vadd.f32 %v480_v60, %v338_v21  ;;  %v398_v18 = vadd.f32 %v397_v20, %v4913_v37 }
  0x94   : > { %v463_v51 = vadd.f32 %v462_v22, %v448_v63  ;;  %379 = vadd.xlane.f32.xlu0 %v378_v36  ;;  %v344_v22 = vmul.f32 %v4890_v11, %v5007_v42 }
  0x95   : > { %v482_v50 = vadd.f32 %v481_v26, %v339_v55  ;;  %v399_v58 = vadd.f32 %v398_v18, %v4948_v12 }
  0x96   : > { %v464_v37 = vadd.f32 %v463_v51, %v449_v49  ;;  %v347_v49 = vmul.f32 %v4944_v27, %v5032_v54 }
  0x97   : > { %v483_v21 = vadd.f32 %v482_v50, %v340_v16  ;;  %v400_v60 = vadd.f32 %v399_v58, %v4966_v61  ;;  %v345_v16 = vmul.f32 %v4905_v33, %v5016_v57  ;;  %v346_v61 = vmul.f32 %v4928_v53, %v5024_v13 }
  0x98   : > { %v465_v35 = vadd.f32 %v464_v37, %v450_v4 }
  0x99   : > { %v484_v55 = vadd.f32 %v483_v21, %v341_v59  ;;  %v401_v23 = vadd.f32 %v400_v60, %v330_v6 }
  0x9a   : > { %v466_v63 = vadd.f32 %v465_v35, %v451_v41 }
  0x9b   : > { %v485_v12 = vadd.f32 %v484_v55, %v342_v40  ;;  %v402_v20 = vadd.f32 %v401_v23, %v331_v46 }
  0x9c   : > { %467 = vadd.xlane.f32.xlu1 %v466_v63 }
  0x9d   : > { %v486_v26 = vadd.f32 %v485_v12, %v343_v39  ;;  %403 = vadd.xlane.f32.xlu0 %v402_v20 }
  0x9f   : > { %v487_v44 = vadd.f32 %v486_v26, %v344_v22 }
  0xa1   : > { %v488_v6 = vadd.f32 %v487_v44, %v345_v16 }
  0xa3   : > { %v489_v18 = vadd.f32 %v488_v6, %v346_v61 }
  0xa5   : > { %v490_v59 = vadd.f32 %v489_v18, %v347_v49 }
  0xa7   : > { %491 = vadd.xlane.f32.xlu0 %v490_v59 }
  0xad   : > { %749 = vrot.lane.b32.xlu1 %v4742_v0, %s4520_s21 }
  0xb1   : > { %753 = vrot.lane.b32.xlu1 %v4750_v3, %s4520_s21 }
  0xb5   : > { %757 = vrot.lane.b32.xlu1 %v4764_v9, %s4520_s21 }
  0xb9   : > { %761 = vrot.lane.b32.xlu1 %v4787_v19, %s4520_s21 }
  0xbd   : > { %751 = vrot.lane.b32.xlu0 %v4745_v1, %s4520_s21  ;;  %765 = vrot.lane.b32.xlu1 %v4812_v30, %s4520_s21 }
  0xc1   : > { %755 = vrot.lane.b32.xlu0 %v4754_v5, %s4520_s21  ;;  %769 = vrot.lane.b32.xlu1 %v4852_v48, %s4520_s21 }
  0xc5   : > { %759 = vrot.lane.b32.xlu0 %v4775_v14, %s4520_s21  ;;  %773 = vrot.lane.b32.xlu1 %v4890_v11, %s4520_s21 }
  0xc9   : > { %763 = vrot.lane.b32.xlu0 %v4797_v24, %s4520_s21  ;;  %779 = vrot.lane.b32.xlu1 %v4944_v27, %s4520_s21 }
  0xcd   : > { %767 = vrot.lane.b32.xlu0 %v4831_v38, %s4520_s21 }
  0xd1   : > { %771 = vrot.lane.b32.xlu0 %v4869_v56, %s4520_s21 }
  0xd5   : > { %775 = vrot.lane.b32.xlu0 %v4905_v33, %s4520_s21 }
  0xd9   : > { %777 = vrot.lane.b32.xlu0 %v4928_v53, %s4520_s21 }
 0x118   : > { %v428_v46 = vpop.xlane.xlu1 %427 }
 0x119   : > { %v429_v50 = vrot.slane %v428_v46, 4 }
 0x11b   : > { %v430_v51 = vadd.f32 %v429_v50, %v428_v46 }
 0x11d   : > { %v431_v21 = vrot.slane %v430_v51, 2 }
 0x11f   : > { %v432_v12 = vadd.f32 %v431_v21, %v430_v51 }
 0x121   : > { %v380_v36 = vpop.xlane.xlu0 %379  ;;  %v433_v44 = vrot.slane %v432_v12, 1 }
 0x122   : > { %v381_v4 = vrot.slane %v380_v36, 4 }
 0x124   : > { %v382_v58 = vadd.f32 %v381_v4, %v380_v36  ;;  %v434_v4 = vadd.f32 %v433_v44, %v432_v12 }
 0x126   : > { %v383_v40 = vrot.slane %v382_v58, 2 }
 0x128   : > { %v384_v55 = vadd.f32 %v383_v40, %v382_v58 }
 0x129   : > { %v468_v41 = vpop.xlane.xlu1 %467 }
 0x12a   : > { %v404_v37 = vpop.xlane.xlu0 %403  ;;  %v469_v60 = vrot.slane %v468_v41, 4  ;;  %v385_v22 = vrot.slane %v384_v55, 1 }
 0x12b   : > { %v405_v39 = vrot.slane %v404_v37, 4 }
 0x12c   : > { %v470_v35 = vadd.f32 %v469_v60, %v468_v41  ;;  %v386_v16 = vadd.f32 %v385_v22, %v384_v55  ;;  %v6632_v41 = vmov 0.0   ;;  %v1229_v55 = vlaneseq }
 0x12d   : > { %v406_v23 = vadd.f32 %v405_v39, %v404_v37  ;;  %1454 = vmatprep.mubr.f32.mxu0 %v6632_v41 }
 0x12e   : > { %v471_v63 = vrot.slane %v470_v35, 2  ;;  %4268 = vpush %v386_v16  ;;  %v5101_v22 = vand.u32 127, %v1229_v55 }
 0x12f   : > { %v407_v20 = vrot.slane %v406_v23, 2 }
 0x130   : > { %v472_v61 = vadd.f32 %v471_v63, %v470_v35  ;;  %v5095_v35 = vshrl.u32 %v1229_v55, 7 }
 0x131   : > { %v408_v26 = vadd.f32 %v407_v20, %v406_v23 }
 0x132   : > { %v473_v18 = vrot.slane %v472_v61, 1  ;;  %v1236_v12 = vmul.u32 2, %v5095_v35  ;;  %v5105_v63 = vadd.s32 8, %v5095_v35 }
 0x133   : > { %v409_v6 = vrot.slane %v408_v26, 1 }
 0x134   : > { %v492_v49 = vpop.xlane.xlu0 %491  ;;  %v474_v50 = vadd.f32 %v473_v18, %v472_v61  ;;  %vm5206_vm0 = vcmp.eq.s32.totalorder %v5101_v22, %v1236_v12 }
 0x135   : > { %v493_v59 = vrot.slane %v492_v49, 4  ;;  %v410_v46 = vadd.f32 %v409_v6, %v408_v26 }
 0x137   : > { %v494_v36 = vadd.f32 %v493_v59, %v492_v49  ;;  %4270 = vpush %v410_v46 }
 0x138   : > { %4272 = vpush %v434_v4 }
 0x139   : > { %v495_v58 = vrot.slane %v494_v36, 2  ;;  %4274 = vpush %v474_v50  ;;  %v6697_v50 = vld [vmem:[#allocation10_spill] sm:$0xff] }
 0x13b   : > { %v496_v51 = vadd.f32 %v495_v58, %v494_v36 }
 0x13d   : > { %v497_v40 = vrot.slane %v496_v51, 1 }
 0x13f   : > { %v498_v21 = vadd.f32 %v497_v40, %v496_v51 }
 0x141   : > { %4276 = vpush %v498_v21 }
 0x15f   : > { %s4269_s6 = spop %4268 }
 0x168   : > { %s4271_s15 = spop %4270 }
 0x169   : > { %s501_s26 = smul.f32 %s4271_s15, %s4271_s15  ;;  %s4273_s22 = spop %4272 }
 0x16a   : > { %s500_s24 = smul.f32 %s4273_s22, %s4269_s6  ;;  %v3122_v37 = vstv %s4273_s22  ;;  %s4275_s10 = spop %4274 }
 0x16b   : > { %3123 = vst [vmem:[%s5090_s11 + $0x1] sm:$0x1] %v3122_v37  ;;  %3126 = vst [vmem:[%s5090_s11 + $0x3] sm:$0x1] %v3122_v37  ;;  %s513_s12 = ssub.f32 0.0, %s4271_s15  ;;  %s505_s16 = smul.f32 %s4275_s10, %s4273_s22 }
 0x16c   : > { %s502_s23 = ssub.f32 %s500_s24, %s501_s26 }
 0x16d   : > { %s514_s7 = smul.f32 %s4275_s10, %s513_s12 }
 0x16e   : > { %p503_p2 = scmp.ne.f32.partialorder %s502_s23, 0.0 }
 0x170   : > { %s504_s18 = scalar_select %p503_p2, %s502_s23, 1.0 }
 0x172   : > { %s4277_s29 = spop %4276  ;;  %v508_v60 = vstv %s504_s18 }
 0x173   : > { %s506_s4 = smul.f32 %s4277_s29, %s4271_s15  ;;  %4361 = vrcp.f32 %v508_v60  ;;  %v6700_v60 = vld [vmem:[#allocation14_spill] sm:$0xff] }
 0x174   : > { %s515_s19 = smul.f32 %s4277_s29, %s4269_s6  ;;  %s4525_s6 = smov 127  }
 0x175   : > { %s507_s25 = ssub.f32 %s505_s16, %s506_s4 }
 0x176   : > { %s516_s27 = sadd.f32 %s515_s19, %s514_s7 }
 0x17d   : > { %v4362_v39 = vpop.eup %4361 }
 0x17e   : > { %4278 = vpush %v4362_v39 }
 0x1af   : > { %s4279_s5 = spop %4278 }
 0x1b0   : > { %s511_s30 = smul.f32 %s4279_s5, %s507_s25 }
 0x1b1   : > { %s520_s26 = smul.f32 %s4279_s5, %s516_s27 }
 0x1b2   : > { %s6848_s30 = smov (!%p503_p2, %s511_s30), 0.0 }
 0x1b3   : > { %s6850_s26 = smov (!%p503_p2, %s520_s26), 0.0  ;;  %v5099_v23 = vstv %s6848_s30 }
 0x1b4   : > { %v5107_v20 = vstv %s6850_s26  ;;  %v524_v16 = vmul.f32 %v5099_v23, %v4761_v8  ;;  %v523_v26 = vmul.f32 %v5099_v23, %v4758_v7  ;;  %v526_v61 = vmul.f32 %v5099_v23, %v4778_v15 }
 0x1b5   : > { %v525_v44 = vmul.f32 %v5099_v23, %v4767_v10  ;;  %v528_v49 = vmul.f32 %v5099_v23, %v4800_v25  ;;  %v530_v6 = vmul.f32 %v5099_v23, %v4822_v34  ;;  %v527_v18 = vmul.f32 %v5099_v23, %v4782_v17  ;;  %v6698_v17 = vld [vmem:[#allocation9_spill] sm:$0xff] }
 0x1b6   : > { %v541_v8 = vadd.f32 %v5107_v20, %v524_v16  ;;  %v540_v59 = vadd.f32 %v5107_v20, %v523_v26  ;;  %v543_v7 = vadd.f32 %v5107_v20, %v526_v61  ;;  %v529_v15 = vmul.f32 %v5099_v23, %v4808_v28  ;;  %v6699_v28 = vld [vmem:[#allocation11_spill] sm:$0xff]  ;;  %v6702_v61 = vld [vmem:[#allocation13_spill] sm:$0xff] }
 0x1b7   : > { %v542_v10 = vadd.f32 %v5107_v20, %v525_v44  ;;  %v545_v46 = vadd.f32 %v5107_v20, %v528_v49  ;;  %v547_v25 = vadd.f32 %v5107_v20, %v530_v6  ;;  %v544_v34 = vadd.f32 %v5107_v20, %v527_v18  ;;  %v6705_v6 = vld [vmem:[#allocation16_spill] sm:$0xff] }
 0x1b8   : > { %v5133_v36 = vsub.f32 %v541_v8, %v6697_v50  ;;  %v5136_v4 = vsub.f32 %v540_v59, %v6698_v17  ;;  %v5139_v58 = vsub.f32 %v543_v7, %v4847_v45  ;;  %v546_v51 = vadd.f32 %v5107_v20, %v529_v15  ;;  %v6706_v8 = vld [vmem:[#allocation12_spill] sm:$0xff]  ;;  %v6707_v59 = vld [vmem:[#allocation15_spill] sm:$0xff] }
 0x1b9   : > { %v5143_v40 = vsub.f32 %v542_v10, %v6699_v28  ;;  %v5146_v21 = vsub.f32 %v545_v46, %v4887_v2  ;;  %v5149_v37 = vsub.f32 %v547_v25, %v4924_v47  ;;  %v5152_v39 = vsub.f32 %v544_v34, %v6700_v60 }
 0x1ba   : > { %v5156_v55 = vmul.f32 %v5133_v36, %v4745_v1  ;;  %v5160_v45 = vmul.f32 %v5136_v4, %v4742_v0  ;;  %v5164_v16 = vmul.f32 %v5139_v58, %v4754_v5  ;;  %v5167_v2 = vsub.f32 %v546_v51, %v4902_v29 }
 0x1bb   : > { %v5171_v47 = vmul.f32 %v5143_v40, %v4750_v3  ;;  %v5175_v26 = vmul.f32 %v5146_v21, %v4775_v14  ;;  %v5179_v1 = vmul.f32 %v5149_v37, %v4797_v24  ;;  %v5188_v3 = vmul.u32 2, %v5101_v22 }
 0x1bc   : > { %646 = vrot.lane.b32.xlu0 %v5156_v55, %s4520_s21  ;;  %644 = vrot.lane.b32.xlu1 %v5160_v45, %s4520_s21  ;;  %v1190_v0 = vpack.c.bf16 %v5164_v16, %v5156_v55  ;;  %v1237_v5 = vmul.u32 2, %v5105_v63  ;;  %v5197_v24 = vmul.f32 %v5152_v39, %v4764_v9  ;;  %v5201_v29 = vmul.f32 %v5167_v2, %v4787_v19  ;;  %v6708_v19 = vld [vmem:[#allocation18_spill] sm:$0xff] }
 0x1bd   : > { %v5193_v14 = vpack.c.bf16 %v5171_v47, %v5160_v45  ;;  %v532_v44 = vmul.f32 %v5099_v23, %v6702_v61  ;;  %v534_v18 = vmul.f32 %v5099_v23, %v6705_v6  ;;  %v531_v9 = vmul.f32 %v5099_v23, %v6706_v8 }
 0x1be   : > { %6701 = vst [vmem:[#allocation10_spill] sm:$0xff] %v5201_v29  ;;  %3958 = vmatprep.subr.bf16.mxu0 %v1190_v0  ;;  %v533_v7 = vmul.f32 %v5099_v23, %v6707_v59  ;;  %v536_v15 = vmul.f32 %v5099_v23, %v6708_v19  ;;  %v5222_v12 = vpack.c.bf16 %v5179_v1, %v5175_v26  ;;  %v5226_v25 = vadd.s32 16, %v5095_v35 }
 0x1bf   : > { %v1197_v10 = vunpack.c.l.bf16 %v5193_v14  ;;  %3960 = vmatpush1.bf16.msra.mxu0 %v5193_v14  ;;  %v549_v46 = vadd.f32 %v5107_v20, %v532_v44  ;;  %v1199_v34 = vunpack.c.h.bf16 %v5193_v14  ;;  %v551_v50 = vadd.f32 %v5107_v20, %v534_v18 }
 0x1c0   : > { %654 = vrot.lane.b32.xlu0 %v5175_v26, %s4520_s21  ;;  %648 = vrot.lane.b32.xlu1 %v5171_v47, %s4520_s21  ;;  %v548_v17 = vadd.f32 %v5107_v20, %v531_v9  ;;  %v550_v51 = vadd.f32 %v5107_v20, %v533_v7  ;;  %v1191_v28 = vpack.c.bf16 %v5201_v29, %v5197_v24  ;;  %v1198_v61 = vunpack.c.l.bf16 %v1190_v0 }
 0x1c1   : > { %3962 = vmatprep.subr.bf16.mxu0 %v5222_v12  ;;  %v5240_v60 = vsub.f32 %v549_v46, %v4971_v31  ;;  %v538_v14 = vmul.f32 %v5099_v23, %v4976_v32  ;;  %v5245_v44 = vsub.f32 %v551_v50, %v4998_v52  ;;  %v553_v8 = vadd.f32 %v5107_v20, %v536_v15  ;;  %v6710_v32 = vld [vmem:[#allocation17_spill] sm:$0xff]  ;;  %v6711_v52 = vld [vmem:[#allocation19_spill] sm:$0xff] }
 0x1c2   : > { %v5248_v6 = vsub.f32 %v548_v17, %v4953_v43  ;;  %v5251_v18 = vsub.f32 %v550_v51, %v4986_v62  ;;  %v535_v59 = vmul.f32 %v5099_v23, %v6710_v32  ;;  %v537_v7 = vmul.f32 %v5099_v23, %v6711_v52 }
 0x1c3   : > { %3964 = vmatpush1.bf16.msra.mxu0 %v1191_v28  ;;  %v5256_v31 = vmul.f32 %v5240_v60, %v4831_v38  ;;  %v555_v9 = vadd.f32 %v5107_v20, %v538_v14  ;;  %v5269_v43 = vmul.f32 %v5245_v44, %v4869_v56  ;;  %v1200_v19 = vunpack.c.h.bf16 %v1190_v0 }
 0x1c4   : > { %658 = vrot.lane.b32.xlu0 %v5179_v1, %s4520_s21  ;;  %650 = vrot.lane.b32.xlu1 %v5164_v16, %s4520_s21  ;;  %v5273_v38 = vmul.f32 %v5248_v6, %v4812_v30  ;;  %v5277_v62 = vmul.f32 %v5251_v18, %v4852_v48  ;;  %v5280_v23 = vsub.f32 %v553_v8, %v5016_v57  ;;  %v1201_v51 = vunpack.c.l.bf16 %v1191_v28 }
 0x1c5   : > { %6709 = vst [vmem:[#allocation9_spill] sm:$0xff] %v5256_v31  ;;  %6712 = vst [vmem:[#allocation11_spill] sm:$0xff] %v5269_v43  ;;  %v5283_v15 = vsub.f32 %v555_v9, %v5032_v54  ;;  %v552_v46 = vadd.f32 %v5107_v20, %v535_v59  ;;  %v554_v56 = vadd.f32 %v5107_v20, %v537_v7  ;;  %v1203_v14 = vunpack.c.h.bf16 %v1191_v28 }
 0x1c6   : > { %6713 = vst [vmem:[#allocation14_spill] sm:$0xff] %v5273_v38  ;;  %6714 = vst [vmem:[#allocation13_spill] sm:$0xff] %v5277_v62  ;;  %v1194_v30 = vpack.c.bf16 %v5269_v43, %v5256_v31  ;;  %v1193_v50 = vpack.c.bf16 %v5277_v62, %v5273_v38  ;;  %v1214_v48 = vsub.f32 %v5156_v55, %v1198_v61  ;;  %v1204_v8 = vunpack.c.h.bf16 %v5222_v12 }
 0x1c7   : > { %v1216_v0 = vsub.f32 %v5164_v16, %v1200_v19  ;;  %v5295_v57 = vmul.f32 %v5280_v23, %v4905_v33  ;;  %v5299_v54 = vmul.f32 %v5283_v15, %v4944_v27  ;;  %v5302_v20 = vsub.f32 %v552_v46, %v5007_v42 }
 0x1c8   : > { %v5305_v17 = vsub.f32 %v554_v56, %v5024_v13  ;;  %3966 = vmatprep.subr.bf16.mxu0 %v1194_v30  ;;  %662 = vrot.lane.b32.xlu0 %v5256_v31, %s4520_s21  ;;  %v5312_v33 = vsel %vm5206_vm0, 1.0, %v6632_v41  ;;  %vm5315_vm2 = vcmp.eq.s32.totalorder %v5101_v22, %v1237_v5  ;;  %v1202_v5 = vunpack.c.l.bf16 %v5222_v12 }
 0x1c9   : > { %6715 = vst [vmem:[#allocation16_spill] sm:$0xff] %v5295_v57  ;;  %6716 = vst [vmem:[#allocation12_spill] sm:$0xff] %v5299_v54  ;;  %3968 = vmatpush1.bf16.msra.mxu0 %v1193_v50  ;;  %652 = vrot.lane.b32.xlu1 %v5197_v24, %s4520_s21  ;;  %v1196_v42 = vpack.c.bf16 %v5299_v54, %v5295_v57  ;;  %v5325_v13 = vmul.f32 %v5302_v20, %v4890_v11  ;;  %v1238_v11 = vmul.u32 2, %v5226_v25 }
 0x1ca   : > { %v5329_v49 = vmul.f32 %v5305_v17, %v4928_v53  ;;  %v4005_v28 = vpack.c.bf16 %v1216_v0, %v1214_v48  ;;  %v1213_v61 = vsub.f32 %v5160_v45, %v1197_v10  ;;  %vm1281_vm3 = vcmp.eq.s32.totalorder %v5095_v35, %v5188_v3 }
 0x1cb   : > { %6719 = vst [vmem:[#allocation15_spill] sm:$0xff] %v5325_v13  ;;  %vm1282_vm4 = vcmp.eq.s32.totalorder %v5105_v63, %v5188_v3  ;;  %3970 = vmatprep.subr.bf16.mxu0 %v1196_v42  ;;  %v1215_v9 = vsub.f32 %v5171_v47, %v1199_v34  ;;  %v1206_v32 = vunpack.c.l.bf16 %v1194_v30  ;;  %v1208_v59 = vunpack.c.h.bf16 %v1194_v30 }
 0x1cc   : > { %6720 = vst [vmem:[#allocation18_spill] sm:$0xff] %v5329_v49  ;;  %v1195_v53 = vpack.c.bf16 %v5329_v49, %v5325_v13  ;;  %666 = vrot.lane.b32.xlu0 %v5269_v43, %s4520_s21  ;;  %v1218_v10 = vsub.f32 %v5175_v26, %v1202_v5  ;;  %v1220_v12 = vsub.f32 %v5179_v1, %v1204_v8  ;;  %v1205_v19 = vunpack.c.l.bf16 %v1193_v50  ;;  %vm5395_vm8 = vmpackc.low %vm1282_vm4, %vm1281_vm3 }
 0x1cd   : > { %v1217_v52 = vsub.f32 %v5197_v24, %v1201_v51  ;;  %v1219_v7 = vsub.f32 %v5201_v29, %v1203_v14  ;;  %v1207_v46 = vunpack.c.h.bf16 %v1193_v50  ;;  %656 = vrot.lane.b32.xlu1 %v5201_v29, %s4520_s21  ;;  %v1222_v34 = vsub.f32 %v5256_v31, %v1206_v32 }
 0x1ce   : > { %3972 = vmatpush1.bf16.msra.mxu0 %v1195_v53  ;;  %v1224_v56 = vsub.f32 %v5269_v43, %v1208_v59  ;;  %v1209_v30 = vunpack.c.l.bf16 %v1195_v53  ;;  %v1211_v48 = vunpack.c.h.bf16 %v1195_v53  ;;  %v1210_v0 = vunpack.c.l.bf16 %v1196_v42 }
 0x1cf   : > { %4006 = vmatprep.subr.bf16.mxu0 %v4005_v28  ;;  %v1235_v5 = vadd.s32 24, %v5095_v35  ;;  %v4007_v8 = vpack.c.bf16 %v1215_v9, %v1213_v61  ;;  %vm5354_vm5 = vcmp.eq.s32.totalorder %v5101_v22, %v1238_v11  ;;  %vm1283_vm6 = vcmp.eq.s32.totalorder %v5226_v25, %v5188_v3 }
 0x1d0   : > { %v1212_v50 = vunpack.c.h.bf16 %v1196_v42  ;;  %670 = vrot.lane.b32.xlu0 %v5295_v57, %s4520_s21  ;;  %v4009_v14 = vpack.c.bf16 %v1220_v12, %v1218_v10  ;;  %v4011_v28 = vpack.c.bf16 %v1219_v7, %v1217_v52  ;;  %v5370_v61 = vsel %vm5315_vm2, 1.0, %v6632_v41 }
 0x1d1   : > { %3303 = vmatmul.mubr.msk.f32.vlgmr.msra.gmra.mrb[0].mxu0 %vm6626_vm1, %v5312_v33  ;;  %vm1284_vm7 = vcmp.eq.s32.totalorder %v1235_v5, %v5188_v3  ;;  %660 = vrot.lane.b32.xlu1 %v5273_v38, %s4520_s21  ;;  %v4013_v42 = vpack.c.bf16 %v1224_v56, %v1222_v34  ;;  %v1221_v11 = vsub.f32 %v5273_v38, %v1205_v19  ;;  %v1239_v32 = vmul.u32 2, %v1235_v5  ;;  %v750_v56 = vpop.permute.xlu1 %749 }
 0x1d2   : > { %4008 = vmatpush1.bf16.msra.mxu0 %v4007_v8  ;;  %v1223_v53 = vsub.f32 %v5277_v62, %v1207_v46  ;;  %1460 = vmatprep.mubr.f32.mxu0 %v6632_v41  ;;  %v1226_v9 = vsub.f32 %v5295_v57, %v1210_v0  ;;  %v1225_v59 = vsub.f32 %v5325_v13, %v1209_v30  ;;  %v1264_v27 = vadd.s32 128, %v5095_v35  ;;  %vm5452_vm3 = vmpackc.low %vm1284_vm7, %vm1283_vm6 }
 0x1d3   : > { %4010 = vmatprep.subr.bf16.mxu0 %v4009_v14  ;;  %v1227_v10 = vsub.f32 %v5329_v49, %v1211_v48  ;;  %v1228_v12 = vsub.f32 %v5299_v54, %v1212_v50  ;;  %v1265_v52 = vadd.s32 136, %v5095_v35  ;;  %v1266_v7 = vadd.s32 144, %v5095_v35 }
 0x1d4   : > { %674 = vrot.lane.b32.xlu0 %v5299_v54, %s4520_s21  ;;  %v1267_v19 = vadd.s32 152, %v5095_v35  ;;  %v1268_v46 = vadd.s32 160, %v5095_v35  ;;  %v1269_v34 = vadd.s32 168, %v5095_v35  ;;  %v5404_v30 = vsel %vm5354_vm5, 1.0, %v6632_v41 }
 0x1d5   : > { %3304 = vmatmul.mubr.msk.f32.gmra.mrb[2].mxu0 %vm6626_vm1, %v5370_v61  ;;  %664 = vrot.lane.b32.xlu1 %v5277_v62, %s4520_s21  ;;  %vm1297_vm9 = vcmp.eq.s32.totalorder %v1264_v27, %v5188_v3  ;;  %vm1298_vm10 = vcmp.eq.s32.totalorder %v1265_v52, %v5188_v3  ;;  %vm1299_vm11 = vcmp.eq.s32.totalorder %v1266_v7, %v5188_v3  ;;  %v1252_v0 = vadd.s32 32, %v5095_v35 }
 0x1d6   : > { %4012 = vmatpush1.bf16.msra.mxu0 %v4011_v28  ;;  %1466 = vmatprep.mubr.f32.mxu0 %v6632_v41  ;;  %vm5411_vm12 = vcmp.eq.s32.totalorder %v5101_v22, %v1239_v32  ;;  %vm5415_vm13 = vmpackc.low %vm1298_vm10, %vm1297_vm9  ;;  %vm1300_vm14 = vcmp.eq.s32.totalorder %v1267_v19, %v5188_v3  ;;  %v1253_v8 = vadd.s32 40, %v5095_v35  ;;  %v4015_v51 = vpack.c.bf16 %v1223_v53, %v1221_v11 }
 0x1d7   : > { %4014 = vmatprep.subr.bf16.mxu0 %v4013_v42  ;;  %v4522_v50 = vmov 1.0|1.0   ;;  %v1270_v22 = vadd.s32 176, %v5095_v35  ;;  %v1271_v14 = vadd.s32 184, %v5095_v35  ;;  %v4017_v28 = vpack.c.bf16 %v1228_v12, %v1226_v9  ;;  %vm5434_vm15 = vmpackc.low %vm1300_vm14, %vm1299_vm11 }
 0x1d8   : > { %3974 = vmatprep.subr.msk.bf16.mxu1 %vm5415_vm13, %v4522_v50  ;;  %v6729_v42 = vmov 0  ;;  %vm1301_vm0 = vcmp.eq.s32.totalorder %v1268_v46, %v5188_v3  ;;  %vm1302_vm2 = vcmp.eq.s32.totalorder %v1269_v34, %v5188_v3  ;;  %v5445_v11 = vsel %vm5411_vm12, 1.0, %v6632_v41 }
 0x1d9   : > { %3305 = vmatmul.mubr.msk.f32.gmra.mrb[4].mxu0 %vm6626_vm1, %v5404_v30  ;;  %3976 = vmatpush3.bf16.msk.msra.mxu1 %vm5395_vm8, %v4522_v50  ;;  %v6730_v42 = vsel %vm5434_vm15, 4294967295, %v6729_v42  ;;  %v6731_v53 = vmov 0  ;;  %v4019_v9 = vpack.c.bf16 %v1227_v10, %v1225_v59  ;;  %vm1285_vm4 = vcmp.eq.s32.totalorder %v1252_v0, %v5188_v3  ;;  %vm5464_vm6 = vmpackc.low %vm1302_vm2, %vm1301_vm0 }
 0x1da   : > { %4016 = vmatpush1.bf16.msra.mxu0 %v4015_v51  ;;  %668 = vrot.lane.b32.xlu1 %v5325_v13, %s4520_s21  ;;  %v6732_v53 = vsel %vm5452_vm3, 4294967295, %v6731_v53  ;;  %vm1286_vm5 = vcmp.eq.s32.totalorder %v1253_v8, %v5188_v3  ;;  %v1254_v32 = vadd.s32 48, %v5095_v35  ;;  %v1255_v12 = vadd.s32 56, %v5095_v35 }
 0x1db   : > { %4018 = vmatprep.subr.bf16.mxu0 %v4017_v28  ;;  %1472 = vmatprep.mubr.f32.mxu0 %v6632_v41  ;;  %v6733_v25 = vmov 0  ;;  %vm1303_vm7 = vcmp.eq.s32.totalorder %v1270_v22, %v5188_v3  ;;  %vm1304_vm9 = vcmp.eq.s32.totalorder %v1271_v14, %v5188_v3  ;;  %v1272_v5 = vadd.s32 192, %v5095_v35  ;;  %vm5487_vm10 = vmpackc.low %vm1286_vm5, %vm1285_vm4 }
 0x1dc   : > { %3978 = vmatprep.subr.msk.bf16.mxu1 %vm5434_vm15, %v4522_v50  ;;  %v6734_v25 = vsel %vm5464_vm6, 4294967295, %v6733_v25  ;;  %v1273_v59 = vadd.s32 200, %v5095_v35  ;;  %v589_v10 = vmul.f32 %v5156_v55, %v5133_v36  ;;  %v588_v27 = vmul.f32 %v5160_v45, %v5136_v4  ;;  %vm5495_vm11 = vmpackc.low %vm1304_vm9, %vm1303_vm7 }
 0x1dd   : > { %3306 = vmatmul.mubr.msk.f32.gmra.mrb[6].mxu0 %vm6626_vm1, %v5445_v11  ;;  %3980 = vmatpush3.bf16.msk.msra.mxu1 %vm5452_vm3, %v4522_v50  ;;  %v6737_v36 = vmov 0  ;;  %vm1287_vm12 = vcmp.eq.s32.totalorder %v1254_v32, %v5188_v3  ;;  %vm1288_vm14 = vcmp.eq.s32.totalorder %v1255_v12, %v5188_v3  ;;  %v1256_v4 = vadd.s32 64, %v5095_v35 }
 0x1de   : > { %4020 = vmatpush1.bf16.msra.mxu0 %v4019_v9  ;;  %672 = vrot.lane.b32.xlu1 %v5329_v49, %s4520_s21  ;;  %v6738_v36 = vsel %vm5495_vm11, 4294967295, %v6737_v36  ;;  %v1257_v7 = vadd.s32 72, %v5095_v35  ;;  %vm1305_vm0 = vcmp.eq.s32.totalorder %v1272_v5, %v5188_v3  ;;  %vm1306_vm2 = vcmp.eq.s32.totalorder %v1273_v59, %v5188_v3  ;;  %vm5519_vm4 = vmpackc.low %vm1288_vm14, %vm1287_vm12 }
 0x1df   : > { %1628 = vmatprep.mubr.f32.mxu0 %v6632_v41  ;;  %3982 = vmatprep.subr.msk.bf16.mxu1 %vm5464_vm6, %v4522_v50  ;;  %v1274_v19 = vadd.s32 208, %v5095_v35  ;;  %v1275_v46 = vadd.s32 216, %v5095_v35  ;;  %v1258_v63 = vadd.s32 80, %v5095_v35  ;;  %v590_v0 = vmul.f32 %v5171_v47, %v5143_v40  ;;  %vm5526_vm5 = vmpackc.low %vm1306_vm2, %vm1305_vm0 }
 0x1e0   : > { %4022 = vmatprep.subr.msk.bf16.mxu0 %vm5415_vm13, %v4522_v50  ;;  %vm1289_vm7 = vcmp.eq.s32.totalorder %v1256_v4, %v5188_v3  ;;  %vm1290_vm9 = vcmp.eq.s32.totalorder %v1257_v7, %v5188_v3  ;;  %v1259_v51 = vadd.s32 88, %v5095_v35  ;;  %v1276_v22 = vadd.s32 224, %v5095_v35 }
 0x1e1   : > { %3339 = vmatmul.mubr.msk.f32.vlgmr.msra.gmra.mrb[8].mxu0 %vm6626_vm1, %v5312_v33  ;;  %3984 = vmatpush3.bf16.msk.msra.mxu1 %vm5487_vm10, %v4522_v50  ;;  %vm1307_vm12 = vcmp.eq.s32.totalorder %v1274_v19, %v5188_v3  ;;  %vm1308_vm14 = vcmp.eq.s32.totalorder %v1275_v46, %v5188_v3  ;;  %v1277_v40 = vadd.s32 232, %v5095_v35  ;;  %v604_v14 = vadd.f32 %v589_v10, %v588_v27  ;;  %vm5556_vm0 = vmpackc.low %vm1290_vm9, %vm1289_vm7 }
 0x1e2   : > { %1634 = vmatprep.mubr.f32.mxu0 %v6632_v41  ;;  %3986 = vmatprep.subr.msk.bf16.mxu1 %vm5495_vm11, %v4522_v50  ;;  %v591_v28 = vmul.f32 %v5164_v16, %v5139_v58  ;;  %vm1291_vm2 = vcmp.eq.s32.totalorder %v1258_v63, %v5188_v3  ;;  %v592_v32 = vmul.f32 %v5197_v24, %v5152_v39  ;;  %v1260_v5 = vadd.s32 96, %v5095_v35 }
 0x1e3   : > { %4024 = vmatpush3.bf16.msk.msra.mxu0 %vm5395_vm8, %v4522_v50  ;;  %v605_v12 = vadd.f32 %v604_v14, %v590_v0  ;;  %vm1309_vm7 = vcmp.eq.s32.totalorder %v1276_v22, %v5188_v3  ;;  %v1261_v59 = vadd.s32 104, %v5095_v35  ;;  %vm1310_vm9 = vcmp.eq.s32.totalorder %v1277_v40, %v5188_v3 }
 0x1e4   : > { %4026 = vmatprep.subr.msk.bf16.mxu0 %vm5434_vm15, %v4522_v50  ;;  %vm1292_vm15 = vcmp.eq.s32.totalorder %v1259_v51, %v5188_v3  ;;  %v1278_v39 = vadd.s32 240, %v5095_v35  ;;  %v1279_v10 = vadd.s32 248, %v5095_v35  ;;  %v593_v7 = vmul.f32 %v5175_v26, %v5146_v21 }
 0x1e5   : > { %3340 = vmatmul.mubr.msk.f32.gmra.mrb[10].mxu0 %vm6626_vm1, %v5370_v61  ;;  %3988 = vmatpush3.bf16.msk.msra.mxu1 %vm5519_vm4, %v4522_v50  ;;  %vm5563_vm1 = vmpackc.low %vm1308_vm14, %vm1307_vm12  ;;  %v606_v27 = vadd.f32 %v605_v12, %v591_v28  ;;  %vm6747_vm12 = vcmask 523264   ;;  %v594_v21 = vmul.f32 %v5201_v29, %v5167_v2  ;;  %v595_v51 = vmul.f32 %v5179_v1, %v5149_v37 }
 0x1e6   : > { %1640 = vmatprep.mubr.f32.mxu0 %v6632_v41  ;;  %3990 = vmatprep.subr.msk.bf16.mxu1 %vm5526_vm5, %v4522_v50  ;;  %vm5591_vm14 = vmpackc.low %vm1292_vm15, %vm1291_vm2  ;;  %vm1311_vm15 = vcmp.eq.s32.totalorder %v1278_v39, %v5188_v3  ;;  %vm1312_vm2 = vcmp.eq.s32.totalorder %v1279_v10, %v5188_v3  ;;  %v596_v40 = vmul.f32 %v5273_v38, %v5248_v6 }
 0x1e7   : > { %4028 = vmatpush3.bf16.msk.msra.mxu0 %vm5452_vm3, %v4522_v50  ;;  %v607_v19 = vadd.f32 %v606_v27, %v592_v32  ;;  %vm1294_vm3 = vcmp.eq.s32.totalorder %v1261_v59, %v5188_v3  ;;  %v597_v37 = vmul.f32 %v5256_v31, %v5240_v60  ;;  %v598_v6 = vmul.f32 %v5277_v62, %v5251_v18 }
 0x1e8   : > { %4030 = vmatprep.subr.msk.bf16.mxu0 %vm5464_vm6, %v4522_v50  ;;  %vm1293_vm6 = vcmp.eq.s32.totalorder %v1260_v5, %v5188_v3  ;;  %v599_v12 = vmul.f32 %v5269_v43, %v5245_v44  ;;  %v600_v60 = vmul.f32 %v5325_v13, %v5302_v20  ;;  %v601_v18 = vmul.f32 %v5295_v57, %v5280_v23 }
 0x1e9   : > { %3341 = vmatmul.mubr.msk.f32.gmra.mrb[12].mxu0 %vm6747_vm12, %v5404_v30  ;;  %3992 = vmatpush3.bf16.msk.msra.mxu1 %vm5556_vm0, %v4522_v50  ;;  %vm5599_vm12 = vmpackc.low %vm1310_vm9, %vm1309_vm7  ;;  %v608_v63 = vadd.f32 %v607_v19, %v593_v7  ;;  %vm6752_vm7 = vcmask 523264   ;;  %v602_v44 = vmul.f32 %v5329_v49, %v5305_v17  ;;  %v603_v20 = vmul.f32 %v5299_v54, %v5283_v15  ;;  %v5693_v15 = vld [vmem:[%s4739_s28 + $0x18] sm:$0xff] }
 0x1ea   : > { %1646 = vmatprep.mubr.f32.mxu0 %v6632_v41  ;;  %3994 = vmatprep.subr.msk.bf16.mxu1 %vm5563_vm1, %v4522_v50  ;;  %vm5623_vm9 = vmpackc.low %vm1294_vm3, %vm1293_vm6  ;;  %v1262_v7 = vadd.s32 112, %v5095_v35  ;;  %v1263_v19 = vadd.s32 120, %v5095_v35  ;;  %v838_v31 = vrot.slane %v5160_v45, 7 }
 0x1eb   : > { %4032 = vmatpush3.bf16.msk.msra.mxu0 %vm5487_vm10, %v4522_v50  ;;  %v609_v2 = vadd.f32 %v608_v63, %v594_v21  ;;  %v5690_v21 = vld [vmem:[%s4739_s28 + $0x8] sm:$0xff] }
 0x1ec   : > { %4034 = vmatprep.subr.msk.bf16.mxu0 %vm5495_vm11, %v4522_v50  ;;  %vm5629_vm11 = vmpackc.low %vm1312_vm2, %vm1311_vm15  ;;  %vm1295_vm3 = vcmp.eq.s32.totalorder %v1262_v7, %v5188_v3  ;;  %vm1296_vm6 = vcmp.eq.s32.totalorder %v1263_v19, %v5188_v3  ;;  %v4053_v63 = vpack.c.bf16 %v5693_v15, %v5690_v21  ;;  %v5704_v3 = vld [vmem:[%s4739_s28] sm:$0xff]  ;;  %v5744_v19 = vld [vmem:[%s4739_s28 + $0x68] sm:$0xff] }
 0x1ed   : > { %3342 = vmatmul.mubr.msk.f32.gmra.mrb[14].mxu0 %vm6752_vm7, %v5445_v11  ;;  %3996 = vmatpush3.bf16.msk.msra.mxu1 %vm5591_vm14, %v4522_v50  ;;  %v610_v14 = vadd.f32 %v609_v2, %v595_v51  ;;  %vm5685_vm15 = vmpackc.low %vm1296_vm6, %vm1295_vm3  ;;  %v5707_v51 = vld [vmem:[%s4739_s28 + $0x10] sm:$0xff]  ;;  %vm6764_vm3 = vnez %v6732_v53  ;;  %vm6765_vm6 = vnez %v6734_v25  ;;  %v752_v53 = vpop.permute.xlu0 %751 }
 0x1ee   : > { %3998 = vmatprep.subr.msk.bf16.mxu1 %vm5599_vm12, %v4522_v50  ;;  %v4055_v2 = vpack.c.bf16 %v5707_v51, %v5704_v3  ;;  %vm6761_vm2 = vmmov %vm6752_vm7  ;;  %vm6762_vm7 = vnez %v6730_v42 }
 0x1ef   : > { %4036 = vmatpush3.bf16.msk.msra.mxu0 %vm5519_vm4, %v4522_v50  ;;  %v611_v28 = vadd.f32 %v610_v14, %v596_v40  ;;  %v5712_v14 = vld [vmem:[%s4739_s28 + $0x28] sm:$0xff] }
 0x1f0   : > { %4038 = vmatprep.subr.msk.bf16.mxu0 %vm5526_vm5, %v4522_v50 }
 0x1f1   : > { %4000 = vmatpush3.bf16.msk.msra.mxu1 %vm5623_vm9, %v4522_v50  ;;  %v612_v32 = vadd.f32 %v611_v28, %v597_v37  ;;  %v5715_v37 = vld [vmem:[%s4739_s28 + $0x38] sm:$0xff] }
 0x1f2   : > { %4002 = vmatprep.subr.msk.bf16.mxu1 %vm5629_vm11, %v4522_v50  ;;  %v4057_v28 = vpack.c.bf16 %v5715_v37, %v5712_v14 }
 0x1f3   : > { %4040 = vmatpush3.bf16.msk.msra.mxu0 %vm5556_vm0, %v4522_v50  ;;  %v613_v5 = vadd.f32 %v612_v32, %v598_v6  ;;  %v5720_v32 = vld [vmem:[%s4739_s28 + $0x20] sm:$0xff] }
 0x1f4   : > { %4042 = vmatprep.subr.msk.bf16.mxu0 %vm5563_vm1, %v4522_v50 }
 0x1f5   : > { %v614_v59 = vadd.f32 %v613_v5, %v599_v12  ;;  %4004 = vmatpush3.bf16.msk.msra.mxu1 %vm5685_vm15, %v4522_v50  ;;  %v5723_v12 = vld [vmem:[%s4739_s28 + $0x30] sm:$0xff] }
 0x1f6   : > { %4054 = vmatprep.subr.bf16.mxu1 %v4053_v63  ;;  %v4059_v5 = vpack.c.bf16 %v5723_v12, %v5720_v32  ;;  %v4376_v63 = vld [vmem:[%s4739_s28 + $0x78] sm:$0xff] }
 0x1f7   : > { %4044 = vmatpush3.bf16.msk.msra.mxu0 %vm5591_vm14, %v4522_v50  ;;  %v615_v39 = vadd.f32 %v614_v59, %v600_v60  ;;  %v5728_v59 = vld [vmem:[%s4739_s28 + $0x48] sm:$0xff] }
 0x1f8   : > { %4046 = vmatprep.subr.msk.bf16.mxu0 %vm5599_vm12, %v4522_v50 }
 0x1f9   : > { %v616_v10 = vadd.f32 %v615_v39, %v601_v18  ;;  %v5731_v18 = vld [vmem:[%s4739_s28 + $0x58] sm:$0xff] }
 0x1fa   : > { %v4061_v39 = vpack.c.bf16 %v5731_v18, %v5728_v59 }
 0x1fb   : > { %4048 = vmatpush3.bf16.msk.msra.mxu0 %vm5623_vm9, %v4522_v50  ;;  %v617_v27 = vadd.f32 %v616_v10, %v602_v44  ;;  %v5736_v10 = vld [vmem:[%s4739_s28 + $0x40] sm:$0xff] }
 0x1fc   : > { %4050 = vmatprep.subr.msk.bf16.mxu0 %vm5629_vm11, %v4522_v50  ;;  %v930_v62 = vrot.slane %v5736_v10, 7 }
 0x1fd   : > { %v5679_v23 = vadd.f32 %v617_v27, %v603_v20  ;;  %v5739_v20 = vld [vmem:[%s4739_s28 + $0x50] sm:$0xff] }
 0x1fe   : > { %v4063_v27 = vpack.c.bf16 %v5739_v20, %v5736_v10  ;;  %v934_v57 = vrot.slane %v5739_v20, 7  ;;  %v840_v20 = vrot.slane %v5171_v47, 7 }
 0x1ff   : > { %6757 = vst [vmem:[#allocation17_spill] sm:$0xff] %v5679_v23  ;;  %4052 = vmatpush3.bf16.msk.msra.mxu0 %vm5685_vm15, %v4522_v50 }
 0x2a4   : > { %v1456_v35 = vpop.f32.mrb[0].mxu0 }
 0x2a5   : > { %v1458_v40 = vpop.f32.mrb[1].mxu0 }
 0x2a6   : > { %1543 = vmatprep.mubr.f32.mxu1 %v1458_v40  ;;  %v5749_v40 = vld [vmem:[%s4739_s28 + $0x60] sm:$0xff] }
 0x2a7   : > { %1544 = vmatmul.mubr.f32.vlgmr.msra.gmra.mrb[0].mxu1 %v1456_v35  ;;  %v4065_v35 = vpack.c.bf16 %v4376_v63, %v5744_v19  ;;  %6760 = vst [vmem:[#allocation19_spill] sm:$0xff] %v5749_v40 }
 0x2a8   : > { %v1462_v6 = vpop.f32.mrb[2].mxu0  ;;  %4056 = vmatpush1.bf16.msra.mxu1 %v4055_v2 }
 0x2a9   : > { %v1464_v60 = vpop.f32.mrb[3].mxu0  ;;  %4058 = vmatprep.subr.bf16.mxu1 %v4057_v28  ;;  %v4378_v28 = vld [vmem:[%s4739_s28 + $0x70] sm:$0xff] }
 0x2aa   : > { %1548 = vmatprep.mubr.f32.mxu1 %v1464_v60 }
 0x2ab   : > { %1549 = vmatmul.mubr.f32.gmra.mrb[2].mxu1 %v1462_v6  ;;  %v4067_v6 = vpack.c.bf16 %v4378_v28, %v5749_v40 }
 0x2ac   : > { %v1468_v44 = vpop.f32.mrb[4].mxu0  ;;  %4060 = vmatpush1.bf16.msra.mxu1 %v4059_v5 }
 0x2ad   : > { %v1470_v7 = vpop.f32.mrb[5].mxu0  ;;  %4062 = vmatprep.subr.bf16.mxu1 %v4061_v39 }
 0x2ae   : > { %1553 = vmatprep.mubr.f32.mxu1 %v1470_v7 }
 0x2af   : > { %1554 = vmatmul.mubr.f32.gmra.mrb[4].mxu1 %v1468_v44 }
 0x2b0   : > { %v1474_v2 = vpop.f32.mrb[6].mxu0  ;;  %4064 = vmatpush1.bf16.msra.mxu1 %v4063_v27 }
 0x2b1   : > { %v1476_v5 = vpop.f32.mrb[7].mxu0  ;;  %4066 = vmatprep.subr.bf16.mxu1 %v4065_v35 }
 0x2b2   : > { %1558 = vmatprep.mubr.f32.mxu1 %v1476_v5 }
 0x2b3   : > { %1559 = vmatmul.mubr.f32.gmra.mrb[6].mxu1 %v1474_v2 }
 0x2b4   : > { %v1630_v60 = vpop.f32.mrb[8].mxu0  ;;  %4068 = vmatpush1.bf16.msra.mxu1 %v4067_v6  ;;  %1802 = vmatprep.mubr.f32.mxu1 %v6632_v41 }
 0x2b5   : > { %v1632_v39 = vpop.f32.mrb[9].mxu0  ;;  %4070 = vmatprep.subr.msk.bf16.mxu1 %vm5415_vm13, %v4522_v50  ;;  %vm6763_vm13 = vmmov %vm6761_vm2 }
 0x2b6   : > { %1717 = vmatprep.mubr.f32.mxu0 %v1632_v39 }
 0x2b7   : > { %1718 = vmatmul.mubr.f32.vlgmr.msra.gmra.mrb[16].mxu0 %v1630_v60  ;;  %3375 = vmatmul.mubr.msk.f32.vlgmr.msra.gmra.mrb[8].mxu1 %vm6761_vm2, %v5312_v33 }
 0x2b8   : > { %v1636_v44 = vpop.f32.mrb[10].mxu0  ;;  %1808 = vmatprep.mubr.f32.mxu1 %v6632_v41  ;;  %4072 = vmatpush3.bf16.msk.msra.mxu1 %vm5395_vm8, %v4522_v50 }
 0x2b9   : > { %v1638_v27 = vpop.f32.mrb[11].mxu0  ;;  %4074 = vmatprep.subr.msk.bf16.mxu1 %vm6762_vm7, %v4522_v50  ;;  %vm6766_vm7 = vnez %v6738_v36 }
 0x2ba   : > { %1722 = vmatprep.mubr.f32.mxu0 %v1638_v27 }
 0x2bb   : > { %1723 = vmatmul.mubr.f32.gmra.mrb[18].mxu0 %v1636_v44  ;;  %3376 = vmatmul.mubr.msk.f32.gmra.mrb[10].mxu1 %vm6763_vm13, %v5370_v61  ;;  %vm6767_vm13 = vmmov %vm6761_vm2 }
 0x2bc   : > { %v1642_v48 = vpop.f32.mrb[12].mxu0  ;;  %1814 = vmatprep.mubr.f32.mxu1 %v6632_v41  ;;  %4076 = vmatpush3.bf16.msk.msra.mxu1 %vm6764_vm3, %v4522_v50 }
 0x2bd   : > { %v1644_v7 = vpop.f32.mrb[13].mxu0  ;;  %4078 = vmatprep.subr.msk.bf16.mxu1 %vm6765_vm6, %v4522_v50  ;;  %vm6783_vm6 = vmmov %vm6761_vm2 }
 0x2be   : > { %1727 = vmatprep.mubr.f32.mxu0 %v1644_v7 }
 0x2bf   : > { %1728 = vmatmul.mubr.f32.gmra.mrb[20].mxu0 %v1642_v48  ;;  %3377 = vmatmul.mubr.msk.f32.gmra.mrb[12].mxu1 %vm6761_vm2, %v5404_v30 }
 0x2c0   : > { %v1648_v42 = vpop.f32.mrb[14].mxu0  ;;  %1820 = vmatprep.mubr.f32.mxu1 %v6632_v41  ;;  %4080 = vmatpush3.bf16.msk.msra.mxu1 %vm5487_vm10, %v4522_v50 }
 0x2c1   : > { %v1650_v63 = vpop.f32.mrb[15].mxu0  ;;  %4082 = vmatprep.subr.msk.bf16.mxu1 %vm6766_vm7, %v4522_v50  ;;  %vm6786_vm7 = vmmov %vm6761_vm2 }
 0x2c2   : > { %1732 = vmatprep.mubr.f32.mxu0 %v1650_v63 }
 0x2c3   : > { %1733 = vmatmul.mubr.f32.gmra.mrb[22].mxu0 %v1648_v42  ;;  %3378 = vmatmul.mubr.msk.f32.gmra.mrb[14].mxu1 %vm6767_vm13, %v5445_v11  ;;  %vm3098_vm13 = vcmask 260096  }
 0x2c4   : > { %4084 = vmatpush3.bf16.msk.msra.mxu1 %vm5519_vm4, %v4522_v50 }
 0x2c5   : > { %4086 = vmatprep.subr.msk.bf16.mxu1 %vm5526_vm5, %v4522_v50  ;;  %vm4524_vm5 = vmmov 0  }
 0x2c8   : > { %4088 = vmatpush3.bf16.msk.msra.mxu1 %vm5556_vm0, %v4522_v50 }
 0x2c9   : > { %4090 = vmatprep.subr.msk.bf16.mxu1 %vm5563_vm1, %v4522_v50  ;;  %vm2075_vm1 = vcmask 261120  }
 0x2ca   : > { %3749 = vmatprep.mubr.msk.f32.mxu0 %vm2075_vm1, %v5312_v33 }
 0x2cc   : > { %4092 = vmatpush3.bf16.msk.msra.mxu1 %vm5591_vm14, %v4522_v50 }
 0x2cd   : > { %4094 = vmatprep.subr.msk.bf16.mxu1 %vm5599_vm12, %v4522_v50  ;;  %vm6781_vm12 = vmmov %vm6761_vm2 }
 0x2d0   : > { %4096 = vmatpush3.bf16.msk.msra.mxu1 %vm5623_vm9, %v4522_v50 }
 0x2d1   : > { %4098 = vmatprep.subr.msk.bf16.mxu1 %vm5629_vm11, %v4522_v50  ;;  %vm2628_vm11 = vcmask 130048  }
 0x2d4   : > { %4100 = vmatpush3.bf16.msk.msra.mxu1 %vm5685_vm15, %v4522_v50 }
 0x2d5   : > { %4150 = vmatprep.subr.msk.bf16.mxu1 %vm5395_vm8, %v4522_v50 }
 0x37a   : > { %v3533_v30 = vpop.f32.mrb[0].mxu1 }
 0x37b   : > { %v3534_v11 = vpop.f32.mrb[1].mxu1 }
 0x37c   : > { %v3535_v25 = vadd.f32 %v3534_v11, %v3533_v30 }
 0x37e   : > { %v3536_v36 = vpop.f32.mrb[2].mxu1 }
 0x37f   : > { %v3537_v8 = vpop.f32.mrb[3].mxu1 }
 0x380   : > { %v3538_v58 = vadd.f32 %v3537_v8, %v3536_v36 }
 0x382   : > { %v4101_v46 = vpack.c.bf16 %v3538_v58, %v3535_v25  ;;  %v3539_v22 = vpop.f32.mrb[4].mxu1 }
 0x383   : > { %v3540_v35 = vpop.f32.mrb[5].mxu1 }
 0x384   : > { %v3541_v2 = vadd.f32 %v3540_v35, %v3539_v22  ;;  %4102 = vmatprep.subr.bf16.mxu0 %v4101_v46 }
 0x385   : > { %4104 = vmatpush3.bf16.msra.mxu0 %v4101_v46 }
 0x386   : > { %v3542_v28 = vpop.f32.mrb[6].mxu1 }
 0x387   : > { %v3543_v6 = vpop.f32.mrb[7].mxu1 }
 0x388   : > { %v3544_v5 = vadd.f32 %v3543_v6, %v3542_v28 }
 0x38a   : > { %v4105_v60 = vpack.c.bf16 %v3544_v5, %v3541_v2  ;;  %v3577_v39 = vpop.f32.mrb[16].mxu0  ;;  %v1804_v44 = vpop.f32.mrb[8].mxu1 }
 0x38b   : > { %v3578_v27 = vpop.f32.mrb[17].mxu0  ;;  %v1806_v48 = vpop.f32.mrb[9].mxu1 }
 0x38c   : > { %v3579_v7 = vadd.f32 %v3578_v27, %v3577_v39  ;;  %1891 = vmatprep.mubr.f32.mxu1 %v1806_v48  ;;  %4106 = vmatprep.subr.bf16.mxu0 %v4105_v60 }
 0x38d   : > { %1892 = vmatmul.mubr.f32.vlgmr.msra.gmra.mrb[16].mxu1 %v1804_v44  ;;  %4108 = vmatpush3.bf16.msra.mxu0 %v4105_v60 }
 0x38e   : > { %v5818_v42 = vadd.f32 %v3579_v7, %v3535_v25  ;;  %v3580_v63 = vpop.f32.mrb[18].mxu0  ;;  %v1810_v30 = vpop.f32.mrb[10].mxu1  ;;  %4110 = vmatprep.subr.msk.bf16.mxu0 %vm5395_vm8, %v4522_v50  ;;  %4152 = vmatpush3.bf16.msk.msra.mxu1 %vm5395_vm8, %v4522_v50 }
 0x38f   : > { %v3581_v11 = vpop.f32.mrb[19].mxu0  ;;  %v1812_v36 = vpop.f32.mrb[11].mxu1  ;;  %4154 = vmatprep.subr.msk.bf16.mxu1 %vm6764_vm3, %v4522_v50 }
 0x390   : > { %6768 = vst [vmem:[#allocation20_spill] sm:$0xff] %v5818_v42  ;;  %v3582_v8 = vadd.f32 %v3581_v11, %v3580_v63  ;;  %1896 = vmatprep.mubr.f32.mxu1 %v1812_v36  ;;  %3750 = vmatmul.mubr.msk.f32.vlgmr.msra.gmra.mrb[24].mxu0 %vm2075_vm1, %v5370_v61 }
 0x391   : > { %1920 = vrot.lane.b32.xlu1 %v5818_v42, %s4520_s21  ;;  %1897 = vmatmul.mubr.f32.gmra.mrb[18].mxu1 %v1810_v30  ;;  %v920_v42 = vrot.slane %v5693_v15, 7 }
 0x392   : > { %v5833_v25 = vadd.f32 %v3582_v8, %v3538_v58  ;;  %v4141_v46 = vpack.c.bf16 %v3582_v8, %v3579_v7  ;;  %v3583_v22 = vpop.f32.mrb[20].mxu0  ;;  %v1816_v35 = vpop.f32.mrb[12].mxu1  ;;  %4112 = vmatpush3.bf16.msk.msra.mxu0 %vm5395_vm8, %v4522_v50  ;;  %4156 = vmatpush3.bf16.msk.msra.mxu1 %vm6764_vm3, %v4522_v50 }
 0x393   : > { %v3584_v28 = vpop.f32.mrb[21].mxu0  ;;  %v1818_v6 = vpop.f32.mrb[13].mxu1  ;;  %4114 = vmatprep.subr.msk.bf16.mxu0 %vm6764_vm3, %v4522_v50  ;;  %4158 = vmatprep.subr.msk.bf16.mxu1 %vm5487_vm10, %v4522_v50 }
 0x394   : > { %6769 = vst [vmem:[#allocation21_spill] sm:$0xff] %v5833_v25  ;;  %v3585_v58 = vadd.f32 %v3584_v28, %v3583_v22  ;;  %1901 = vmatprep.mubr.f32.mxu1 %v1818_v6  ;;  %1922 = vrot.lane.b32.xlu0 %v5833_v25, %s4520_s21 }
 0x395   : > { %1902 = vmatmul.mubr.f32.gmra.mrb[20].mxu1 %v1816_v35 }
 0x396   : > { %v5849_v60 = vadd.f32 %v3585_v58, %v3541_v2  ;;  %v3586_v39 = vpop.f32.mrb[22].mxu0  ;;  %v1822_v44 = vpop.f32.mrb[14].mxu1  ;;  %4116 = vmatpush3.bf16.msk.msra.mxu0 %vm6764_vm3, %v4522_v50  ;;  %4160 = vmatpush3.bf16.msk.msra.mxu1 %vm5487_vm10, %v4522_v50 }
 0x397   : > { %v3587_v27 = vpop.f32.mrb[23].mxu0  ;;  %v1824_v48 = vpop.f32.mrb[15].mxu1  ;;  %4118 = vmatprep.subr.msk.bf16.mxu0 %vm5487_vm10, %v4522_v50  ;;  %4162 = vmatprep.subr.msk.bf16.mxu1 %vm5519_vm4, %v4522_v50 }
 0x398   : > { %6770 = vst [vmem:[#allocation22_spill] sm:$0xff] %v5849_v60  ;;  %v3588_v2 = vadd.f32 %v3587_v27, %v3586_v39  ;;  %1906 = vmatprep.mubr.f32.mxu1 %v1824_v48  ;;  %1924 = vrot.lane.b32.xlu1 %v5849_v60, %s4520_s21 }
 0x399   : > { %1907 = vmatmul.mubr.f32.gmra.mrb[22].mxu1 %v1822_v44 }
 0x39a   : > { %v5865_v7 = vadd.f32 %v3588_v2, %v3544_v5  ;;  %v4145_v63 = vpack.c.bf16 %v3588_v2, %v3585_v58  ;;  %4120 = vmatpush3.bf16.msk.msra.mxu0 %vm5487_vm10, %v4522_v50  ;;  %4164 = vmatpush3.bf16.msk.msra.mxu1 %vm5519_vm4, %v4522_v50 }
 0x39b   : > { %4122 = vmatprep.subr.msk.bf16.mxu0 %vm5519_vm4, %v4522_v50  ;;  %4166 = vmatprep.subr.msk.bf16.mxu1 %vm5556_vm0, %v4522_v50 }
 0x39c   : > { %6771 = vst [vmem:[#allocation23_spill] sm:$0xff] %v5865_v7  ;;  %1926 = vrot.lane.b32.xlu0 %v5865_v7, %s4520_s21  ;;  %v6156_v7 = vmul.f32 %v5704_v3, %v750_v56 }
 0x39e   : > { %4124 = vmatpush3.bf16.msk.msra.mxu0 %vm5519_vm4, %v4522_v50  ;;  %4168 = vmatpush3.bf16.msk.msra.mxu1 %vm5556_vm0, %v4522_v50  ;;  %6791 = vst [vmem:[#allocation37_spill] sm:$0xff] %v6156_v7 }
 0x39f   : > { %4126 = vmatprep.subr.msk.bf16.mxu0 %vm5556_vm0, %v4522_v50  ;;  %4170 = vmatprep.subr.msk.bf16.mxu1 %vm5591_vm14, %v4522_v50 }
 0x3a2   : > { %4128 = vmatpush3.bf16.msk.msra.mxu0 %vm5556_vm0, %v4522_v50  ;;  %4172 = vmatpush3.bf16.msk.msra.mxu1 %vm5591_vm14, %v4522_v50 }
 0x3a3   : > { %4130 = vmatprep.subr.msk.bf16.mxu0 %vm5591_vm14, %v4522_v50  ;;  %4174 = vmatprep.subr.msk.bf16.mxu1 %vm5623_vm9, %v4522_v50 }
 0x3a6   : > { %4132 = vmatpush3.bf16.msk.msra.mxu0 %vm5591_vm14, %v4522_v50  ;;  %4176 = vmatpush3.bf16.msk.msra.mxu1 %vm5623_vm9, %v4522_v50 }
 0x3a7   : > { %4134 = vmatprep.subr.msk.bf16.mxu0 %vm5623_vm9, %v4522_v50  ;;  %4178 = vmatprep.subr.msk.bf16.mxu1 %vm5685_vm15, %v4522_v50 }
 0x3aa   : > { %4136 = vmatpush3.bf16.msk.msra.mxu0 %vm5623_vm9, %v4522_v50  ;;  %4180 = vmatpush3.bf16.msk.msra.mxu1 %vm5685_vm15, %v4522_v50 }
 0x3ab   : > { %4138 = vmatprep.subr.msk.bf16.mxu0 %vm5685_vm15, %v4522_v50 }
 0x3ae   : > { %4140 = vmatpush3.bf16.msk.msra.mxu0 %vm5685_vm15, %v4522_v50 }
 0x3af   : > { %4142 = vmatprep.subr.bf16.mxu0 %v4141_v46 }
 0x460   : > { %v3621_v5 = vpop.f32.mrb[16].mxu1 }
 0x461   : > { %v3622_v30 = vpop.f32.mrb[17].mxu1 }
 0x462   : > { %v5929_v11 = vadd.f32 %v3622_v30, %v3621_v5 }
 0x463   : > { %v3751_v36 = vpop.f32.mrb[24].mxu0 }
 0x464   : > { %6772 = vst [vmem:[#allocation24_spill] sm:$0xff] %v5929_v11  ;;  %v3624_v8 = vpop.f32.mrb[18].mxu1  ;;  %v2146_v22 = vpop.f32.mrb[25].mxu0  ;;  %1944 = vrot.lane.b32.xlu0 %v5929_v11, %s4520_s21 }
 0x465   : > { %v3625_v35 = vpop.f32.mrb[19].mxu1  ;;  %3784 = vmatprep.mubr.f32.mxu0 %v2146_v22 }
 0x466   : > { %v5933_v28 = vadd.f32 %v3625_v35, %v3624_v8  ;;  %3785 = vmatmul.mubr.f32.vlgmr.msra.gmra.mrb[26].mxu0 %v3751_v36 }
 0x467   : > { %4144 = vmatpush3.bf16.msra.mxu0 %v4141_v46  ;;  %3795 = vmatprep.mubr.msk.f32.mxu0 %vm2075_vm1, %v5312_v33 }
 0x468   : > { %6773 = vst [vmem:[#allocation25_spill] sm:$0xff] %v5933_v28  ;;  %4146 = vmatprep.subr.bf16.mxu0 %v4145_v63  ;;  %v3627_v6 = vpop.f32.mrb[20].mxu1  ;;  %1946 = vrot.lane.b32.xlu1 %v5933_v28, %s4520_s21  ;;  %v4181_v58 = vpack.c.bf16 %v5933_v28, %v5929_v11  ;;  %v917_v11 = vrot.slane %v5690_v21, 7 }
 0x469   : > { %v3628_v39 = vpop.f32.mrb[21].mxu1 }
 0x46a   : > { %v5941_v44 = vadd.f32 %v3628_v39, %v3627_v6 }
 0x46b   : > { %4148 = vmatpush3.bf16.msra.mxu0 %v4145_v63 }
 0x46c   : > { %6774 = vst [vmem:[#allocation26_spill] sm:$0xff] %v5941_v44  ;;  %v3630_v27 = vpop.f32.mrb[22].mxu1  ;;  %1948 = vrot.lane.b32.xlu1 %v5941_v44, %s4520_s21  ;;  %4182 = vmatprep.subr.bf16.mxu0 %v4181_v58 }
 0x46d   : > { %v3631_v46 = vpop.f32.mrb[23].mxu1 }
 0x46e   : > { %v5945_v48 = vadd.f32 %v3631_v46, %v3630_v27  ;;  %3796 = vmatmul.mubr.msk.f32.vlgmr.msra.gmra.mrb[28].mxu0 %vm2075_vm1, %v5370_v61 }
 0x46f   : > { %4184 = vmatpush3.bf16.msra.mxu0 %v4181_v58  ;;  %3841 = vmatprep.mubr.msk.f32.mxu0 %vm2075_vm1, %v5312_v33 }
 0x470   : > { %6775 = vst [vmem:[#allocation27_spill] sm:$0xff] %v5945_v48  ;;  %1950 = vrot.lane.b32.xlu0 %v5945_v48, %s4520_s21  ;;  %v4185_v2 = vpack.c.bf16 %v5945_v48, %v5941_v44  ;;  %v926_v48 = vrot.slane %v5723_v12, 7 }
 0x472   : > { %4186 = vmatprep.subr.bf16.mxu0 %v4185_v2 }
 0x473   : > { %4188 = vmatpush3.bf16.msra.mxu0 %v4185_v2 }
 0x474   : > { %4190 = vmatprep.subr.msk.bf16.mxu0 %vm5395_vm8, %v4522_v50 }
 0x476   : > { %3842 = vmatmul.mubr.msk.f32.vlgmr.msra.gmra.mrb[30].mxu0 %vm2075_vm1, %v5370_v61  ;;  %v4523_v61 = vmov 0.0|0.0  }
 0x477   : > { %4192 = vmatpush3.bf16.msk.msra.mxu0 %vm5395_vm8, %v4522_v50  ;;  %4221 = vmatprep.subr.bf16.mxu1 %v4523_v61 }
 0x478   : > { %4194 = vmatprep.subr.msk.bf16.mxu0 %vm6764_vm3, %v4522_v50 }
 0x47b   : > { %4196 = vmatpush3.bf16.msk.msra.mxu0 %vm6764_vm3, %v4522_v50 }
 0x47c   : > { %4198 = vmatprep.subr.msk.bf16.mxu0 %vm5487_vm10, %v4522_v50 }
 0x47f   : > { %4200 = vmatpush3.bf16.msk.msra.mxu0 %vm5487_vm10, %v4522_v50 }
 0x480   : > { %4202 = vmatprep.subr.msk.bf16.mxu0 %vm5519_vm4, %v4522_v50 }
 0x483   : > { %4204 = vmatpush3.bf16.msk.msra.mxu0 %vm5519_vm4, %v4522_v50 }
 0x484   : > { %4206 = vmatprep.subr.msk.bf16.mxu0 %vm5556_vm0, %v4522_v50 }
 0x487   : > { %4208 = vmatpush3.bf16.msk.msra.mxu0 %vm5556_vm0, %v4522_v50  ;;  %vm837_vm0 = vcmask 1040384  }
 0x488   : > { %4210 = vmatprep.subr.msk.bf16.mxu0 %vm5591_vm14, %v4522_v50  ;;  %v921_v54 = vsel %vm837_vm0, %v917_v11, %v920_v42  ;;  %v931_v29 = vsel %vm837_vm0, %v926_v48, %v930_v62 }
 0x48b   : > { %4212 = vmatpush3.bf16.msk.msra.mxu0 %vm5591_vm14, %v4522_v50  ;;  %vm6780_vm14 = vmmov %vm6761_vm2 }
 0x48c   : > { %4214 = vmatprep.subr.msk.bf16.mxu0 %vm5623_vm9, %v4522_v50 }
 0x48f   : > { %4216 = vmatpush3.bf16.msk.msra.mxu0 %vm5623_vm9, %v4522_v50  ;;  %vm2603_vm9 = vcmask 522240  }
 0x490   : > { %4218 = vmatprep.subr.msk.bf16.mxu0 %vm5685_vm15, %v4522_v50 }
 0x493   : > { %4220 = vmatpush3.bf16.msk.msra.mxu0 %vm5685_vm15, %v4522_v50  ;;  %vm1115_vm15 = vcmask 1046528  }
 0x494   : > { %4239 = vmatprep.subr.bf16.mxu0 %v4523_v61 }
 0x539   : > { %v3786_v9 = vpop.f32.mrb[26].mxu0 }
 0x53a   : > { %v2221_v4 = vpop.f32.mrb[27].mxu0 }
 0x53b   : > { %v4222_v63 = vpack.c.bf16 %v3786_v9, %v2221_v4 }
 0x541   : > { %v3797_v5 = vpop.f32.mrb[28].mxu0 }
 0x542   : > { %v2296_v30 = vpop.f32.mrb[29].mxu0 }
 0x543   : > { %3830 = vmatprep.mubr.f32.mxu1 %v2296_v30 }
 0x544   : > { %3831 = vmatmul.mubr.f32.vlgmr.msra.gmra.mrb[24].mxu1 %v3797_v5 }
 0x545   : > { %4223 = vmatpush3.bf16.msra.mxu1 %v4222_v63  ;;  %3883 = vmatprep.mubr.msk.f32.mxu1 %vm4524_vm5, %v6632_v41 }
 0x546   : > { %4224 = vmatprep.subr.bf16.mxu1 %v4523_v61 }
 0x548   : > { %3884 = vmatmul.mubr.msk.f32.vlgmr.msra.gmra.mrb[26].mxu1 %vm2628_vm11, %v5312_v33 }
 0x549   : > { %v3843_v0 = vpop.f32.mrb[30].mxu0  ;;  %3890 = vmatprep.mubr.msk.f32.mxu1 %vm4524_vm5, %v6632_v41 }
 0x54a   : > { %v2446_v36 = vpop.f32.mrb[31].mxu0 }
 0x54b   : > { %3876 = vmatprep.mubr.f32.mxu0 %v2446_v36 }
 0x54c   : > { %3877 = vmatmul.mubr.f32.vlgmr.msra.gmra.mrb[32].mxu0 %v3843_v0 }
 0x54d   : > { %3916 = vmatprep.mubr.msk.f32.mxu0 %vm4524_vm5, %v6632_v41 }
 0x617   : > { %v3832_v17 = vpop.f32.mrb[24].mxu1 }
 0x618   : > { %v6016_v8 = vadd.f32 %v3832_v17, %v3786_v9  ;;  %v2371_v22 = vpop.f32.mrb[25].mxu1 }
 0x619   : > { %v6018_v35 = vadd.f32 %v2371_v22, %v2221_v4  ;;  %v4225_v6 = vpack.c.bf16 %v3832_v17, %v2371_v22 }
 0x61a   : > { %6776 = vst [vmem:[#allocation28_spill] sm:$0xff] %v6016_v8  ;;  %v2557_v58 = vrot.slane %v6016_v8, 7  ;;  %2536 = vrot.lane.b32.xlu1 %v6016_v8, %s4520_s21 }
 0x61b   : > { %6777 = vst [vmem:[#allocation29_spill] sm:$0xff] %v6018_v35  ;;  %v2556_v39 = vrot.slane %v6018_v35, 7  ;;  %4226 = vmatpush3.bf16.msra.mxu1 %v4225_v6  ;;  %2534 = vrot.lane.b32.xlu0 %v6018_v35, %s4520_s21 }
 0x61c   : > { %4227 = vmatprep.subr.bf16.mxu1 %v4523_v61 }
 0x61d   : > { %v2558_v27 = vsel %vm837_vm0, %v2556_v39, %v2557_v58  ;;  %v2561_v46 = vsub.f32 %v6018_v35, %v2556_v39  ;;  %v918_v35 = vrot.slane %v5707_v51, 7 }
 0x61e   : > { %3891 = vmatmul.mubr.msk.f32.vlgmr.msra.gmra.mrb[28].mxu1 %vm2628_vm11, %v5312_v33  ;;  %v2562_v63 = vsub.f32 %v6016_v8, %v2558_v27  ;;  %v924_v8 = vrot.slane %v5712_v14, 7 }
 0x61f   : > { %v6031_v2 = vpop.f32.mrb[32].mxu0  ;;  %4229 = vmatpush3.bf16.msk.msra.mxu1 %vm5395_vm8, %v4522_v50  ;;  %3909 = vmatprep.mubr.msk.f32.mxu1 %vm4524_vm5, %v6632_v41  ;;  %v2563_v22 = vand.u32 2147483647, %v2561_v46 }
 0x620   : > { %6778 = vst [vmem:[#allocation30_spill] sm:$0xff] %v6031_v2  ;;  %v2566_v9 = vrot.slane %v6031_v2, 7  ;;  %v6039_v4 = vpop.f32.mrb[33].mxu0  ;;  %2548 = vrot.lane.b32.xlu0 %v6031_v2, %s4520_s21  ;;  %4230 = vmatprep.subr.bf16.mxu1 %v4523_v61  ;;  %v2617_v5 = vsel %vm6780_vm14, %v6031_v2, 0.0  ;;  %v2564_v39 = vand.u32 2147483647, %v2562_v63 }
 0x621   : > { %6779 = vst [vmem:[#allocation31_spill] sm:$0xff] %v6039_v4  ;;  %v2565_v30 = vrot.slane %v6039_v4, 7  ;;  %2546 = vrot.lane.b32.xlu1 %v6039_v4, %s4520_s21  ;;  %v4240_v0 = vpack.c.bf16 %v6031_v2, %v6039_v4  ;;  %v2616_v36 = vsel %vm6781_vm12, %v6039_v4, 0.0 }
 0x622   : > { %v6054_v17 = vadd.f32 %v2617_v5, %v2616_v36  ;;  %v2697_v36 = vpop.f32.mrb[26].mxu1 }
 0x623   : > { %4241 = vmatpush3.bf16.msra.mxu0 %v4240_v0  ;;  %4232 = vmatpush3.bf16.msk.msra.mxu1 %vm6764_vm3, %v4522_v50  ;;  %v2567_v6 = vsel %vm837_vm0, %v2565_v30, %v2566_v9  ;;  %v2570_v58 = vmul.f32 %v2565_v30, %v6039_v4  ;;  %v916_v4 = vrot.slane %v5704_v3, 7 }
 0x624   : > { %6782 = vst [vmem:[#allocation32_spill] sm:$0xff] %v6054_v17  ;;  %4233 = vmatprep.subr.bf16.mxu1 %v4523_v61  ;;  %v2571_v27 = vmul.f32 %v6031_v2, %v2567_v6  ;;  %v922_v2 = vrot.slane %v5720_v32, 7 }
 0x625   : > { %v2572_v41 = vmul.f32 %v2570_v58, %v2563_v22  ;;  %v6785_v58 = vmov 0.0  }
 0x626   : > { %3917 = vmatmul.mubr.msk.f32.vlgmr.msra.gmra.mrb[34].mxu0 %vm2628_vm11, %v5312_v33  ;;  %v2573_v5 = vmul.f32 %v2571_v27, %v2564_v39  ;;  %vm3084_vm11 = vcmask 252928  }
 0x627   : > { %4235 = vmatpush3.bf16.msk.msra.mxu1 %vm5487_vm10, %v4522_v50  ;;  %v2597_v46 = vrot.slane %v2572_v41, 1  ;;  %v3885_v41 = vpop.f32.mrb[27].mxu1 }
 0x628   : > { %4236 = vmatprep.subr.bf16.mxu1 %v4523_v61  ;;  %v2598_v9 = vrot.slane %v2573_v5, 1  ;;  %v754_v5 = vpop.permute.xlu1 %753 }
 0x62a   : > { %v2599_v30 = vsel %vm1115_vm15, %v2597_v46, %v2598_v9  ;;  %v2604_v63 = vsel %vm2603_vm9, %v2598_v9, 0.0 }
 0x62b   : > { %4238 = vmatpush3.bf16.msk.msra.mxu1 %vm5519_vm4, %v4522_v50  ;;  %v2602_v33 = vsel %vm6783_vm6, %v2599_v30, 0.0  ;;  %v756_v30 = vpop.permute.xlu0 %755 }
 0x62c   : > { %4242 = vmatprep.subr.bf16.mxu1 %v4523_v61  ;;  %v6075_v0 = vadd.f32 %v2604_v63, %v2602_v33  ;;  %v6115_v46 = vpop.permute.xlu1 %757 }
 0x62e   : > { %6784 = vst [vmem:[#allocation33_spill] sm:$0xff] %v6075_v0 }
 0x62f   : > { %v760_v52 = vpop.permute.xlu0 %759 }
 0x630   : > { %v6117_v9 = vpop.permute.xlu1 %761 }
 0x634   : > { %v6119_v63 = vpop.permute.xlu1 %765 }
 0x638   : > { %v6121_v33 = vpop.permute.xlu1 %769 }
 0x63c   : > { %v6125_v41 = vpop.permute.xlu1 %773 }
 0x640   : > { %v6129_v34 = vpop.permute.xlu1 %779 }
 0x641   : > { %6788 = vst [vmem:[#allocation34_spill] sm:$0xff] %v6129_v34  ;;  %v928_v34 = vrot.slane %v5715_v37, 7 }
 0x6f1   : > { %v2767_v22 = vpop.f32.mrb[28].mxu1 }
 0x6f2   : > { %3910 = vmatmul.mubr.msk.f32.vlgmr.msra.gmra.mrb[30].mxu1 %vm6761_vm2, %v2767_v22  ;;  %v3892_v6 = vpop.f32.mrb[29].mxu1  ;;  %v6133_v22 = vpop.permute.xlu1 %644 }
 0x6f3   : > { %4244 = vmatpush3.bf16.msk.msra.mxu1 %vm5395_vm8, %v4522_v50  ;;  %3935 = vmatprep.mubr.msk.f32.mxu1 %vm4524_vm5, %v6785_v58  ;;  %6789 = vst [vmem:[#allocation35_spill] sm:$0xff] %v6133_v22 }
 0x6f4   : > { %4245 = vmatprep.subr.bf16.mxu1 %v4523_v61 }
 0x6f7   : > { %4247 = vmatpush3.bf16.msk.msra.mxu1 %vm6764_vm3, %v4522_v50 }
 0x6f8   : > { %4248 = vmatprep.subr.bf16.mxu1 %v4523_v61 }
 0x6f9   : > { %v2910_v39 = vpop.f32.mrb[34].mxu0 }
 0x6fa   : > { %v3918_v27 = vpop.f32.mrb[35].mxu0 }
 0x6fb   : > { %4250 = vmatpush3.bf16.msk.msra.mxu1 %vm5487_vm10, %v4522_v50 }
 0x6fc   : > { %4251 = vmatprep.subr.bf16.mxu1 %v4523_v61 }
 0x6ff   : > { %4253 = vmatpush3.bf16.msk.msra.mxu1 %vm5519_vm4, %v4522_v50 }
 0x700   : > { %4254 = vmatprep.subr.bf16.mxu1 %v4523_v61 }
 0x702   : > { %3936 = vmatmul.mubr.msk.f32.vlgmr.msra.gmra.mrb[32].mxu1 %vm6786_vm7, %v2910_v39 }
 0x703   : > { %4256 = vmatpush3.bf16.msk.msra.mxu1 %vm5395_vm8, %v4522_v50  ;;  %3954 = vmatprep.mubr.msk.f32.mxu1 %vm4524_vm5, %v6785_v58  ;;  %vm6787_vm8 = vmmov %vm6761_vm2  ;;  %v6137_v58 = vpop.permute.xlu1 %648 }
 0x704   : > { %4257 = vmatprep.subr.bf16.mxu1 %v4523_v61 }
 0x707   : > { %4259 = vmatpush3.bf16.msk.msra.mxu1 %vm6764_vm3, %v4522_v50  ;;  %v651_v27 = vpop.permute.xlu1 %650  ;;  %vm2582_vm3 = vcmask 515072  }
 0x708   : > { %4260 = vmatprep.subr.bf16.mxu1 %v4523_v61 }
 0x70b   : > { %4262 = vmatpush3.bf16.msk.msra.mxu1 %vm5487_vm10, %v4522_v50  ;;  %v6141_v0 = vpop.permute.xlu1 %652  ;;  %vm676_vm10 = vcmask 7168  }
 0x70c   : > { %4263 = vmatprep.subr.bf16.mxu1 %v4523_v61  ;;  %v6123_v61 = vpop.permute.xlu0 %763  ;;  %v781_v44 = vsel %vm676_vm10, %v750_v56, %v752_v53  ;;  %v919_v53 = vsel %vm837_vm0, %v916_v4, %v918_v35  ;;  %v782_v28 = vsel %vm676_vm10, %v754_v5, %v756_v30  ;;  %v932_v56 = vrot.slane %v5728_v59, 7 }
 0x70d   : > { %v806_v13 = vmul.f32 %v5690_v21, %v781_v44  ;;  %v6170_v44 = vmul.f32 %v5707_v51, %v754_v5  ;;  %v925_v30 = vsel %vm837_vm0, %v920_v42, %v924_v8  ;;  %v6178_v43 = vmul.f32 %v5693_v15, %v782_v28 }
 0x70e   : > { %v783_v28 = vsel %vm676_vm10, %v6115_v46, %v760_v52  ;;  %v678_v38 = vsel %vm676_vm10, %v6137_v58, %v651_v27  ;;  %v6196_v5 = vsel %vm837_vm0, %v930_v62, %v934_v57  ;;  %v962_v42 = vmul.f32 %v5704_v3, %v916_v4 }
 0x70f   : > { %4265 = vmatpush3.bf16.msk.msra.mxu1 %vm5519_vm4, %v4522_v50  ;;  %v6146_v60 = vpop.permute.xlu1 %656  ;;  %6792 = vst [vmem:[#allocation38_spill] sm:$0xff] %v6170_v44  ;;  %6795 = vst [vmem:[#allocation41_spill] sm:$0xff] %v6196_v5  ;;  %v6207_v52 = vmul.f32 %v5720_v32, %v6115_v46  ;;  %v963_v27 = vmul.f32 %v5690_v21, %v917_v11  ;;  %v6799_v3 = vrot.slane %v5164_v16, 7  ;;  %vm1042_vm4 = vcmask 1039360  }
 0x710   : > { %v6127_v50 = vpop.permute.xlu0 %767  ;;  %v965_v21 = vmul.f32 %v5693_v15, %v921_v54  ;;  %v784_v54 = vsel %vm676_vm10, %v6117_v9, %v6123_v61  ;;  %v844_v15 = vrot.slane %v5197_v24, 7  ;;  %v6257_v61 = vmul.f32 %v5736_v10, %v931_v29 }
 0x711   : > { %v6272_v29 = vmul.f32 %v5736_v10, %v6119_v63 }
 0x712   : > { %3955 = vmatmul.mubr.msk.f32.vlgmr.msra.gmra.mrb[30].mxu1 %vm6787_vm8, %v2697_v36 }
 0x713   : > { %v6172_v7 = vpop.permute.xlu1 %660 }
 0x714   : > { %v6131_v36 = vpop.permute.xlu0 %771  ;;  %6793 = vst [vmem:[#allocation39_spill] sm:$0xff] %v6172_v7  ;;  %v933_v7 = vsel %vm837_vm0, %v928_v34, %v932_v56 }
 0x718   : > { %v6135_v6 = vpop.permute.xlu0 %775 }
 0x719   : > { %v787_v10 = vsel %vm676_vm10, %v6125_v41, %v6135_v6  ;;  %v6804_v6 = vld [vmem:[#allocation35_spill] sm:$0xff] }
 0x71c   : > { %v6139_v39 = vpop.permute.xlu0 %777 }
 0x71d   : > { %6790 = vst [vmem:[#allocation36_spill] sm:$0xff] %v6139_v39  ;;  %v923_v39 = vsel %vm837_vm0, %v918_v35, %v922_v2  ;;  %v927_v35 = vsel %vm837_vm0, %v922_v2, %v926_v48  ;;  %v929_v2 = vsel %vm837_vm0, %v924_v8, %v928_v34  ;;  %v841_v48 = vsel %vm837_vm0, %v838_v31, %v840_v20 }
 0x71e   : > { %v6798_v34 = vrot.slane %v5749_v40, 7  ;;  %v704_v8 = vsub.f32 %v5164_v16, %v678_v38  ;;  %v6230_v11 = vmul.f32 %v5720_v32, %v923_v39 }
 0x720   : > { %v647_v17 = vpop.permute.xlu0 %646  ;;  %v6213_v62 = vsel %vm837_vm0, %v934_v57, %v6798_v34  ;;  %v964_v57 = vmul.f32 %v5707_v51, %v919_v53  ;;  %v6240_v34 = vmul.f32 %v5723_v12, %v927_v35  ;;  %v720_v39 = vand.u32 2147483647, %v704_v8 }
 0x721   : > { %v677_v25 = vsel %vm676_vm10, %v6133_v22, %v647_v17  ;;  %v839_v22 = vrot.slane %v5156_v55, 7  ;;  %v846_v35 = vrot.slane %v5175_v26, 7 }
 0x722   : > { %v702_v44 = vsub.f32 %v5156_v55, %v677_v25  ;;  %v6796_v25 = vrot.slane %v5731_v18, 7 }
 0x723   : > { %v843_v4 = vsel %vm837_vm0, %v839_v22, %v6799_v3  ;;  %v885_v51 = vsub.f32 %v5156_v55, %v839_v22  ;;  %v6260_v55 = vmul.f32 %v5728_v59, %v933_v7  ;;  %v6264_v22 = vmul.f32 %v5723_v12, %v6117_v9 }
 0x724   : > { %v655_v23 = vpop.permute.xlu0 %654  ;;  %v887_v32 = vsub.f32 %v5164_v16, %v843_v4  ;;  %v845_v7 = vsel %vm837_vm0, %v840_v20, %v844_v15  ;;  %v824_v4 = vmul.f32 %v6178_v43, %v720_v39  ;;  %v701_v39 = vsub.f32 %v5160_v45, %v6804_v6 }
 0x725   : > { %v679_v46 = vsel %vm676_vm10, %v6141_v0, %v655_v23  ;;  %v6237_v23 = vmul.f32 %v5712_v14, %v925_v30 }
 0x726   : > { %v903_v3 = vand.u32 2147483647, %v887_v32 }
 0x728   : > { %v6151_v49 = vpop.permute.xlu0 %658 }
 0x729   : > { %v680_v30 = vsel %vm676_vm10, %v6146_v60, %v6151_v49 }
 0x72a   : > { %v708_v9 = vsub.f32 %v5179_v1, %v680_v30 }
 0x72c   : > { %v6180_v17 = vpop.permute.xlu0 %662  ;;  %v724_v30 = vand.u32 2147483647, %v708_v9  ;;  %v6806_v9 = vld [vmem:[#allocation11_spill] sm:$0xff] }
 0x72d   : > { %6794 = vst [vmem:[#allocation40_spill] sm:$0xff] %v6180_v17  ;;  %v6201_v17 = vsel %vm837_vm0, %v932_v56, %v6796_v25  ;;  %v810_v56 = vmul.f32 %v5712_v14, %v783_v28  ;;  %v718_v25 = vand.u32 2147483647, %v702_v44  ;;  %v884_v44 = vsub.f32 %v5160_v45, %v838_v31 }
 0x72e   : > { %6797 = vst [vmem:[#allocation42_spill] sm:$0xff] %v6201_v17  ;;  %v6218_v17 = vpop.permute.xlu1 %664  ;;  %v886_v28 = vsub.f32 %v5171_v47, %v841_v48  ;;  %v706_v31 = vsub.f32 %v5175_v26, %v679_v46  ;;  %v6250_v14 = vmul.f32 %v5715_v37, %v929_v2  ;;  %v786_v46 = vsel %vm676_vm10, %v6121_v33, %v6131_v36 }
 0x72f   : > { %v822_v53 = vmul.f32 %v806_v13, %v718_v25  ;;  %v812_v13 = vmul.f32 %v5715_v37, %v784_v54  ;;  %v900_v49 = vand.u32 2147483647, %v884_v44  ;;  %v901_v25 = vand.u32 2147483647, %v885_v51 }
 0x730   : > { %v667_v40 = vpop.permute.xlu0 %666  ;;  %v902_v8 = vand.u32 2147483647, %v886_v28  ;;  %v785_v37 = vsel %vm676_vm10, %v6119_v63, %v6127_v50  ;;  %v722_v12 = vand.u32 2147483647, %v706_v31  ;;  %v6802_v28 = vrot.slane %v5164_v16, 7  ;;  %v6803_v50 = vld [vmem:[#allocation10_spill] sm:$0xff] }
 0x731   : > { %v848_v43 = vrot.slane %v6803_v50, 7  ;;  %v888_v54 = vsub.f32 %v5197_v24, %v845_v7  ;;  %v978_v51 = vmul.f32 %v962_v42, %v900_v49  ;;  %v814_v32 = vmul.f32 %v5728_v59, %v785_v37 }
 0x732   : > { %v6267_v2 = vpop.permute.xlu1 %668  ;;  %v847_v63 = vsel %vm837_vm0, %v6802_v28, %v846_v35  ;;  %v6295_v36 = vmul.f32 %v964_v57, %v902_v8  ;;  %v979_v31 = vmul.f32 %v963_v27, %v901_v25  ;;  %v6303_v16 = vmul.f32 %v5731_v18, %v786_v46 }
 0x733   : > { %v826_v7 = vmul.f32 %v810_v56, %v722_v12  ;;  %v6309_v42 = vmul.f32 %v5744_v19, %v787_v10  ;;  %v682_v59 = vsel %vm676_vm10, %v6218_v17, %v667_v40  ;;  %v850_v45 = vrot.slane %v5179_v1, 7 }
 0x734   : > { %v671_v48 = vpop.permute.xlu0 %670  ;;  %v6800_v20 = vld [vmem:[#allocation40_spill] sm:$0xff]  ;;  %v889_v27 = vsub.f32 %v5175_v26, %v847_v63  ;;  %v904_v49 = vand.u32 2147483647, %v888_v54  ;;  %v1116_v8 = vrot.slane %v978_v51, 1  ;;  %v1117_v25 = vrot.slane %v6295_v36, 1 }
 0x735   : > { %v717_v56 = vand.u32 2147483647, %v701_v39  ;;  %v1119_v37 = vrot.slane %v979_v31, 1  ;;  %v712_v46 = vsub.f32 %v6806_v9, %v682_v59  ;;  %v828_v26 = vmul.f32 %v812_v13, %v724_v30 }
 0x736   : > { %v6306_v28 = vpop.permute.xlu1 %672  ;;  %v905_v36 = vand.u32 2147483647, %v889_v27  ;;  %v6338_v13 = vmul.f32 %v6230_v11, %v904_v49 }
 0x737   : > { %v728_v27 = vand.u32 2147483647, %v712_v46 }
 0x738   : > { %v675_v57 = vpop.permute.xlu0 %674 }
 0x73a   : > { %v6322_v10 = vpop.permute.xlu1 %1920 }
 0x73c   : > { %v6327_v54 = vpop.permute.xlu0 %1922 }
 0x73e   : > { %v6350_v49 = vpop.permute.xlu1 %1924 }
 0x7d5   : > { %v6225_v5 = vpop.f32.mrb[32].mxu1 }
 0x7d6   : > { %3067 = vrot.lane.b32.xlu0 %v6225_v5, %s4520_s21  ;;  %v3937_v38 = vpop.f32.mrb[33].mxu1  ;;  %v3076_v31 = vrot.slane %v6225_v5, 7 }
 0x7d7   : > { %v6801_v38 = vld [vmem:[#allocation39_spill] sm:$0xff] }
 0x7d8   : > { %v681_v44 = vsel %vm676_vm10, %v6801_v38, %v6800_v20  ;;  %v3078_v46 = vmul.f32 %v3076_v31, %v6225_v5  ;;  %v1947_v31 = vpop.permute.xlu1 %1946 }
 0x7da   : > { %1012 = vrot.lane.b32.xlu0 %v822_v53, %s4525_s6  ;;  %v6300_v53 = vmul.f32 %v965_v21, %v903_v3  ;;  %v849_v21 = vsel %vm837_vm0, %v844_v15, %v848_v43  ;;  %v703_v3 = vsub.f32 %v5171_v47, %v6137_v58  ;;  %v683_v15 = vsel %vm676_vm10, %v6267_v2, %v671_v48 }
 0x7db   : > { %v851_v47 = vsel %vm837_vm0, %v846_v35, %v850_v45  ;;  %v890_v58 = vsub.f32 %v6803_v50, %v849_v21  ;;  %v1118_v48 = vsel %vm1115_vm15, %v1116_v8, %v1117_v25  ;;  %v705_v35 = vsub.f32 %v5197_v24, %v6141_v0  ;;  %v6809_v21 = vld [vmem:[#allocation16_spill] sm:$0xff]  ;;  %v6352_v8 = vpop.permute.xlu0 %1926 }
 0x7dc   : > { %v6676_v40 = vrot.slane %v6300_v53, 1  ;;  %v719_v30 = vand.u32 2147483647, %v703_v3 }
 0x7dd   : > { %v906_v3 = vand.u32 2147483647, %v890_v58  ;;  %v832_v58 = vmul.f32 %v6303_v16, %v728_v27 }
 0x7de   : > { %1016 = vrot.lane.b32.xlu0 %v824_v4, %s4525_s6  ;;  %v6805_v4 = vld [vmem:[#allocation9_spill] sm:$0xff]  ;;  %v1121_v59 = vsel %vm1115_vm15, %v1119_v37, %v6676_v40  ;;  %v1122_v37 = vrot.slane %v6338_v13, 1 }
 0x7df   : > { %v710_v20 = vsub.f32 %v6805_v4, %v681_v44  ;;  %v6807_v44 = vld [vmem:[#allocation14_spill] sm:$0xff]  ;;  %v854_v0 = vrot.slane %v6805_v4, 7 }
 0x7e0   : > { %v6677_v63 = vrot.slane %v6807_v44, 7 }
 0x7e1   : > { %v726_v12 = vand.u32 2147483647, %v710_v20  ;;  %v6808_v20 = vld [vmem:[#allocation37_spill] sm:$0xff] }
 0x7e2   : > { %1020 = vrot.lane.b32.xlu0 %v826_v7, %s4525_s6  ;;  %v821_v7 = vmul.f32 %v6808_v20, %v717_v56  ;;  %v853_v24 = vsel %vm837_vm0, %v848_v43, %v6677_v63  ;;  %v891_v56 = vsub.f32 %v5179_v1, %v851_v47  ;;  %v6811_v20 = vld [vmem:[#allocation13_spill] sm:$0xff]  ;;  %v1162_v63 = vadd.f32 %v1121_v59, %v1118_v48 }
 0x7e3   : > { %v856_v40 = vrot.slane %v6811_v20, 7  ;;  %v707_v1 = vsub.f32 %v6803_v50, %v6146_v60  ;;  %v6812_v48 = vld [vmem:[#allocation21_spill] sm:$0xff]  ;;  %v6384_v60 = vmul.f32 %v6240_v34, %v906_v3  ;;  %v1123_v50 = vsel %vm1115_vm15, %v1117_v25, %v1122_v37  ;;  %v6815_v34 = vld [vmem:[#allocation12_spill] sm:$0xff] }
 0x7e4   : > { %v1933_v59 = vsub.f32 %v6812_v48, %v6327_v54  ;;  %v709_v54 = vsub.f32 %v6807_v44, %v6801_v38  ;;  %v6816_v3 = vld [vmem:[#allocation25_spill] sm:$0xff]  ;;  %v858_v38 = vrot.slane %v6806_v9, 7 }
 0x7e5   : > { %v6329_v51 = vpop.f32.mrb[30].mxu1 }
 0x7e6   : > { %v3072_v6 = vrot.slane %v6329_v51, 7  ;;  %v3956_v39 = vpop.f32.mrb[31].mxu1  ;;  %3061 = vrot.lane.b32.xlu1 %v6329_v51, %s4520_s21  ;;  %1024 = vrot.lane.b32.xlu0 %v828_v26, %s4525_s6  ;;  %v714_v26 = vsub.f32 %v6809_v21, %v683_v15  ;;  %v721_v15 = vand.u32 2147483647, %v705_v35  ;;  %v855_v35 = vsel %vm837_vm0, %v850_v45, %v854_v0  ;;  %v6814_v45 = vld [vmem:[#allocation36_spill] sm:$0xff] }
 0x7e7   : > { %v830_v39 = vmul.f32 %v814_v32, %v726_v12  ;;  %v6362_v32 = vmul.f32 %v6237_v23, %v905_v36  ;;  %v684_v23 = vsel %vm676_vm10, %v6306_v28, %v675_v57  ;;  %v6375_v36 = vpop.permute.xlu0 %1944  ;;  %v6813_v57 = vld [vmem:[#allocation34_spill] sm:$0xff] }
 0x7e8   : > { %v3074_v11 = vsub.f32 %v6329_v51, %v3072_v6  ;;  %v6810_v6 = vld [vmem:[#allocation38_spill] sm:$0xff]  ;;  %v730_v47 = vand.u32 2147483647, %v714_v26  ;;  %v788_v27 = vsel %vm676_vm10, %v6814_v45, %v6813_v57  ;;  %v825_v26 = vmul.f32 %v6207_v52, %v721_v15 }
 0x7e9   : > { %v823_v43 = vmul.f32 %v6810_v6, %v719_v30  ;;  %v892_v30 = vsub.f32 %v6807_v44, %v853_v24  ;;  %v1124_v16 = vrot.slane %v6362_v32, 1  ;;  %v723_v24 = vand.u32 2147483647, %v707_v1 }
 0x7ea   : > { %1010 = vrot.lane.b32.xlu1 %v821_v7, %s4525_s6  ;;  %1028 = vrot.lane.b32.xlu0 %v830_v39, %s4525_s6  ;;  %v3075_v12 = vand.u32 2147483647, %v3074_v11  ;;  %v907_v39 = vand.u32 2147483647, %v891_v56  ;;  %v1163_v11 = vadd.f32 %v1162_v63, %v1123_v50  ;;  %v716_v56 = vsub.f32 %v6815_v34, %v684_v23  ;;  %v6419_v23 = vpop.permute.xlu1 %1948 }
 0x7eb   : > { %v834_v25 = vmul.f32 %v6309_v42, %v730_v47  ;;  %v6817_v32 = vrot.slane %v6807_v44, 7  ;;  %v893_v52 = vsub.f32 %v6805_v4, %v855_v35  ;;  %v908_v63 = vand.u32 2147483647, %v892_v30  ;;  %v6416_v47 = vld [vmem:[%s4739_s28 + $0x78] sm:$0xff] }
 0x7ec   : > { %v6371_v7 = vmul.f32 %v3078_v46, %v3075_v12  ;;  %v1957_v12 = vmul.f32 %v6816_v3, %v1947_v31  ;;  %v1951_v46 = vpop.permute.xlu0 %1950  ;;  %v1937_v15 = vand.u32 2147483647, %v1933_v59  ;;  %v6818_v42 = vrot.slane %v6300_v53, 1  ;;  %v6819_v31 = vld [vmem:[#allocation15_spill] sm:$0xff] }
 0x7ed   : > { %v857_v6 = vsel %vm837_vm0, %v6817_v32, %v856_v40  ;;  %v1126_v44 = vrot.slane %v6384_v60, 1  ;;  %v820_v4 = vmul.f32 %v6416_v47, %v788_v27  ;;  %v860_v35 = vrot.slane %v6819_v31, 7  ;;  %v6821_v32 = vld [vmem:[#allocation23_spill] sm:$0xff] }
 0x7ee   : > { %1014 = vrot.lane.b32.xlu1 %v823_v43, %s4525_s6  ;;  %1032 = vrot.lane.b32.xlu0 %v832_v58, %s4525_s6  ;;  %v6409_v43 = vmul.f32 %v6250_v14, %v907_v39  ;;  %v1125_v1 = vsel %vm1115_vm15, %v6818_v42, %v1124_v16  ;;  %v725_v58 = vand.u32 2147483647, %v709_v54  ;;  %v711_v14 = vsub.f32 %v6811_v20, %v6218_v17  ;;  %v4380_v54 = vld [vmem:[%s4739_s28 + $0x50] sm:$0xff]  ;;  %v6823_v42 = vld [vmem:[#allocation28_spill] sm:$0xff] }
 0x7ef   : > { %v1164_v30 = vadd.f32 %v1163_v11, %v1125_v1  ;;  %v732_v39 = vand.u32 2147483647, %v716_v56  ;;  %v1961_v53 = vmul.f32 %v1957_v12, %v1937_v15  ;;  %v827_v59 = vmul.f32 %v6264_v22, %v723_v24  ;;  %v2537_v56 = vpop.permute.xlu1 %2536 }
 0x7f0   : > { %v6425_v50 = vpop.permute.xlu0 %2534  ;;  %v859_v60 = vsel %vm837_vm0, %v854_v0, %v858_v38  ;;  %v894_v57 = vsub.f32 %v6811_v20, %v857_v6  ;;  %v909_v27 = vand.u32 2147483647, %v893_v52  ;;  %v1935_v11 = vsub.f32 %v6821_v32, %v6352_v8 }
 0x7f1   : > { %v6436_v17 = vmul.f32 %v6257_v61, %v908_v63  ;;  %v1127_v22 = vsel %vm1115_vm15, %v1122_v37, %v1126_v44  ;;  %v1128_v0 = vrot.slane %v6409_v43, 1  ;;  %v815_v24 = vmul.f32 %v4380_v54, %v6121_v33  ;;  %v6822_v37 = vld [vmem:[#allocation27_spill] sm:$0xff] }
 0x7f2   : > { %1018 = vrot.lane.b32.xlu1 %v825_v26, %s4525_s6  ;;  %1036 = vrot.lane.b32.xlu0 %v834_v25, %s4525_s6  ;;  %v6820_v26 = vld [vmem:[#allocation41_spill] sm:$0xff]  ;;  %v829_v12 = vmul.f32 %v6272_v29, %v725_v58  ;;  %v861_v8 = vsel %vm837_vm0, %v856_v40, %v860_v35  ;;  %v1165_v6 = vadd.f32 %v1164_v30, %v1127_v22  ;;  %v727_v61 = vand.u32 2147483647, %v711_v14  ;;  %v6824_v30 = vld [vmem:[#allocation18_spill] sm:$0xff]  ;;  %v4382_v14 = vld [vmem:[%s4739_s28 + $0x58] sm:$0xff] }
 0x7f3   : > { %v972_v25 = vmul.f32 %v4380_v54, %v6820_v26  ;;  %v713_v13 = vsub.f32 %v6819_v31, %v6267_v2  ;;  %v1959_v52 = vmul.f32 %v6822_v37, %v1951_v46  ;;  %v836_v63 = vmul.f32 %v820_v4, %v732_v39  ;;  %v4381_v4 = vld [vmem:[%s4739_s28 + $0x60] sm:$0xff]  ;;  %v6825_v39 = vld [vmem:[#allocation42_spill] sm:$0xff] }
 0x7f4   : > { %v2549_v33 = vpop.permute.xlu0 %2548  ;;  %v862_v15 = vrot.slane %v6809_v21, 7  ;;  %v895_v29 = vsub.f32 %v6806_v9, %v859_v60  ;;  %v910_v43 = vand.u32 2147483647, %v894_v57  ;;  %v6455_v20 = vmul.f32 %v6260_v55, %v909_v27  ;;  %v6826_v57 = vld [vmem:[#allocation30_spill] sm:$0xff] }
 0x7f5   : > { %v1939_v40 = vand.u32 2147483647, %v1935_v11  ;;  %v2541_v1 = vsub.f32 %v6823_v42, %v2537_v56  ;;  %v1129_v2 = vsel %vm1115_vm15, %v1124_v16, %v1128_v0  ;;  %v1130_v46 = vrot.slane %v6436_v17, 1 }
 0x7f6   : > { %1022 = vrot.lane.b32.xlu1 %v827_v59, %s4525_s6  ;;  %2008 = vrot.lane.b32.xlu0 %v1961_v53, %s4525_s6  ;;  %v817_v58 = vmul.f32 %v4381_v4, %v6125_v41  ;;  %v864_v9 = vrot.slane %v6824_v30, 7  ;;  %v973_v55 = vmul.f32 %v4382_v14, %v6825_v39  ;;  %v1166_v53 = vadd.f32 %v1165_v6, %v1129_v2  ;;  %v6827_v41 = vld [vmem:[#allocation20_spill] sm:$0xff] }
 0x7f7   : > { %v729_v59 = vand.u32 2147483647, %v713_v13  ;;  %v1963_v60 = vmul.f32 %v1959_v52, %v1939_v40  ;;  %v2553_v27 = vmul.f32 %v6826_v57, %v2549_v33  ;;  %v831_v54 = vmul.f32 %v815_v24, %v727_v61 }
 0x7f8   : > { %v863_v26 = vsel %vm837_vm0, %v858_v38, %v862_v15  ;;  %v896_v16 = vsub.f32 %v6819_v31, %v861_v8  ;;  %v911_v11 = vand.u32 2147483647, %v895_v29  ;;  %v6470_v17 = vmul.f32 %v972_v25, %v910_v43  ;;  %v4383_v25 = vld [vmem:[%s4739_s28 + $0x70] sm:$0xff] }
 0x7f9   : > { %v1932_v22 = vsub.f32 %v6827_v41, %v6322_v10  ;;  %v2543_v56 = vand.u32 2147483647, %v2541_v1  ;;  %v1132_v6 = vrot.slane %v6455_v20, 1  ;;  %v6828_v24 = vrot.slane %v5744_v19, 7  ;;  %v6837_v19 = vld [vmem:[#allocation31_spill] sm:$0xff] }
 0x7fa   : > { %1026 = vrot.lane.b32.xlu1 %v829_v12, %s4525_s6  ;;  %1040 = vrot.lane.b32.xlu0 %v836_v63, %s4525_s6  ;;  %v1131_v12 = vsel %vm1115_vm15, %v1126_v44, %v1130_v46  ;;  %v6829_v38 = vrot.slane %v5731_v18, 7  ;;  %v942_v61 = vrot.slane %v4383_v25, 7  ;;  %v974_v13 = vmul.f32 %v4381_v4, %v6213_v62  ;;  %v6830_v63 = vld [vmem:[#allocation24_spill] sm:$0xff] }
 0x7fb   : > { %v1167_v10 = vadd.f32 %v1166_v53, %v1131_v12  ;;  %v715_v52 = vsub.f32 %v6824_v30, %v6306_v28  ;;  %v1956_v33 = vmul.f32 %v6830_v63, %v6375_v36  ;;  %v2555_v44 = vmul.f32 %v2553_v27, %v2543_v56  ;;  %v4384_v53 = vld [vmem:[%s4739_s28 + $0x68] sm:$0xff] }
 0x7fc   : > { %v941_v8 = vsel %vm837_vm0, %v6829_v38, %v6828_v24  ;;  %v833_v29 = vmul.f32 %v817_v58, %v729_v59  ;;  %v865_v43 = vsel %vm837_vm0, %v860_v35, %v864_v9  ;;  %v866_v18 = vrot.slane %v6815_v34, 7  ;;  %v6833_v59 = vld [vmem:[#allocation22_spill] sm:$0xff]  ;;  %v6836_v38 = vld [vmem:[#allocation29_spill] sm:$0xff] }
 0x7fd   : > { %v897_v20 = vsub.f32 %v6809_v21, %v863_v26  ;;  %v912_v40 = vand.u32 2147483647, %v896_v16  ;;  %v1936_v62 = vand.u32 2147483647, %v1932_v22  ;;  %v989_v28 = vmul.f32 %v973_v55, %v911_v11  ;;  %v6831_v21 = vld [vmem:[#allocation19_spill] sm:$0xff]  ;;  %v6834_v26 = vld [vmem:[#allocation26_spill] sm:$0xff] }
 0x7fe   : > { %1030 = vrot.lane.b32.xlu1 %v831_v54, %s4525_s6  ;;  %2012 = vrot.lane.b32.xlu0 %v1963_v60, %s4525_s6  ;;  %v1133_v36 = vsel %vm1115_vm15, %v1128_v0, %v1132_v6  ;;  %v1134_v42 = vrot.slane %v6470_v17, 1  ;;  %v944_v31 = vrot.slane %v6416_v47, 7  ;;  %v819_v35 = vmul.f32 %v4383_v25, %v6814_v45  ;;  %v2547_v17 = vpop.permute.xlu1 %2546 }
 0x7ff   : > { %v1168_v1 = vadd.f32 %v1167_v10, %v1133_v36  ;;  %v731_v2 = vand.u32 2147483647, %v715_v52  ;;  %v1960_v4 = vmul.f32 %v1956_v33, %v1936_v62  ;;  %v6832_v58 = vrot.slane %v6831_v21, 7 }
 0x800   : > { %v867_v14 = vsel %vm837_vm0, %v862_v15, %v866_v18  ;;  %v898_v39 = vsub.f32 %v6824_v30, %v865_v43  ;;  %v913_v55 = vand.u32 2147483647, %v897_v20  ;;  %v975_v0 = vmul.f32 %v4384_v53, %v941_v8 }
 0x801   : > { %v943_v9 = vsel %vm837_vm0, %v6832_v58, %v942_v61  ;;  %v1934_v60 = vsub.f32 %v6833_v59, %v6350_v49  ;;  %v990_v57 = vmul.f32 %v974_v13, %v912_v40  ;;  %v1135_v45 = vsel %vm1115_vm15, %v1130_v46, %v1134_v42 }
 0x802   : > { %1034 = vrot.lane.b32.xlu1 %v833_v29, %s4525_s6  ;;  %2578 = vrot.lane.b32.xlu0 %v2555_v44, %s4525_s6  ;;  %v1136_v27 = vrot.slane %v989_v28, 1  ;;  %v1169_v54 = vadd.f32 %v1168_v1, %v1135_v45  ;;  %v1958_v16 = vmul.f32 %v6834_v26, %v6419_v23  ;;  %v835_v11 = vmul.f32 %v819_v35, %v731_v2  ;;  %v6838_v35 = vld [vmem:[#allocation17_spill] sm:$0xff] }
 0x803   : > { %v6835_v15 = vmov %v6828_v24  ;;  %v899_v22 = vsub.f32 %v6815_v34, %v867_v14  ;;  %v914_v56 = vand.u32 2147483647, %v898_v39  ;;  %v976_v49 = vmul.f32 %v4383_v25, %v943_v9 }
 0x804   : > { %v945_v30 = vsel %vm837_vm0, %v6835_v15, %v944_v31  ;;  %v991_v12 = vmul.f32 %v975_v0, %v913_v55  ;;  %v1938_v24 = vand.u32 2147483647, %v1934_v60  ;;  %v2540_v46 = vsub.f32 %v6836_v38, %v6425_v50 }
 0x805   : > { %v1137_v8 = vsel %vm1115_vm15, %v1132_v6, %v1136_v27  ;;  %v1138_v23 = vrot.slane %v990_v57, 1  ;;  %v2552_v10 = vmul.f32 %v2547_v17, %v6837_v19  ;;  %v915_v52 = vand.u32 2147483647, %v899_v22 }
 0x806   : > { %2006 = vrot.lane.b32.xlu1 %v1960_v4, %s4525_s6  ;;  %v1170_v61 = vadd.f32 %v1169_v54, %v1137_v8  ;;  %v1962_v13 = vmul.f32 %v1958_v16, %v1938_v24  ;;  %v977_v33 = vmul.f32 %v6416_v47, %v945_v30  ;;  %v2542_v34 = vand.u32 2147483647, %v2540_v46 }
 0x807   : > { %v992_v25 = vmul.f32 %v976_v49, %v914_v56  ;;  %v1139_v44 = vsel %vm1115_vm15, %v1134_v42, %v1138_v23  ;;  %v1140_v29 = vrot.slane %v991_v12, 1  ;;  %v1965_v19 = vrot.slane %v6812_v48, 7 }
 0x808   : > { %v1171_v50 = vadd.f32 %v1170_v61, %v1139_v44  ;;  %v2554_v43 = vmul.f32 %v2552_v10, %v2542_v34  ;;  %v993_v6 = vmul.f32 %v977_v33, %v915_v52  ;;  %v1967_v61 = vrot.slane %v6833_v59, 7 }
 0x809   : > { %v1141_v18 = vsel %vm1115_vm15, %v1136_v27, %v1140_v29  ;;  %v1142_v20 = vrot.slane %v992_v25, 1  ;;  %v1969_v52 = vrot.slane %v6821_v32, 7  ;;  %v1986_v25 = vrot.slane %v6834_v26, 7 }
 0x80a   : > { %1038 = vrot.lane.b32.xlu1 %v835_v11, %s4525_s6  ;;  %v1172_v40 = vadd.f32 %v1171_v50, %v1141_v18  ;;  %v1144_v28 = vrot.slane %v993_v6, 1  ;;  %v1964_v44 = vrot.slane %v6827_v41, 7  ;;  %v1968_v50 = vsel %vm837_vm0, %v1965_v19, %v1967_v61 }
 0x80b   : > { %v1143_v62 = vsel %vm1115_vm15, %v1138_v23, %v1142_v20  ;;  %v1175_v1 = vsel %vm1115_vm15, %v1142_v20, 0.0  ;;  %v1984_v18 = vrot.slane %v6816_v3, 7  ;;  %v1988_v20 = vrot.slane %v6822_v37, 7 }
 0x80c   : > { %v1173_v47 = vadd.f32 %v1172_v40, %v1143_v62  ;;  %v1145_v36 = vsel %vm1115_vm15, %v1140_v29, %v1144_v28  ;;  %v1177_v2 = vsel %vm1115_vm15, %v1144_v28, 0.0  ;;  %v1966_v40 = vsel %vm837_vm0, %v1964_v44, %v1965_v19 }
 0x80e   : > { %2010 = vrot.lane.b32.xlu1 %v1962_v13, %s4525_s6  ;;  %v1174_v31 = vadd.f32 %v1173_v47, %v1145_v36  ;;  %v1970_v36 = vsel %vm837_vm0, %v1967_v61, %v1969_v52 }
 0x810   : > { %v1176_v42 = vadd.f32 %v1175_v1, %v1174_v31  ;;  %v1983_v31 = vrot.slane %v6830_v63, 7  ;;  %v1987_v1 = vsel %vm837_vm0, %v1984_v18, %v1986_v25 }
 0x812   : > { %2576 = vrot.lane.b32.xlu1 %v2554_v43, %s4525_s6  ;;  %v1178_v4 = vadd.f32 %v1177_v2, %v1176_v42  ;;  %v1977_v42 = vsub.f32 %v6833_v59, %v1968_v50  ;;  %v2063_v50 = vadd.f32 %v6816_v3, %v6830_v63 }
 0x821   : > { %619 = vadd.xlane.f32.xlu0 %v6838_v35 }
 0x825   : > { %1179 = vadd.xlane.f32.xlu0 %v1178_v4  ;;  %v1985_v4 = vsel %vm837_vm0, %v1983_v31, %v1984_v18 }
 0x848   : > { %v3068_v21 = vpop.permute.xlu0 %3067 }
 0x849   : > { %v3070_v53 = vmul.f32 %v3068_v21, %v6225_v5  ;;  %v1989_v21 = vsel %vm837_vm0, %v1986_v25, %v1988_v20 }
 0x84c   : > { %v1013_v58 = vpop.permute.xlu0 %1012 }
 0x84d   : > { %v1067_v54 = vsel %vm1042_vm4, %v1013_v58, 0.0 }
 0x850   : > { %v1017_v9 = vpop.permute.xlu0 %1016 }
 0x854   : > { %v1021_v14 = vpop.permute.xlu0 %1020 }
 0x855   : > { %v1073_v24 = vsel %vm1042_vm4, %v1021_v14, 0.0 }
 0x858   : > { %v3062_v39 = vpop.permute.xlu1 %3061  ;;  %v1025_v60 = vpop.permute.xlu0 %1024 }
 0x859   : > { %v3064_v55 = vsub.f32 %v6329_v51, %v3062_v39  ;;  %v1070_v51 = vsel %vm1042_vm4, %v1017_v9, 0.0  ;;  %v1076_v10 = vsel %vm1042_vm4, %v1025_v60, 0.0  ;;  %v1996_v39 = vmul.f32 %v6834_v26, %v1987_v1 }
 0x85b   : > { %v3065_v0 = vand.u32 2147483647, %v3064_v55  ;;  %v1975_v55 = vsub.f32 %v6827_v41, %v1964_v44 }
 0x85c   : > { %v1011_v57 = vpop.permute.xlu1 %1010  ;;  %v1029_v30 = vpop.permute.xlu0 %1028 }
 0x85d   : > { %v3071_v45 = vmul.f32 %v3070_v53, %v3065_v0  ;;  %v1043_v27 = vsel %vm1042_vm4, %v1011_v57, %v1013_v58  ;;  %v1079_v62 = vsel %vm1042_vm4, %v1029_v30, 0.0  ;;  %v1976_v58 = vsub.f32 %v6812_v48, %v1966_v40 }
 0x85e   : > { %v1068_v16 = vadd.f32 %v1067_v54, %v1043_v27  ;;  %v1997_v27 = vmul.f32 %v6822_v37, %v1989_v21  ;;  %v6840_v21 = vld [vmem:[#allocation32_spill] sm:$0xff] }
 0x85f   : > { %3081 = vrot.lane.b32.xlu1 %v3071_v45, %s4525_s6  ;;  %v1995_v45 = vmul.f32 %v6816_v3, %v1985_v4  ;;  %v1980_v54 = vand.u32 2147483647, %v1976_v58 }
 0x860   : > { %v1015_v11 = vpop.permute.xlu1 %1014  ;;  %v1033_v38 = vpop.permute.xlu0 %1032 }
 0x861   : > { %v1044_v15 = vsel %vm1042_vm4, %v1015_v11, %v1017_v9  ;;  %v1082_v9 = vsel %vm1042_vm4, %v1033_v38, 0.0 }
 0x862   : > { %v1069_v17 = vadd.f32 %v1068_v16, %v1044_v15  ;;  %v1994_v16 = vmul.f32 %v6830_v63, %v1983_v31 }
 0x864   : > { %v1019_v22 = vpop.permute.xlu1 %1018  ;;  %v1071_v56 = vadd.f32 %v1070_v51, %v1069_v17  ;;  %v1037_v43 = vpop.permute.xlu0 %1036  ;;  %v1999_v17 = vmul.f32 %v1995_v45, %v1980_v54 }
 0x865   : > { %v1045_v49 = vsel %vm1042_vm4, %v1019_v22, %v1021_v14  ;;  %v1978_v14 = vsub.f32 %v6821_v32, %v1970_v36  ;;  %v1085_v22 = vsel %vm1042_vm4, %v1037_v43, 0.0 }
 0x866   : > { %v1072_v12 = vadd.f32 %v1071_v56, %v1045_v49 }
 0x867   : > { %v1982_v48 = vand.u32 2147483647, %v1978_v14 }
 0x868   : > { %v1023_v46 = vpop.permute.xlu1 %1022  ;;  %v1074_v8 = vadd.f32 %v1073_v24, %v1072_v12  ;;  %v2009_v53 = vpop.permute.xlu0 %2008 }
 0x869   : > { %v1046_v23 = vsel %vm1042_vm4, %v1023_v46, %v1025_v60  ;;  %v1981_v60 = vand.u32 2147483647, %v1977_v42  ;;  %v2001_v41 = vmul.f32 %v1997_v27, %v1982_v48 }
 0x86a   : > { %v1075_v13 = vadd.f32 %v1074_v8, %v1046_v23  ;;  %v2039_v8 = vrot.slane %v1999_v17, 1 }
 0x86b   : > { %v2000_v11 = vmul.f32 %v1996_v39, %v1981_v60  ;;  %v2043_v23 = vrot.slane %v2001_v41, 1 }
 0x86c   : > { %v1027_v33 = vpop.permute.xlu1 %1026  ;;  %v1077_v34 = vadd.f32 %v1076_v10, %v1075_v13  ;;  %v1041_v51 = vpop.permute.xlu0 %1040  ;;  %v2019_v13 = vsel %vm1042_vm4, %v2009_v53, 0.0 }
 0x86d   : > { %v1047_v29 = vsel %vm1042_vm4, %v1027_v33, %v1029_v30  ;;  %v1979_v30 = vand.u32 2147483647, %v1975_v55  ;;  %v2041_v49 = vrot.slane %v2000_v11, 1  ;;  %v1088_v19 = vsel %vm1042_vm4, %v1041_v51, 0.0 }
 0x86e   : > { %v1078_v6 = vadd.f32 %v1077_v34, %v1047_v29  ;;  %v2051_v3 = vsel %vm1115_vm15, %v2043_v23, 0.0 }
 0x86f   : > { %v1998_v56 = vmul.f32 %v1994_v16, %v1979_v30  ;;  %v2042_v52 = vsel %vm1115_vm15, %v2039_v8, %v2041_v49 }
 0x870   : > { %v1031_v28 = vpop.permute.xlu1 %1030  ;;  %v1080_v47 = vadd.f32 %v1079_v62, %v1078_v6  ;;  %v2013_v33 = vpop.permute.xlu0 %2012  ;;  %v2044_v6 = vsel %vm1115_vm15, %v2041_v49, %v2043_v23  ;;  %v2064_v62 = vadd.f32 %v6834_v26, %v2063_v50  ;;  %v3096_v26 = vrot.slane %v6371_v7, 1 }
 0x871   : > { %v1048_v35 = vsel %vm1042_vm4, %v1031_v28, %v1033_v38  ;;  %v2038_v10 = vrot.slane %v1998_v56, 1  ;;  %v2023_v40 = vsel %vm1042_vm4, %v2013_v33, 0.0  ;;  %v3110_v7 = vsel %vm2075_vm1, %v6225_v5, 0.0 }
 0x872   : > { %v1081_v2 = vadd.f32 %v1080_v47, %v1048_v35  ;;  %v2065_v36 = vadd.f32 %v6822_v37, %v2064_v62  ;;  %v3099_v37 = vsel %vm3098_vm13, %v3096_v26, 0.0 }
 0x874   : > { %v1035_v0 = vpop.permute.xlu1 %1034  ;;  %v1083_v59 = vadd.f32 %v1082_v9, %v1081_v2  ;;  %v2579_v63 = vpop.permute.xlu0 %2578  ;;  %v6839_v2 = vld [vmem:[#allocation33_spill] sm:$0xff] }
 0x875   : > { %v1049_v57 = vsel %vm1042_vm4, %v1035_v0, %v1037_v43  ;;  %v2040_v43 = vsel %vm1115_vm15, %v2038_v10, %v2039_v8  ;;  %v2584_v35 = vsel %vm2582_vm3, %v2579_v63, 0.0 }
 0x876   : > { %v1084_v32 = vadd.f32 %v1083_v59, %v1049_v57  ;;  %v2049_v20 = vadd.f32 %v2042_v52, %v2040_v43 }
 0x878   : > { %v2007_v15 = vpop.permute.xlu1 %2006  ;;  %v1086_v24 = vadd.f32 %v1085_v22, %v1084_v32  ;;  %v2050_v47 = vadd.f32 %v2049_v20, %v2044_v6 }
 0x879   : > { %v2018_v38 = vsel %vm1042_vm4, %v2007_v15, 0.0 }
 0x87a   : > { %v2020_v34 = vadd.f32 %v2019_v13, %v2018_v38  ;;  %v2052_v1 = vadd.f32 %v2051_v3, %v2050_v47 }
 0x87c   : > { %v1039_v12 = vpop.permute.xlu1 %1038 }
 0x87d   : > { %v1050_v46 = vsel %vm1042_vm4, %v1039_v12, %v1041_v51 }
 0x87e   : > { %v1087_v61 = vadd.f32 %v1086_v24, %v1050_v46 }
 0x880   : > { %v2011_v25 = vpop.permute.xlu1 %2010  ;;  %v1089_v44 = vadd.f32 %v1088_v19, %v1087_v61 }
 0x881   : > { %v2021_v29 = vsel %vm1042_vm4, %v2011_v25, 0.0 }
 0x882   : > { %v2022_v18 = vadd.f32 %v2021_v29, %v2020_v34 }
 0x883   : > { %1090 = vadd.xlane.f32.xlu1 %v1089_v44 }
 0x884   : > { %v2024_v28 = vadd.f32 %v2023_v40, %v2022_v18  ;;  %v2577_v31 = vpop.permute.xlu1 %2576 }
 0x885   : > { %v2583_v42 = vsel %vm2582_vm3, %v2577_v31, 0.0 }
 0x886   : > { %2025 = vadd.xlane.f32.xlu0 %v2024_v28  ;;  %v2585_v4 = vadd.f32 %v2584_v35, %v2583_v42 }
 0x887   : > { %2066 = vadd.xlane.f32.xlu1 %v2065_v36 }
 0x88a   : > { %2053 = vadd.xlane.f32.xlu0 %v2052_v1 }
 0x88b   : > { %2606 = vadd.xlane.f32.xlu1 %v6839_v2 }
 0x88e   : > { %2586 = vadd.xlane.f32.xlu0 %v2585_v4 }
 0x892   : > { %2619 = vadd.xlane.f32.xlu0 %v6840_v21 }
 0x896   : > { %3100 = vadd.xlane.f32.xlu0 %v3099_v37 }
 0x8ae   : > { %v620_v58 = vpop.xlane.xlu0 %619 }
 0x8af   : > { %v621_v9 = vrot.slane %v620_v58, 4 }
 0x8b1   : > { %v622_v14 = vadd.f32 %v621_v9, %v620_v58 }
 0x8b2   : > { %v1180_v45 = vpop.xlane.xlu0 %1179 }
 0x8b3   : > { %v623_v39 = vrot.slane %v622_v14, 2  ;;  %v1181_v27 = vrot.slane %v1180_v45, 4 }
 0x8b5   : > { %v624_v55 = vadd.f32 %v623_v39, %v622_v14  ;;  %v1182_v54 = vadd.f32 %v1181_v27, %v1180_v45 }
 0x8b7   : > { %v625_v53 = vrot.slane %v624_v55, 1  ;;  %v1183_v48 = vrot.slane %v1182_v54, 2 }
 0x8b9   : > { %v626_v0 = vadd.f32 %v625_v53, %v624_v55  ;;  %v1184_v41 = vadd.f32 %v1183_v48, %v1182_v54 }
 0x8bb   : > { %4280 = vpush %v626_v0  ;;  %v1185_v8 = vrot.slane %v1184_v41, 1 }
 0x8bd   : > { %v1186_v50 = vadd.f32 %v1185_v8, %v1184_v41 }
 0x8d1   : > { %v3082_v59 = vpop.permute.xlu1 %3081 }
 0x8d2   : > { %v3085_v60 = vsel %vm3084_vm11, %v3082_v59, 0.0 }
 0x8d3   : > { %3086 = vadd.xlane.f32.xlu1 %v3085_v60 }
 0x8d7   : > { %3111 = vadd.xlane.f32.xlu1 %v3110_v7 }
 0x8ec   : > { %s4281_s28 = spop %4280 }
 0x8ed   : > { %v3120_v57 = vstv %s4281_s28 }
 0x8ee   : > { %3121 = vst [vmem:[%s5090_s11] sm:$0x1] %v3120_v57 }
 0x910   : > { %v1091_v16 = vpop.xlane.xlu1 %1090 }
 0x911   : > { %v1092_v11 = vrot.slane %v1091_v16, 4 }
 0x913   : > { %v1093_v32 = vadd.f32 %v1092_v11, %v1091_v16  ;;  %v2026_v15 = vpop.xlane.xlu0 %2025 }
 0x914   : > { %v2027_v30 = vrot.slane %v2026_v15, 4  ;;  %v2067_v17 = vpop.xlane.xlu1 %2066 }
 0x915   : > { %v1094_v51 = vrot.slane %v1093_v32, 2  ;;  %v2068_v22 = vrot.slane %v2067_v17, 4 }
 0x916   : > { %v2028_v56 = vadd.f32 %v2027_v30, %v2026_v15 }
 0x917   : > { %v2069_v49 = vadd.f32 %v2068_v22, %v2067_v17  ;;  %v2054_v5 = vpop.xlane.xlu0 %2053  ;;  %v1095_v12 = vadd.f32 %v1094_v51, %v1093_v32 }
 0x918   : > { %v2029_v24 = vrot.slane %v2028_v56, 2  ;;  %v2055_v38 = vrot.slane %v2054_v5, 4  ;;  %v2607_v46 = vpop.xlane.xlu1 %2606 }
 0x919   : > { %v2070_v23 = vrot.slane %v2069_v49, 2  ;;  %v2608_v61 = vrot.slane %v2607_v46, 4  ;;  %v1096_v13 = vrot.slane %v1095_v12, 1 }
 0x91a   : > { %v2056_v19 = vadd.f32 %v2055_v38, %v2054_v5  ;;  %v2030_v10 = vadd.f32 %v2029_v24, %v2028_v56 }
 0x91b   : > { %v2609_v52 = vadd.f32 %v2608_v61, %v2607_v46  ;;  %v2587_v33 = vpop.xlane.xlu0 %2586  ;;  %v1097_v34 = vadd.f32 %v1096_v13, %v1095_v12  ;;  %v2071_v25 = vadd.f32 %v2070_v23, %v2069_v49 }
 0x91c   : > { %v2057_v44 = vrot.slane %v2056_v19, 2  ;;  %v2588_v29 = vrot.slane %v2587_v33, 4  ;;  %v2031_v43 = vrot.slane %v2030_v10, 1 }
 0x91d   : > { %v2610_v6 = vrot.slane %v2609_v52, 2  ;;  %4282 = vpush %v1097_v34  ;;  %v2072_v28 = vrot.slane %v2071_v25, 1 }
 0x91e   : > { %v2589_v18 = vadd.f32 %v2588_v29, %v2587_v33  ;;  %4284 = vpush %v1186_v50  ;;  %v2032_v20 = vadd.f32 %v2031_v43, %v2030_v10  ;;  %v2058_v40 = vadd.f32 %v2057_v44, %v2056_v19 }
 0x91f   : > { %v2620_v62 = vpop.xlane.xlu0 %2619  ;;  %v2611_v47 = vadd.f32 %v2610_v6, %v2609_v52  ;;  %v2073_v35 = vadd.f32 %v2072_v28, %v2071_v25 }
 0x920   : > { %v2590_v36 = vrot.slane %v2589_v18, 2  ;;  %v2621_v31 = vrot.slane %v2620_v62, 4  ;;  %4286 = vpush %v2032_v20  ;;  %v2059_v3 = vrot.slane %v2058_v40, 1 }
 0x921   : > { %v2612_v2 = vrot.slane %v2611_v47, 1 }
 0x922   : > { %v2622_v63 = vadd.f32 %v2621_v31, %v2620_v62  ;;  %v2060_v1 = vadd.f32 %v2059_v3, %v2058_v40  ;;  %v2591_v42 = vadd.f32 %v2590_v36, %v2589_v18 }
 0x923   : > { %v2613_v58 = vadd.f32 %v2612_v2, %v2611_v47  ;;  %v3101_v55 = vpop.xlane.xlu0 %3100 }
 0x924   : > { %v2623_v4 = vrot.slane %v2622_v63, 2  ;;  %4288 = vpush %v2060_v1  ;;  %v2592_v26 = vrot.slane %v2591_v42, 1  ;;  %v3102_v0 = vrot.slane %v3101_v55, 4 }
 0x925   : > { %4290 = vpush %v2073_v35 }
 0x926   : > { %v2593_v21 = vadd.f32 %v2592_v26, %v2591_v42  ;;  %v2624_v37 = vadd.f32 %v2623_v4, %v2622_v63  ;;  %v3103_v60 = vadd.f32 %v3102_v0, %v3101_v55 }
 0x928   : > { %4292 = vpush %v2593_v21  ;;  %v2625_v9 = vrot.slane %v2624_v37, 1  ;;  %v3104_v45 = vrot.slane %v3103_v60, 2 }
 0x929   : > { %4294 = vpush %v2613_v58 }
 0x92a   : > { %v2626_v14 = vadd.f32 %v2625_v9, %v2624_v37  ;;  %v3105_v16 = vadd.f32 %v3104_v45, %v3103_v60 }
 0x92c   : > { %4296 = vpush %v2626_v14  ;;  %v3106_v41 = vrot.slane %v3105_v16, 1 }
 0x92e   : > { %v3107_v5 = vadd.f32 %v3106_v41, %v3105_v16 }
 0x94e   : > { %s4283_s21 = spop %4282 }
 0x94f   : > { %s4285_s15 = spop %4284 }
 0x950   : > { %s1188_s8 = sadd.f32 %s4285_s15, %s4283_s21 }
 0x951   : > { %s4287_s9 = spop %4286 }
 0x952   : > { %v3124_v39 = vstv %s1188_s8 }
 0x953   : > { %3125 = vst [vmem:[%s5090_s11 + $0x2] sm:$0x1] %v3124_v39 }
 0x955   : > { %s4289_s22 = spop %4288 }
 0x956   : > { %s2062_s24 = sadd.f32 %s4289_s22, %s4287_s9  ;;  %s4291_s23 = spop %4290 }
 0x957   : > { %v3129_v53 = vstv %s4291_s23 }
 0x958   : > { %v3127_v59 = vstv %s2062_s24  ;;  %3130 = vst [vmem:[%s5090_s11 + $0x5] sm:$0x1] %v3129_v53 }
 0x959   : > { %3128 = vst [vmem:[%s5090_s11 + $0x4] sm:$0x1] %v3127_v59  ;;  %s4293_s10 = spop %4292 }
 0x95a   : > { %s4295_s12 = spop %4294 }
 0x95b   : > { %s2615_s16 = sadd.f32 %s4295_s12, %s4293_s10 }
 0x95d   : > { %v3131_v7 = vstv %s2615_s16  ;;  %s4297_s18 = spop %4296 }
 0x95e   : > { %3132 = vst [vmem:[%s5090_s11 + $0x6] sm:$0x1] %v3131_v7  ;;  %v3133_v57 = vstv %s4297_s18 }
 0x95f   : > { %3134 = vst [vmem:[%s5090_s11 + $0x7] sm:$0x1] %v3133_v57 }
 0x960   : > { %v3087_v27 = vpop.xlane.xlu1 %3086 }
 0x961   : > { %v3088_v54 = vrot.slane %v3087_v27, 4 }
 0x963   : > { %v3089_v48 = vadd.f32 %v3088_v54, %v3087_v27 }
 0x964   : > { %v3112_v11 = vpop.xlane.xlu1 %3111 }
 0x965   : > { %v3090_v32 = vrot.slane %v3089_v48, 2  ;;  %v3113_v15 = vrot.slane %v3112_v11, 4 }
 0x967   : > { %v3114_v30 = vadd.f32 %v3113_v15, %v3112_v11  ;;  %v3091_v17 = vadd.f32 %v3090_v32, %v3089_v48 }
 0x969   : > { %v3115_v51 = vrot.slane %v3114_v30, 2  ;;  %v3092_v22 = vrot.slane %v3091_v17, 1 }
 0x96b   : > { %v3116_v56 = vadd.f32 %v3115_v51, %v3114_v30  ;;  %v3093_v49 = vadd.f32 %v3092_v22, %v3091_v17 }
 0x96d   : > { %4298 = vpush %v3093_v49  ;;  %v3117_v12 = vrot.slane %v3116_v56, 1 }
 0x96e   : > { %4300 = vpush %v3107_v5 }
 0x96f   : > { %v3118_v24 = vadd.f32 %v3117_v12, %v3116_v56 }
 0x971   : > { %4302 = vpush %v3118_v24 }
 0x99e   : > { %s4299_s7 = spop %4298 }
 0x99f   : > { %s4301_s29 = spop %4300 }
 0x9a0   : > { %s3109_s4 = sadd.f32 %s4301_s29, %s4299_s7 }
 0x9a2   : > { %v3135_v38 = vstv %s3109_s4  ;;  %s4303_s19 = spop %4302 }
 0x9a3   : > { %3136 = vst [vmem:[%s5090_s11 + $0x8] sm:$0x1] %v3135_v38  ;;  %v3137_v46 = vstv %s4303_s19 }
 0x9a4   : > { %3138 = vst [vmem:[%s5090_s11 + $0x9] sm:$0x1] %v3137_v46 }
 0x9a5 PF: > { %p16_p7 = scmp.ge.s32.totalorder %s4568_s17, 4   ;;  %s6841_s12 = smov %s4505_s13 }
 0x9a6   : > { %s6842_s13 = smov %s4509_s14  ;;  %s6843_s14 = smov %s4578_s20 }
 0x9a7   : > { %s6844_s15 = smov %s4568_s17  ;;  %18 = sbr.rel (!%p16_p7) target bundleno = 5 (0x5), region = 96 }
 0x9ae   :  { %3160 = vsyncpa [#allocation3], 1 }
 0x9af   :  { %3162 = vsyncpa [#allocation3 + $0x1], 1 }
 0x9b0   :  { %3163 = vsyncpa [#allocation5], 1 }
 0x9b1   :  { %3165 = vsyncpa [#allocation5 + $0x1], 1 }

</bundles_post_ra>
